<compile_context>
chip_gen: v6e
topology: v6e:2x2x1
jax: 0.10.0
libtpu: 0.0.40
codegen_flags: <defaults>
</compile_context>

<pallas_src>
import functools

import jax
import jax.numpy as jnp
from jax.experimental import pallas as pl
from jax.experimental.pallas import tpu as pltpu


def _layernorm(x, gamma, beta, eps=1e-5):
    # x: (M, D) f32, gamma/beta: (1, D) f32. Stats kept in f32.
    mu = jnp.mean(x, axis=-1, keepdims=True)
    var = jnp.mean((x - mu) ** 2, axis=-1, keepdims=True)
    return (x - mu) * jax.lax.rsqrt(var + eps) * gamma + beta


def _encoder_kernel(x_ref,
                    ln1g_ref, ln1b_ref,
                    wqkv_ref, bqkv_ref,
                    wo_ref, bo_ref,
                    ln2g_ref, ln2b_ref,
                    w1_ref, b1_ref, w2_ref, b2_ref,
                    fng_ref, fnb_ref,
                    o_ref,
                    acc_ref,
                    *, num_heads, batch, seq):
    layer = pl.program_id(0)
    n_layers = pl.num_programs(0)

    B, N = batch, seq
    M = B * N
    D = x_ref.shape[-1]
    H = num_heads
    hd = D // H
    scale = 1.0 / float(hd) ** 0.5

    # Load all activations into the resident f32 carry once (flattened rows).
    @pl.when(layer == 0)
    def _():
        acc_ref[...] = x_ref[...].reshape(M, D)

    x = acc_ref[...]                               # (M, D) f32, VMEM-resident

    # ---- Multi-head self-attention (pre-norm), fused QKV projection ----
    h = _layernorm(x, ln1g_ref[0], ln1b_ref[0])
    hb = h.astype(jnp.bfloat16)                    # bf16 only at the MXU boundary
    qkv = jnp.dot(hb, wqkv_ref[0],
                  preferred_element_type=jnp.float32) + bqkv_ref[0]   # (M, 3D) f32
    wo = wo_ref[0]                                 # (D, D) bf16

    # Per-head attention with leading-batch 3-D einsums (no transposes, no
    # concat): output projection is accumulated head by head, which equals
    # concat(heads) @ Wo exactly. Static lane slices are tile-aligned when
    # head_dim is a multiple of 128 (true for the shapes below).
    attn = jnp.zeros((M, D), jnp.float32)
    for hh in range(H):
        lo = hh * hd
        q = (qkv[:, lo:lo + hd] * scale).astype(jnp.bfloat16).reshape(B, N, hd)
        k = qkv[:, D + lo:D + lo + hd].astype(jnp.bfloat16).reshape(B, N, hd)
        v = qkv[:, 2 * D + lo:2 * D + lo + hd].astype(jnp.bfloat16).reshape(B, N, hd)

        s = jnp.einsum('bqd,bkd->bqk', q, k,
                       preferred_element_type=jnp.float32)            # (B, N, N) f32
        s = s - jnp.max(s, axis=-1, keepdims=True)
        p = jnp.exp(s)
        p = p * pl.reciprocal(jnp.sum(p, axis=-1, keepdims=True), approx=True)
        ctx = jnp.einsum('bqk,bkd->bqd', p.astype(jnp.bfloat16), v,
                         preferred_element_type=jnp.float32)           # (B, N, hd) f32
        attn = attn + jnp.dot(ctx.reshape(M, hd).astype(jnp.bfloat16),
                              wo[lo:lo + hd, :],
                              preferred_element_type=jnp.float32)
    # dropout: identity (inference)
    x = x + attn + bo_ref[0]

    # ---- MLP (pre-norm): Linear -> GELU -> Linear ----
    h2 = _layernorm(x, ln2g_ref[0], ln2b_ref[0])
    m = jnp.dot(h2.astype(jnp.bfloat16), w1_ref[0],
                preferred_element_type=jnp.float32) + b1_ref[0]
    # tanh-GELU routes through the otherwise-idle EUP slot.
    # TODO(synk): switch to approximate=False (erf) if bit-parity with torch's
    # exact GELU is required by the tolerance budget.
    m = jax.nn.gelu(m, approximate=True)
    m = jnp.dot(m.astype(jnp.bfloat16), w2_ref[0],
                preferred_element_type=jnp.float32) + b2_ref[0]
    # dropout: identity (inference)
    x = x + m

    acc_ref[...] = x                               # carry to next layer (VMEM)

    # Final LayerNorm fused into the last layer iteration; single HBM writeback.
    @pl.when(layer == n_layers - 1)
    def _():
        y = _layernorm(x, fng_ref[...], fnb_ref[...])
        o_ref[...] = y.reshape(B, N, D)


def _vmem_limit_bytes(B, N, D, Dff):
    """Shape-derived scoped-VMEM budget (double-buffered bf16 weights + carry)."""
    M = B * N
    weights = 2 * 2 * (3 * D * D + D * D + D * Dff + Dff * D)   # 2-deep, bf16
    biases = 2 * 4 * (3 * D + Dff + 8 * D)
    acts = 4 * (3 * M * D)                                      # carry + x + out blocks
    interm = 4 * (M * (3 * D + Dff))                            # f32 intermediates
    total = weights + biases + acts + interm + (8 << 20)
    # TODO(synk): for very large D/Dff on v7x (64 MiB physical VMEM) add a Dff
    # tiling grid axis for w1/w2 instead of just raising this limit.
    return int(min(max(total, 24 << 20), 96 << 20))


def encoder_forward(x, params, num_heads):
    B, N, D = x.shape
    L = params["wqkv"].shape[0]
    Dff = params["w1"].shape[-1]

    def wspec(shape):
        # Per-layer stacked tensor: block index follows the layer grid axis, so
        # the pipeline prefetches layer l+1 weights while layer l computes.
        return pl.BlockSpec(shape, lambda l: (l,) + (0,) * (len(shape) - 1))

    in_specs = [
        # Activations: layer-invariant block index -> fetched from HBM once.
        pl.BlockSpec((B, N, D), lambda l: (0, 0, 0)),
        wspec((1, 1, D)), wspec((1, 1, D)),                # ln1 gamma/beta
        wspec((1, D, 3 * D)), wspec((1, 1, 3 * D)),        # fused Wqkv, bqkv
        wspec((1, D, D)), wspec((1, 1, D)),                # wo, bo
        wspec((1, 1, D)), wspec((1, 1, D)),                # ln2 gamma/beta
        wspec((1, D, Dff)), wspec((1, 1, Dff)),            # w1, b1
        wspec((1, Dff, D)), wspec((1, 1, D)),              # w2, b2
        pl.BlockSpec((1, D), lambda l: (0, 0)),            # final norm gamma
        pl.BlockSpec((1, D), lambda l: (0, 0)),            # final norm beta
    ]
    # Output block index is layer-invariant -> resident in VMEM across the whole
    # stack; written back to HBM only once, after the last layer.
    out_spec = pl.BlockSpec((B, N, D), lambda l: (0, 0, 0))

    return pl.pallas_call(
        functools.partial(_encoder_kernel, num_heads=num_heads, batch=B, seq=N),
        out_shape=jax.ShapeDtypeStruct((B, N, D), jnp.float32),
        grid=(L,),
        in_specs=in_specs,
        out_specs=out_spec,
        scratch_shapes=[pltpu.VMEM((B * N, D), jnp.float32)],   # activation carry
        compiler_params=pltpu.CompilerParams(
            dimension_semantics=("arbitrary",),
            vmem_limit_bytes=_vmem_limit_bytes(B, N, D, Dff)),
    )(x,
      params["ln1_g"], params["ln1_b"],
      params["wqkv"], params["bqkv"],
      params["wo"], params["bo"],
      params["ln2_g"], params["ln2_b"],
      params["w1"], params["b1"], params["w2"], params["b2"],
      params["norm_g"], params["norm_b"])


def init_params(key, embed_dim, depth, mlp_ratio):
    D = embed_dim
    Dff = D * mlp_ratio
    ks = jax.random.split(key, 6)
    s_attn = 1.0 / (D ** 0.5)
    s_mlp1 = 1.0 / (D ** 0.5)
    s_mlp2 = 1.0 / (Dff ** 0.5)
    wdt = jnp.bfloat16   # weights stored/streamed in bf16; f32 accumulation
    wq = jax.random.normal(ks[0], (depth, D, D), jnp.float32) * s_attn
    wk = jax.random.normal(ks[1], (depth, D, D), jnp.float32) * s_attn
    wv = jax.random.normal(ks[2], (depth, D, D), jnp.float32) * s_attn
    return dict(
        ln1_g=jnp.ones((depth, 1, D), jnp.float32),
        ln1_b=jnp.zeros((depth, 1, D), jnp.float32),
        wqkv=jnp.concatenate([wq, wk, wv], axis=-1).astype(wdt),   # (L, D, 3D)
        bqkv=jnp.zeros((depth, 1, 3 * D), jnp.float32),
        wo=(jax.random.normal(ks[3], (depth, D, D), jnp.float32) * s_attn).astype(wdt),
        bo=jnp.zeros((depth, 1, D), jnp.float32),
        ln2_g=jnp.ones((depth, 1, D), jnp.float32),
        ln2_b=jnp.zeros((depth, 1, D), jnp.float32),
        w1=(jax.random.normal(ks[4], (depth, D, Dff), jnp.float32) * s_mlp1).astype(wdt),
        b1=jnp.zeros((depth, 1, Dff), jnp.float32),
        w2=(jax.random.normal(ks[5], (depth, Dff, D), jnp.float32) * s_mlp2).astype(wdt),
        b2=jnp.zeros((depth, 1, D), jnp.float32),
        norm_g=jnp.ones((1, D), jnp.float32),
        norm_b=jnp.zeros((1, D), jnp.float32),
    )


if __name__ == "__main__":
    # Small but lane-dense shapes: (B, num_patches, embed_dim) with
    # embed_dim / mlp hidden / head_dim all multiples of 128.
    B, N, D = 2, 8, 256
    depth, num_heads, mlp_ratio = 2, 2, 4    # head_dim = 128

    key = jax.random.PRNGKey(0)
    kx, kp = jax.random.split(key)
    x = jax.random.normal(kx, (B, N, D), jnp.float32)
    params = init_params(kp, D, depth, mlp_ratio)

    out = jax.block_until_ready(encoder_forward(x, params, num_heads))
    assert out.shape == (B, N, D)
    assert bool(jnp.all(jnp.isfinite(out)))
    print("KERNEL_OK")
</pallas_src>

<mosaic_0001>
module attributes {stable_mosaic.version = 11 : i64} {
  func.func @_encoder_kernel(%arg0: i32, %arg1: memref<2x8x256xf32, #tpu.memory_space<vmem>>, %arg2: memref<1x1x256xf32, #tpu.memory_space<vmem>>, %arg3: memref<1x1x256xf32, #tpu.memory_space<vmem>>, %arg4: memref<1x256x768xbf16, #tpu.memory_space<vmem>>, %arg5: memref<1x1x768xf32, #tpu.memory_space<vmem>>, %arg6: memref<1x256x256xbf16, #tpu.memory_space<vmem>>, %arg7: memref<1x1x256xf32, #tpu.memory_space<vmem>>, %arg8: memref<1x1x256xf32, #tpu.memory_space<vmem>>, %arg9: memref<1x1x256xf32, #tpu.memory_space<vmem>>, %arg10: memref<1x256x1024xbf16, #tpu.memory_space<vmem>>, %arg11: memref<1x1x1024xf32, #tpu.memory_space<vmem>>, %arg12: memref<1x1024x256xbf16, #tpu.memory_space<vmem>>, %arg13: memref<1x1x256xf32, #tpu.memory_space<vmem>>, %arg14: memref<1x256xf32, #tpu.memory_space<vmem>>, %arg15: memref<1x256xf32, #tpu.memory_space<vmem>>, %arg16: memref<2x8x256xf32, #tpu.memory_space<vmem>>, %arg17: memref<16x256xf32, #tpu.memory_space<vmem>>) attributes {dimension_semantics = [#tpu.dimension_semantics<arbitrary>], iteration_bounds = array<i64: 2>, scalar_prefetch = 0 : i64, scratch_operands = 1 : i64, tpu.core_type = #tpu.core_type<tc>, window_params = [{pipeline_mode = #tpu.pipeline_mode<synchronous>, transform_indices = @transform_0, window_bounds = array<i64: 2, 8, 256>}, {transform_indices = @transform_1, window_bounds = array<i64: 1, 1, 256>}, {transform_indices = @transform_2, window_bounds = array<i64: 1, 1, 256>}, {transform_indices = @transform_3, window_bounds = array<i64: 1, 256, 768>}, {transform_indices = @transform_4, window_bounds = array<i64: 1, 1, 768>}, {transform_indices = @transform_5, window_bounds = array<i64: 1, 256, 256>}, {transform_indices = @transform_6, window_bounds = array<i64: 1, 1, 256>}, {transform_indices = @transform_7, window_bounds = array<i64: 1, 1, 256>}, {transform_indices = @transform_8, window_bounds = array<i64: 1, 1, 256>}, {transform_indices = @transform_9, window_bounds = array<i64: 1, 256, 1024>}, {transform_indices = @transform_10, window_bounds = array<i64: 1, 1, 1024>}, {transform_indices = @transform_11, window_bounds = array<i64: 1, 1024, 256>}, {transform_indices = @transform_12, window_bounds = array<i64: 1, 1, 256>}, {pipeline_mode = #tpu.pipeline_mode<synchronous>, transform_indices = @transform_13, window_bounds = array<i64: 1, 256>}, {pipeline_mode = #tpu.pipeline_mode<synchronous>, transform_indices = @transform_14, window_bounds = array<i64: 1, 256>}, {pipeline_mode = #tpu.pipeline_mode<synchronous>, transform_indices = @transform_15, window_bounds = array<i64: 2, 8, 256>}]} {
    %c0_i32 = arith.constant 0 : i32
    %0 = arith.cmpi eq, %arg0, %c0_i32 : i32
    %1 = arith.extui %0 : i1 to i32
    %c0_i32_0 = arith.constant 0 : i32
    %2 = arith.cmpi ne, %1, %c0_i32_0 : i32
    scf.if %2 {
      %c0_70 = arith.constant 0 : index
      %c0_71 = arith.constant 0 : index
      %c0_72 = arith.constant 0 : index
      %164 = vector.load %arg1[%c0_70, %c0_71, %c0_72] : memref<2x8x256xf32, #tpu.memory_space<vmem>>, vector<2x8x256xf32>
      %165 = vector.shape_cast %164 : vector<2x8x256xf32> to vector<16x256xf32>
      %c0_73 = arith.constant 0 : index
      %c0_74 = arith.constant 0 : index
      %166 = vector.load %arg17[%c0_73, %c0_74] : memref<16x256xf32, #tpu.memory_space<vmem>>, vector<16x256xf32>
      tpu.vector_store %arg17[%c0_73, %c0_74], %165 {strides = array<i32>} : memref<16x256xf32, #tpu.memory_space<vmem>>, vector<16x256xf32>,
    } else {
    }
    %c0 = arith.constant 0 : index
    %c0_1 = arith.constant 0 : index
    %3 = vector.load %arg17[%c0, %c0_1] : memref<16x256xf32, #tpu.memory_space<vmem>>, vector<16x256xf32>
    %c0_2 = arith.constant 0 : index
    %c0_3 = arith.constant 0 : index
    %c0_4 = arith.constant 0 : index
    %4 = vector.load %arg2[%c0_2, %c0_3, %c0_4] : memref<1x1x256xf32, #tpu.memory_space<vmem>>, vector<1x1x256xf32>
    %5 = vector.shape_cast %4 : vector<1x1x256xf32> to vector<1x256xf32>
    %c0_5 = arith.constant 0 : index
    %c0_6 = arith.constant 0 : index
    %c0_7 = arith.constant 0 : index
    %6 = vector.load %arg3[%c0_5, %c0_6, %c0_7] : memref<1x1x256xf32, #tpu.memory_space<vmem>>, vector<1x1x256xf32>
    %7 = vector.shape_cast %6 : vector<1x1x256xf32> to vector<1x256xf32>
    %cst = arith.constant dense<0.000000e+00> : vector<16xf32>
    %8 = vector.multi_reduction <add>, %3, %cst [1] : vector<16x256xf32> to vector<16xf32>
    %9 = vector.shape_cast %8 : vector<16xf32> to vector<16x1xf32>
    %cst_8 = arith.constant 2.560000e+02 : f32
    %10 = vector.broadcast %cst_8 : f32 to vector<16x1xf32>
    %11 = arith.divf %9, %10 : vector<16x1xf32>
    %12 = vector.broadcast %11 : vector<16x1xf32> to vector<16x256xf32>
    %13 = arith.subf %3, %12 : vector<16x256xf32>
    %14 = arith.mulf %13, %13 : vector<16x256xf32>
    %cst_9 = arith.constant dense<0.000000e+00> : vector<16xf32>
    %15 = vector.multi_reduction <add>, %14, %cst_9 [1] : vector<16x256xf32> to vector<16xf32>
    %16 = vector.shape_cast %15 : vector<16xf32> to vector<16x1xf32>
    %cst_10 = arith.constant 2.560000e+02 : f32
    %17 = vector.broadcast %cst_10 : f32 to vector<16x1xf32>
    %18 = arith.divf %16, %17 : vector<16x1xf32>
    %19 = vector.broadcast %11 : vector<16x1xf32> to vector<16x256xf32>
    %20 = arith.subf %3, %19 : vector<16x256xf32>
    %cst_11 = arith.constant 9.99999974E-6 : f32
    %21 = vector.broadcast %cst_11 : f32 to vector<16x1xf32>
    %22 = arith.addf %18, %21 : vector<16x1xf32>
    %23 = math.rsqrt %22 : vector<16x1xf32>
    %24 = vector.broadcast %23 : vector<16x1xf32> to vector<16x256xf32>
    %25 = arith.mulf %20, %24 : vector<16x256xf32>
    %26 = vector.broadcast %5 : vector<1x256xf32> to vector<16x256xf32>
    %27 = arith.mulf %25, %26 : vector<16x256xf32>
    %28 = vector.broadcast %7 : vector<1x256xf32> to vector<16x256xf32>
    %29 = arith.addf %27, %28 : vector<16x256xf32>
    %30 = arith.truncf %29 : vector<16x256xf32> to vector<16x256xbf16>
    %c0_12 = arith.constant 0 : index
    %c0_13 = arith.constant 0 : index
    %c0_14 = arith.constant 0 : index
    %31 = vector.load %arg4[%c0_12, %c0_13, %c0_14] : memref<1x256x768xbf16, #tpu.memory_space<vmem>>, vector<1x256x768xbf16>
    %32 = vector.shape_cast %31 : vector<1x256x768xbf16> to vector<256x768xbf16>
    %cst_15 = arith.constant dense<0.000000e+00> : vector<16x768xf32>
    %33 = tpu.matmul %30, %32, %cst_15 {dimension_numbers = #tpu.dot_dimension_numbers<[1], [0], [0], [1], [0, 0, 1, 1], [], []>} : vector<16x256xbf16>, vector<256x768xbf16>, vector<16x768xf32> -> vector<16x768xf32>
    %c0_16 = arith.constant 0 : index
    %c0_17 = arith.constant 0 : index
    %c0_18 = arith.constant 0 : index
    %34 = vector.load %arg5[%c0_16, %c0_17, %c0_18] : memref<1x1x768xf32, #tpu.memory_space<vmem>>, vector<1x1x768xf32>
    %35 = vector.shape_cast %34 : vector<1x1x768xf32> to vector<1x768xf32>
    %36 = vector.broadcast %35 : vector<1x768xf32> to vector<16x768xf32>
    %37 = arith.addf %33, %36 : vector<16x768xf32>
    %c0_19 = arith.constant 0 : index
    %c0_20 = arith.constant 0 : index
    %c0_21 = arith.constant 0 : index
    %38 = vector.load %arg6[%c0_19, %c0_20, %c0_21] : memref<1x256x256xbf16, #tpu.memory_space<vmem>>, vector<1x256x256xbf16>
    %39 = vector.shape_cast %38 : vector<1x256x256xbf16> to vector<256x256xbf16>
    %cst_22 = arith.constant 0.000000e+00 : f32
    %40 = vector.broadcast %cst_22 : f32 to vector<16x256xf32>
    %41 = vector.extract_strided_slice %37 {offsets = [0, 0], sizes = [16, 128], strides = [1, 1]} : vector<16x768xf32> to vector<16x128xf32>
    %cst_23 = arith.constant 0.0883883461 : f32
    %42 = vector.broadcast %cst_23 : f32 to vector<16x128xf32>
    %43 = arith.mulf %41, %42 : vector<16x128xf32>
    %44 = arith.truncf %43 : vector<16x128xf32> to vector<16x128xbf16>
    %45 = vector.shape_cast %44 : vector<16x128xbf16> to vector<2x8x128xbf16>
    %46 = vector.extract_strided_slice %37 {offsets = [0, 256], sizes = [16, 128], strides = [1, 1]} : vector<16x768xf32> to vector<16x128xf32>
    %47 = arith.truncf %46 : vector<16x128xf32> to vector<16x128xbf16>
    %48 = vector.shape_cast %47 : vector<16x128xbf16> to vector<2x8x128xbf16>
    %49 = vector.extract_strided_slice %37 {offsets = [0, 512], sizes = [16, 128], strides = [1, 1]} : vector<16x768xf32> to vector<16x128xf32>
    %50 = arith.truncf %49 : vector<16x128xf32> to vector<16x128xbf16>
    %51 = vector.shape_cast %50 : vector<16x128xbf16> to vector<2x8x128xbf16>
    "tpu.trace_start"() <{level = 10 : i32, message = "bqd,bkd->bqk"}> : () -> ()
    %cst_24 = arith.constant dense<0.000000e+00> : vector<2x8x8xf32>
    %52 = tpu.matmul %45, %48, %cst_24 {dimension_numbers = #tpu.dot_dimension_numbers<[2], [2], [1], [1], [0, 0, 0, 1, 1, 1], [0], [0]>} : vector<2x8x128xbf16>, vector<2x8x128xbf16>, vector<2x8x8xf32> -> vector<2x8x8xf32>
    "tpu.trace_stop"() : () -> ()
    %cst_25 = arith.constant dense<0xFF800000> : vector<2x8xf32>
    %53 = vector.multi_reduction <maximumf>, %52, %cst_25 [2] : vector<2x8x8xf32> to vector<2x8xf32>
    %54 = vector.shape_cast %53 : vector<2x8xf32> to vector<2x8x1xf32>
    %55 = vector.broadcast %54 : vector<2x8x1xf32> to vector<2x8x8xf32>
    %56 = arith.subf %52, %55 : vector<2x8x8xf32>
    %57 = math.exp %56 : vector<2x8x8xf32>
    %cst_26 = arith.constant dense<0.000000e+00> : vector<2x8xf32>
    %58 = vector.multi_reduction <add>, %57, %cst_26 [2] : vector<2x8x8xf32> to vector<2x8xf32>
    %59 = vector.shape_cast %58 : vector<2x8xf32> to vector<2x8x1xf32>
    %60 = tpu.reciprocal %59 {approx = true} : vector<2x8x1xf32> -> vector<2x8x1xf32>
    %61 = vector.broadcast %60 : vector<2x8x1xf32> to vector<2x8x8xf32>
    %62 = arith.mulf %57, %61 : vector<2x8x8xf32>
    %63 = arith.truncf %62 : vector<2x8x8xf32> to vector<2x8x8xbf16>
    "tpu.trace_start"() <{level = 10 : i32, message = "bqk,bkd->bqd"}> : () -> ()
    %cst_27 = arith.constant dense<0.000000e+00> : vector<2x8x128xf32>
    %64 = tpu.matmul %63, %51, %cst_27 {dimension_numbers = #tpu.dot_dimension_numbers<[2], [1], [1], [2], [0, 0, 0, 1, 1, 2], [0], [0]>} : vector<2x8x8xbf16>, vector<2x8x128xbf16>, vector<2x8x128xf32> -> vector<2x8x128xf32>
    "tpu.trace_stop"() : () -> ()
    %65 = vector.shape_cast %64 : vector<2x8x128xf32> to vector<16x128xf32>
    %66 = arith.truncf %65 : vector<16x128xf32> to vector<16x128xbf16>
    %67 = vector.extract_strided_slice %39 {offsets = [0, 0], sizes = [128, 256], strides = [1, 1]} : vector<256x256xbf16> to vector<128x256xbf16>
    %cst_28 = arith.constant dense<0.000000e+00> : vector<16x256xf32>
    %68 = tpu.matmul %66, %67, %cst_28 {dimension_numbers = #tpu.dot_dimension_numbers<[1], [0], [0], [1], [0, 0, 1, 1], [], []>} : vector<16x128xbf16>, vector<128x256xbf16>, vector<16x256xf32> -> vector<16x256xf32>
    %69 = arith.addf %40, %68 : vector<16x256xf32>
    %70 = vector.extract_strided_slice %37 {offsets = [0, 128], sizes = [16, 128], strides = [1, 1]} : vector<16x768xf32> to vector<16x128xf32>
    %cst_29 = arith.constant 0.0883883461 : f32
    %71 = vector.broadcast %cst_29 : f32 to vector<16x128xf32>
    %72 = arith.mulf %70, %71 : vector<16x128xf32>
    %73 = arith.truncf %72 : vector<16x128xf32> to vector<16x128xbf16>
    %74 = vector.shape_cast %73 : vector<16x128xbf16> to vector<2x8x128xbf16>
    %75 = vector.extract_strided_slice %37 {offsets = [0, 384], sizes = [16, 128], strides = [1, 1]} : vector<16x768xf32> to vector<16x128xf32>
    %76 = arith.truncf %75 : vector<16x128xf32> to vector<16x128xbf16>
    %77 = vector.shape_cast %76 : vector<16x128xbf16> to vector<2x8x128xbf16>
    %78 = vector.extract_strided_slice %37 {offsets = [0, 640], sizes = [16, 128], strides = [1, 1]} : vector<16x768xf32> to vector<16x128xf32>
    %79 = arith.truncf %78 : vector<16x128xf32> to vector<16x128xbf16>
    %80 = vector.shape_cast %79 : vector<16x128xbf16> to vector<2x8x128xbf16>
    "tpu.trace_start"() <{level = 10 : i32, message = "bqd,bkd->bqk"}> : () -> ()
    %cst_30 = arith.constant dense<0.000000e+00> : vector<2x8x8xf32>
    %81 = tpu.matmul %74, %77, %cst_30 {dimension_numbers = #tpu.dot_dimension_numbers<[2], [2], [1], [1], [0, 0, 0, 1, 1, 1], [0], [0]>} : vector<2x8x128xbf16>, vector<2x8x128xbf16>, vector<2x8x8xf32> -> vector<2x8x8xf32>
    "tpu.trace_stop"() : () -> ()
    %cst_31 = arith.constant dense<0xFF800000> : vector<2x8xf32>
    %82 = vector.multi_reduction <maximumf>, %81, %cst_31 [2] : vector<2x8x8xf32> to vector<2x8xf32>
    %83 = vector.shape_cast %82 : vector<2x8xf32> to vector<2x8x1xf32>
    %84 = vector.broadcast %83 : vector<2x8x1xf32> to vector<2x8x8xf32>
    %85 = arith.subf %81, %84 : vector<2x8x8xf32>
    %86 = math.exp %85 : vector<2x8x8xf32>
    %cst_32 = arith.constant dense<0.000000e+00> : vector<2x8xf32>
    %87 = vector.multi_reduction <add>, %86, %cst_32 [2] : vector<2x8x8xf32> to vector<2x8xf32>
    %88 = vector.shape_cast %87 : vector<2x8xf32> to vector<2x8x1xf32>
    %89 = tpu.reciprocal %88 {approx = true} : vector<2x8x1xf32> -> vector<2x8x1xf32>
    %90 = vector.broadcast %89 : vector<2x8x1xf32> to vector<2x8x8xf32>
    %91 = arith.mulf %86, %90 : vector<2x8x8xf32>
    %92 = arith.truncf %91 : vector<2x8x8xf32> to vector<2x8x8xbf16>
    "tpu.trace_start"() <{level = 10 : i32, message = "bqk,bkd->bqd"}> : () -> ()
    %cst_33 = arith.constant dense<0.000000e+00> : vector<2x8x128xf32>
    %93 = tpu.matmul %92, %80, %cst_33 {dimension_numbers = #tpu.dot_dimension_numbers<[2], [1], [1], [2], [0, 0, 0, 1, 1, 2], [0], [0]>} : vector<2x8x8xbf16>, vector<2x8x128xbf16>, vector<2x8x128xf32> -> vector<2x8x128xf32>
    "tpu.trace_stop"() : () -> ()
    %94 = vector.shape_cast %93 : vector<2x8x128xf32> to vector<16x128xf32>
    %95 = arith.truncf %94 : vector<16x128xf32> to vector<16x128xbf16>
    %96 = vector.extract_strided_slice %39 {offsets = [128, 0], sizes = [128, 256], strides = [1, 1]} : vector<256x256xbf16> to vector<128x256xbf16>
    %cst_34 = arith.constant dense<0.000000e+00> : vector<16x256xf32>
    %97 = tpu.matmul %95, %96, %cst_34 {dimension_numbers = #tpu.dot_dimension_numbers<[1], [0], [0], [1], [0, 0, 1, 1], [], []>} : vector<16x128xbf16>, vector<128x256xbf16>, vector<16x256xf32> -> vector<16x256xf32>
    %98 = arith.addf %69, %97 : vector<16x256xf32>
    %99 = arith.addf %3, %98 : vector<16x256xf32>
    %c0_35 = arith.constant 0 : index
    %c0_36 = arith.constant 0 : index
    %c0_37 = arith.constant 0 : index
    %100 = vector.load %arg7[%c0_35, %c0_36, %c0_37] : memref<1x1x256xf32, #tpu.memory_space<vmem>>, vector<1x1x256xf32>
    %101 = vector.shape_cast %100 : vector<1x1x256xf32> to vector<1x256xf32>
    %102 = vector.broadcast %101 : vector<1x256xf32> to vector<16x256xf32>
    %103 = arith.addf %99, %102 : vector<16x256xf32>
    %c0_38 = arith.constant 0 : index
    %c0_39 = arith.constant 0 : index
    %c0_40 = arith.constant 0 : index
    %104 = vector.load %arg8[%c0_38, %c0_39, %c0_40] : memref<1x1x256xf32, #tpu.memory_space<vmem>>, vector<1x1x256xf32>
    %105 = vector.shape_cast %104 : vector<1x1x256xf32> to vector<1x256xf32>
    %c0_41 = arith.constant 0 : index
    %c0_42 = arith.constant 0 : index
    %c0_43 = arith.constant 0 : index
    %106 = vector.load %arg9[%c0_41, %c0_42, %c0_43] : memref<1x1x256xf32, #tpu.memory_space<vmem>>, vector<1x1x256xf32>
    %107 = vector.shape_cast %106 : vector<1x1x256xf32> to vector<1x256xf32>
    %cst_44 = arith.constant dense<0.000000e+00> : vector<16xf32>
    %108 = vector.multi_reduction <add>, %103, %cst_44 [1] : vector<16x256xf32> to vector<16xf32>
    %109 = vector.shape_cast %108 : vector<16xf32> to vector<16x1xf32>
    %cst_45 = arith.constant 2.560000e+02 : f32
    %110 = vector.broadcast %cst_45 : f32 to vector<16x1xf32>
    %111 = arith.divf %109, %110 : vector<16x1xf32>
    %112 = vector.broadcast %111 : vector<16x1xf32> to vector<16x256xf32>
    %113 = arith.subf %103, %112 : vector<16x256xf32>
    %114 = arith.mulf %113, %113 : vector<16x256xf32>
    %cst_46 = arith.constant dense<0.000000e+00> : vector<16xf32>
    %115 = vector.multi_reduction <add>, %114, %cst_46 [1] : vector<16x256xf32> to vector<16xf32>
    %116 = vector.shape_cast %115 : vector<16xf32> to vector<16x1xf32>
    %cst_47 = arith.constant 2.560000e+02 : f32
    %117 = vector.broadcast %cst_47 : f32 to vector<16x1xf32>
    %118 = arith.divf %116, %117 : vector<16x1xf32>
    %119 = vector.broadcast %111 : vector<16x1xf32> to vector<16x256xf32>
    %120 = arith.subf %103, %119 : vector<16x256xf32>
    %cst_48 = arith.constant 9.99999974E-6 : f32
    %121 = vector.broadcast %cst_48 : f32 to vector<16x1xf32>
    %122 = arith.addf %118, %121 : vector<16x1xf32>
    %123 = math.rsqrt %122 : vector<16x1xf32>
    %124 = vector.broadcast %123 : vector<16x1xf32> to vector<16x256xf32>
    %125 = arith.mulf %120, %124 : vector<16x256xf32>
    %126 = vector.broadcast %105 : vector<1x256xf32> to vector<16x256xf32>
    %127 = arith.mulf %125, %126 : vector<16x256xf32>
    %128 = vector.broadcast %107 : vector<1x256xf32> to vector<16x256xf32>
    %129 = arith.addf %127, %128 : vector<16x256xf32>
    %130 = arith.truncf %129 : vector<16x256xf32> to vector<16x256xbf16>
    %c0_49 = arith.constant 0 : index
    %c0_50 = arith.constant 0 : index
    %c0_51 = arith.constant 0 : index
    %131 = vector.load %arg10[%c0_49, %c0_50, %c0_51] : memref<1x256x1024xbf16, #tpu.memory_space<vmem>>, vector<1x256x1024xbf16>
    %132 = vector.shape_cast %131 : vector<1x256x1024xbf16> to vector<256x1024xbf16>
    %cst_52 = arith.constant dense<0.000000e+00> : vector<16x1024xf32>
    %133 = tpu.matmul %130, %132, %cst_52 {dimension_numbers = #tpu.dot_dimension_numbers<[1], [0], [0], [1], [0, 0, 1, 1], [], []>} : vector<16x256xbf16>, vector<256x1024xbf16>, vector<16x1024xf32> -> vector<16x1024xf32>
    %c0_53 = arith.constant 0 : index
    %c0_54 = arith.constant 0 : index
    %c0_55 = arith.constant 0 : index
    %134 = vector.load %arg11[%c0_53, %c0_54, %c0_55] : memref<1x1x1024xf32, #tpu.memory_space<vmem>>, vector<1x1x1024xf32>
    %135 = vector.shape_cast %134 : vector<1x1x1024xf32> to vector<1x1024xf32>
    %136 = vector.broadcast %135 : vector<1x1024xf32> to vector<16x1024xf32>
    %137 = arith.addf %133, %136 : vector<16x1024xf32>
    %138 = arith.mulf %137, %137 : vector<16x1024xf32>
    %139 = arith.mulf %137, %138 : vector<16x1024xf32>
    %cst_56 = arith.constant 4.471500e-02 : f32
    %140 = vector.broadcast %cst_56 : f32 to vector<16x1024xf32>
    %141 = arith.mulf %140, %139 : vector<16x1024xf32>
    %142 = arith.addf %137, %141 : vector<16x1024xf32>
    %cst_57 = arith.constant 0.797884583 : f32
    %143 = vector.broadcast %cst_57 : f32 to vector<16x1024xf32>
    %144 = arith.mulf %143, %142 : vector<16x1024xf32>
    %145 = math.tanh %144 : vector<16x1024xf32>
    %cst_58 = arith.constant 1.000000e+00 : f32
    %146 = vector.broadcast %cst_58 : f32 to vector<16x1024xf32>
    %147 = arith.addf %146, %145 : vector<16x1024xf32>
    %cst_59 = arith.constant 5.000000e-01 : f32
    %148 = vector.broadcast %cst_59 : f32 to vector<16x1024xf32>
    %149 = arith.mulf %148, %147 : vector<16x1024xf32>
    %150 = arith.mulf %137, %149 : vector<16x1024xf32>
    %151 = arith.truncf %150 : vector<16x1024xf32> to vector<16x1024xbf16>
    %c0_60 = arith.constant 0 : index
    %c0_61 = arith.constant 0 : index
    %c0_62 = arith.constant 0 : index
    %152 = vector.load %arg12[%c0_60, %c0_61, %c0_62] : memref<1x1024x256xbf16, #tpu.memory_space<vmem>>, vector<1x1024x256xbf16>
    %153 = vector.shape_cast %152 : vector<1x1024x256xbf16> to vector<1024x256xbf16>
    %cst_63 = arith.constant dense<0.000000e+00> : vector<16x256xf32>
    %154 = tpu.matmul %151, %153, %cst_63 {dimension_numbers = #tpu.dot_dimension_numbers<[1], [0], [0], [1], [0, 0, 1, 1], [], []>} : vector<16x1024xbf16>, vector<1024x256xbf16>, vector<16x256xf32> -> vector<16x256xf32>
    %c0_64 = arith.constant 0 : index
    %c0_65 = arith.constant 0 : index
    %c0_66 = arith.constant 0 : index
    %155 = vector.load %arg13[%c0_64, %c0_65, %c0_66] : memref<1x1x256xf32, #tpu.memory_space<vmem>>, vector<1x1x256xf32>
    %156 = vector.shape_cast %155 : vector<1x1x256xf32> to vector<1x256xf32>
    %157 = vector.broadcast %156 : vector<1x256xf32> to vector<16x256xf32>
    %158 = arith.addf %154, %157 : vector<16x256xf32>
    %159 = arith.addf %103, %158 : vector<16x256xf32>
    %c0_67 = arith.constant 0 : index
    %c0_68 = arith.constant 0 : index
    %160 = vector.load %arg17[%c0_67, %c0_68] : memref<16x256xf32, #tpu.memory_space<vmem>>, vector<16x256xf32>
    tpu.vector_store %arg17[%c0_67, %c0_68], %159 {strides = array<i32>} : memref<16x256xf32, #tpu.memory_space<vmem>>, vector<16x256xf32>,
    %c1_i32 = arith.constant 1 : i32
    %161 = arith.cmpi eq, %arg0, %c1_i32 : i32
    %162 = arith.extui %161 : i1 to i32
    %c0_i32_69 = arith.constant 0 : i32
    %163 = arith.cmpi ne, %162, %c0_i32_69 : i32
    scf.if %163 {
      %c0_70 = arith.constant 0 : index
      %c0_71 = arith.constant 0 : index
      %164 = vector.load %arg14[%c0_70, %c0_71] : memref<1x256xf32, #tpu.memory_space<vmem>>, vector<1x256xf32>
      %c0_72 = arith.constant 0 : index
      %c0_73 = arith.constant 0 : index
      %165 = vector.load %arg15[%c0_72, %c0_73] : memref<1x256xf32, #tpu.memory_space<vmem>>, vector<1x256xf32>
      %cst_74 = arith.constant dense<0.000000e+00> : vector<16xf32>
      %166 = vector.multi_reduction <add>, %159, %cst_74 [1] : vector<16x256xf32> to vector<16xf32>
      %167 = vector.shape_cast %166 : vector<16xf32> to vector<16x1xf32>
      %cst_75 = arith.constant 2.560000e+02 : f32
      %168 = vector.broadcast %cst_75 : f32 to vector<16x1xf32>
      %169 = arith.divf %167, %168 : vector<16x1xf32>
      %170 = vector.broadcast %169 : vector<16x1xf32> to vector<16x256xf32>
      %171 = arith.subf %159, %170 : vector<16x256xf32>
      %172 = arith.mulf %171, %171 : vector<16x256xf32>
      %cst_76 = arith.constant dense<0.000000e+00> : vector<16xf32>
      %173 = vector.multi_reduction <add>, %172, %cst_76 [1] : vector<16x256xf32> to vector<16xf32>
      %174 = vector.shape_cast %173 : vector<16xf32> to vector<16x1xf32>
      %cst_77 = arith.constant 2.560000e+02 : f32
      %175 = vector.broadcast %cst_77 : f32 to vector<16x1xf32>
      %176 = arith.divf %174, %175 : vector<16x1xf32>
      %177 = vector.broadcast %169 : vector<16x1xf32> to vector<16x256xf32>
      %178 = arith.subf %159, %177 : vector<16x256xf32>
      %cst_78 = arith.constant 9.99999974E-6 : f32
      %179 = vector.broadcast %cst_78 : f32 to vector<16x1xf32>
      %180 = arith.addf %176, %179 : vector<16x1xf32>
      %181 = math.rsqrt %180 : vector<16x1xf32>
      %182 = vector.broadcast %181 : vector<16x1xf32> to vector<16x256xf32>
      %183 = arith.mulf %178, %182 : vector<16x256xf32>
      %184 = vector.broadcast %164 : vector<1x256xf32> to vector<16x256xf32>
      %185 = arith.mulf %183, %184 : vector<16x256xf32>
      %186 = vector.broadcast %165 : vector<1x256xf32> to vector<16x256xf32>
      %187 = arith.addf %185, %186 : vector<16x256xf32>
      %188 = vector.shape_cast %187 : vector<16x256xf32> to vector<2x8x256xf32>
      %c0_79 = arith.constant 0 : index
      %c0_80 = arith.constant 0 : index
      %c0_81 = arith.constant 0 : index
      %189 = vector.load %arg16[%c0_79, %c0_80, %c0_81] : memref<2x8x256xf32, #tpu.memory_space<vmem>>, vector<2x8x256xf32>
      tpu.vector_store %arg16[%c0_79, %c0_80, %c0_81], %188 {strides = array<i32>} : memref<2x8x256xf32, #tpu.memory_space<vmem>>, vector<2x8x256xf32>,
    } else {
    }
    return
  }
  func.func @transform_0(%arg0: i32) -> (i32, i32, i32) {
    %c0_i32 = arith.constant 0 : i32
    %c0_i32_0 = arith.constant 0 : i32
    %c0_i32_1 = arith.constant 0 : i32
    %c0_i32_2 = arith.constant 0 : i32
    return %c0_i32, %c0_i32_0, %c0_i32_1 : i32, i32, i32
  }
  func.func @transform_1(%arg0: i32) -> (i32, i32, i32) {
    %c0_i32 = arith.constant 0 : i32
    %c0_i32_0 = arith.constant 0 : i32
    %c0_i32_1 = arith.constant 0 : i32
    return %arg0, %c0_i32, %c0_i32_0 : i32, i32, i32
  }
  func.func @transform_2(%arg0: i32) -> (i32, i32, i32) {
    %c0_i32 = arith.constant 0 : i32
    %c0_i32_0 = arith.constant 0 : i32
    %c0_i32_1 = arith.constant 0 : i32
    return %arg0, %c0_i32, %c0_i32_0 : i32, i32, i32
  }
  func.func @transform_3(%arg0: i32) -> (i32, i32, i32) {
    %c0_i32 = arith.constant 0 : i32
    %c0_i32_0 = arith.constant 0 : i32
    %c0_i32_1 = arith.constant 0 : i32
    return %arg0, %c0_i32, %c0_i32_0 : i32, i32, i32
  }
  func.func @transform_4(%arg0: i32) -> (i32, i32, i32) {
    %c0_i32 = arith.constant 0 : i32
    %c0_i32_0 = arith.constant 0 : i32
    %c0_i32_1 = arith.constant 0 : i32
    return %arg0, %c0_i32, %c0_i32_0 : i32, i32, i32
  }
  func.func @transform_5(%arg0: i32) -> (i32, i32, i32) {
    %c0_i32 = arith.constant 0 : i32
    %c0_i32_0 = arith.constant 0 : i32
    %c0_i32_1 = arith.constant 0 : i32
    return %arg0, %c0_i32, %c0_i32_0 : i32, i32, i32
  }
  func.func @transform_6(%arg0: i32) -> (i32, i32, i32) {
    %c0_i32 = arith.constant 0 : i32
    %c0_i32_0 = arith.constant 0 : i32
    %c0_i32_1 = arith.constant 0 : i32
    return %arg0, %c0_i32, %c0_i32_0 : i32, i32, i32
  }
  func.func @transform_7(%arg0: i32) -> (i32, i32, i32) {
    %c0_i32 = arith.constant 0 : i32
    %c0_i32_0 = arith.constant 0 : i32
    %c0_i32_1 = arith.constant 0 : i32
    return %arg0, %c0_i32, %c0_i32_0 : i32, i32, i32
  }
  func.func @transform_8(%arg0: i32) -> (i32, i32, i32) {
    %c0_i32 = arith.constant 0 : i32
    %c0_i32_0 = arith.constant 0 : i32
    %c0_i32_1 = arith.constant 0 : i32
    return %arg0, %c0_i32, %c0_i32_0 : i32, i32, i32
  }
  func.func @transform_9(%arg0: i32) -> (i32, i32, i32) {
    %c0_i32 = arith.constant 0 : i32
    %c0_i32_0 = arith.constant 0 : i32
    %c0_i32_1 = arith.constant 0 : i32
    return %arg0, %c0_i32, %c0_i32_0 : i32, i32, i32
  }
  func.func @transform_10(%arg0: i32) -> (i32, i32, i32) {
    %c0_i32 = arith.constant 0 : i32
    %c0_i32_0 = arith.constant 0 : i32
    %c0_i32_1 = arith.constant 0 : i32
    return %arg0, %c0_i32, %c0_i32_0 : i32, i32, i32
  }
  func.func @transform_11(%arg0: i32) -> (i32, i32, i32) {
    %c0_i32 = arith.constant 0 : i32
    %c0_i32_0 = arith.constant 0 : i32
    %c0_i32_1 = arith.constant 0 : i32
    return %arg0, %c0_i32, %c0_i32_0 : i32, i32, i32
  }
  func.func @transform_12(%arg0: i32) -> (i32, i32, i32) {
    %c0_i32 = arith.constant 0 : i32
    %c0_i32_0 = arith.constant 0 : i32
    %c0_i32_1 = arith.constant 0 : i32
    return %arg0, %c0_i32, %c0_i32_0 : i32, i32, i32
  }
  func.func @transform_13(%arg0: i32) -> (i32, i32) {
    %c0_i32 = arith.constant 0 : i32
    %c0_i32_0 = arith.constant 0 : i32
    %c0_i32_1 = arith.constant 0 : i32
    return %c0_i32, %c0_i32_0 : i32, i32
  }
  func.func @transform_14(%arg0: i32) -> (i32, i32) {
    %c0_i32 = arith.constant 0 : i32
    %c0_i32_0 = arith.constant 0 : i32
    %c0_i32_1 = arith.constant 0 : i32
    return %c0_i32, %c0_i32_0 : i32, i32
  }
  func.func @transform_15(%arg0: i32) -> (i32, i32, i32) {
    %c0_i32 = arith.constant 0 : i32
    %c0_i32_0 = arith.constant 0 : i32
    %c0_i32_1 = arith.constant 0 : i32
    %c0_i32_2 = arith.constant 0 : i32
    return %c0_i32, %c0_i32_0, %c0_i32_1 : i32, i32, i32
  }
}

</mosaic_0001>

<bundles_post_ra>
// kernel: tpu_custom_call.1
= control target key start
LH: loop header
LB: loop body
LE: loop exit
PB: predicated region body
PF: predicated region fallthrough
CT: control target
= control target key end

     0   :  { %s7793_s0 = inlined_call_operand.hbm [shape: f32[2,8,256], index: 0, kind: input, shape index: {}]   ;;  %s7794_s1 = inlined_call_operand.hbm [shape: f32[2,1,256], index: 1, kind: input, shape index: {}]   ;;  %s7795_s2 = inlined_call_operand.hbm [shape: f32[2,1,256], index: 2, kind: input, shape index: {}]   ;;  %s7796_s3 = inlined_call_operand.hbm [shape: bf16[2,256,768], index: 3, kind: input, shape index: {}]   ;;  %s7797_s4 = inlined_call_operand.hbm [shape: f32[2,1,768], index: 4, kind: input, shape index: {}]   ;;  %s7798_s5 = inlined_call_operand.hbm [shape: bf16[2,256,256], index: 5, kind: input, shape index: {}]   ;;  %s7799_s6 = inlined_call_operand.hbm [shape: f32[2,1,256], index: 6, kind: input, shape index: {}]   ;;  %s7800_s7 = inlined_call_operand.hbm [shape: f32[2,1,256], index: 7, kind: input, shape index: {}]   ;;  %s7801_s8 = inlined_call_operand.hbm [shape: f32[2,1,256], index: 8, kind: input, shape index: {}]   ;;  %s7802_s9 = inlined_call_operand.hbm [shape: bf16[2,256,1024], index: 9, kind: input, shape index: {}]   ;;  %s7803_s10 = inlined_call_operand.vmem [shape: f32[2,1,1024], index: 10, kind: input, shape index: {}]   ;;  %s7804_s11 = inlined_call_operand.hbm [shape: bf16[2,1024,256], index: 11, kind: input, shape index: {}]   ;;  %s7805_s12 = inlined_call_operand.vmem [shape: f32[2,1,256], index: 12, kind: input, shape index: {}]   ;;  %s7806_s13 = inlined_call_operand.vmem [shape: f32[1,256], index: 13, kind: input, shape index: {}]   ;;  %s7807_s14 = inlined_call_operand.vmem [shape: f32[1,256], index: 14, kind: input, shape index: {}]   ;;  %s7808_s15 = inlined_call_operand.hbm [shape: f32[2,8,256], index: 15, kind: output, shape index: {}]  }
   0x1   :  { %7823 = sst [smem:[#allocation32_spill]] %s7793_s0 }
   0x2   :  { %7824 = sst [smem:[#allocation33_spill]] %s7794_s1 }
   0x3   :  { %7825 = sst [smem:[#allocation34_spill]] %s7796_s3 }
   0x4   :  { %7826 = sst [smem:[#allocation35_spill]] %s7798_s5 }
   0x5   :  { %7827 = sst [smem:[#allocation36_spill]] %s7799_s6 }
   0x6   :  { %7828 = sst [smem:[#allocation37_spill]] %s7800_s7 }
   0x7   :  { %7829 = sst [smem:[#allocation38_spill]] %s7801_s8 }
   0x8   :  { %7830 = sst [smem:[#allocation39_spill]] %s7802_s9 }
   0x9   :  { %7831 = sst [smem:[#allocation40_spill]] %s7803_s10 }
   0xa   :  { %7832 = sst [smem:[#allocation41_spill]] %s7805_s12 }
   0xb   :  { %7833 = sst [smem:[#allocation42_spill]] %s7806_s13 }
   0xc   :  { %7834 = sst [smem:[#allocation43_spill]] %s7807_s14 }
   0xd   :  { %7835 = sst [smem:[#allocation44_spill]] %s7808_s15 }
   0xe   :  { %20 = vsyncpa [#allocation4], 0 }
   0xf   :  { %21 = vsyncpa [#allocation7], 0 }
  0x10   :  { %23 = vsyncpa [#allocation7 + $0x1], 0 }
  0x11   :  { %24 = vsyncpa [#allocation10], 0 }
  0x12   :  { %26 = vsyncpa [#allocation10 + $0x1], 0 }
  0x13   :  { %27 = vsyncpa [#allocation13], 0 }
  0x14   :  { %29 = vsyncpa [#allocation13 + $0x1], 0 }
  0x15   :  { %30 = vsyncpa [#allocation16], 0 }
  0x16   :  { %32 = vsyncpa [#allocation16 + $0x1], 0 }
  0x17   :  { %33 = vsyncpa [#allocation19], 0 }
  0x18   :  { %35 = vsyncpa [#allocation19 + $0x1], 0 }
  0x19   :  { %36 = vsyncpa [#allocation5], 0  ;;  %s6561_s18 = smov 0   ;;  %s6563_s19 = smov 0  }
  0x1a   :  { %s6565_s20 = smov 0   ;;  %s6567_s21 = smov 0  }
  0x1b LB: > { %7836 = sst [smem:[#allocation29_spill]] %s6450_s20  ;;  %s6582_s22 = sadd.s32 1, %s6454_s21   ;;  %s6454_s21 = sphi %s6567_s21, %s7874_s21   ;;  %s6450_s20 = sphi %s6565_s20, %s7876_s20   ;;  %s6446_s19 = sphi %s6563_s19, %s7878_s19   ;;  %s6442_s18 = sphi %s6561_s18, %s7877_s18  }
  0x1c   : > { %7837 = sst [smem:[#allocation30_spill]] %s6582_s22  ;;  %s70_s23 = sadd.s32 1, %s6450_s20 }
  0x1d   : > { %s67_s24 = ssub.s32 %s6454_s21, %s6582_s22  ;;  %p77_p0 = scmp.ne.s32.totalorder %s6450_s20, %s6446_s19 }
  0x1e   : > { %p68_p1 = scmp.eq.s32.totalorder %s67_s24, 0  ;;  %p78_p2 = scmp.eq.s32.totalorder %s6454_s21, 0 }
  0x1f   : > { %p5567_p3 = scmp.lt.s32.totalorder %s6454_s21, 2  ;;  %s6595_s26 = sand.u32 1, %s6454_s21  }
  0x20   : > { %s6592_s25 = scalar_select %p68_p1, %s6450_s20, %s70_s23  }
  0x21   : > { %p79_p4 = por %p78_p2, %p77_p0  ;;  %s6598_s27 = sand.u32 1, %s6450_s20  }
  0x22   : > { %7838 = sst [smem:[#allocation31_spill]] %s6592_s25  ;;  %s6601_s28 = sshll.u32 %s6598_s27, 1 }
  0x23   : > { %s6604_s29 = sshll.u32 %s6454_s21, 5  ;;  %s7839_s1 = sld [smem:[#allocation33_spill]] }
  0x24   : > { %s479_s23 = scalar_lea.vmem [#allocation6], %s6601_s28  ;;  %p6613_p5 = pnand %p5567_p3, %p79_p4 }
  0x25   : > { %s487_s24 = sshll.u32 %s479_s23, 4  ;;  %s5497_s20 = smul.u32 768, %s6598_s27  ;;  %s488_s24 = int_to_ptr.vmem [resolvable:$true] %s487_s24 }
  0x26   : > { %p6623_p7 = pneg %p6613_p5 }
  0x29   : > { %s6610_s17 = scalar_lea.hbm %s7839_s1, %s6604_s29  ;;  %s6071_s14 = scalar_lea.hbm %s7839_s1, 64 }
  0x2a   : > { %s6066_s15 = scalar_lea.hbm %s6610_s17, 32  ;;  %p6072_p10 = scmp.lt.s32.totalorder %s6610_s17, %s7839_s1 }
  0x2b   : > { %p6067_p6 = scmp.ne.s32.totalorder %s6610_s17, %s6066_s15  ;;  %p6073_p11 = scmp.lt.s32.totalorder %s6071_s14, %s6066_s15 }
  0x2d   : > { %p6069_p8 = pnand %p6623_p7, %p6067_p6  ;;  %p6074_p12 = por %p6073_p11, %p6072_p10 }
  0x2f   : > { %p6070_p9 = pneg %p6069_p8 }
  0x31   : > { %p6075_p13 = pnand %p6074_p12, %p6070_p9 }
  0x33   : > { %6078 = shalt.err (!%p6075_p13)
}
  0x34   : > { %s6079_s22 = scalar_lea.vmem %s488_s24, 32  ;;  %s6456_s10 = smov [#allocation6]  }
  0x35   : > { %p6080_p0 = scmp.ne.s32.totalorder %s488_s24, %s6079_s22  ;;  %s6084_s8 = sshll.u32 %s6456_s10, 4  ;;  %s6085_s8 = int_to_ptr.vmem [resolvable:$false] %s6084_s8 }
  0x36   : > { %s6086_s6 = scalar_lea.vmem %s6085_s8, 64  ;;  %p6087_p3 = scmp.lt.s32.totalorder %s488_s24, %s6085_s8 }
  0x37   : > { %p6082_p1 = pnand %p6080_p0, %p6623_p7  ;;  %p6088_p4 = scmp.lt.s32.totalorder %s6086_s6, %s6079_s22 }
  0x39   : > { %p6083_p2 = pneg %p6082_p1  ;;  %p6089_p6 = por %p6088_p4, %p6087_p3 }
  0x3b   : > { %p6090_p8 = pnand %p6089_p6, %p6083_p2 }
  0x3d   : > { %6093 = shalt.err (!%p6090_p8)
}
  0x3e   : > { %s7842_s12 = scalar_lea.sflag [#allocation7], %s6595_s26  ;;  %s5498_s13 = smul.u32 12288, %s6454_s21 }
  0x3f   : > { %5538 = dma.hbm_to_vmem [thread:$0]  (!%p6613_p5), %s6610_s17, 32, %s488_s24, %s7842_s12  }
  0x40   : > { %s517_s14 = scalar_lea.vmem [#allocation9], %s5497_s20  ;;  %s7843_s3 = sld [smem:[#allocation34_spill]] }
  0x41   : > { %s524_s15 = sshll.u32 %s517_s14, 4  ;;  %s7814_s6 = scalar_lea.sflag [#allocation10], %s6595_s26  ;;  %s6649_s15 = int_to_ptr.vmem [resolvable:$true] %s524_s15 }
  0x46   : > { %s6647_s8 = scalar_lea.hbm %s7843_s3, %s5498_s13  ;;  %s6099_s20 = scalar_lea.hbm %s7843_s3, 24576 }
  0x47   : > { %s6094_s22 = scalar_lea.hbm %s6647_s8, 12288  ;;  %p6100_p12 = scmp.lt.s32.totalorder %s6647_s8, %s7843_s3 }
  0x48   : > { %p6095_p9 = scmp.ne.s32.totalorder %s6647_s8, %s6094_s22  ;;  %p6101_p13 = scmp.lt.s32.totalorder %s6099_s20, %s6094_s22 }
  0x4a   : > { %p6097_p10 = pnand %p6095_p9, %p6623_p7  ;;  %p6102_p0 = por %p6101_p13, %p6100_p12 }
  0x4c   : > { %p6098_p11 = pneg %p6097_p10 }
  0x4e   : > { %p6103_p1 = pnand %p6102_p0, %p6098_p11 }
  0x50   : > { %6106 = shalt.err (!%p6103_p1)
}
  0x51   : > { %s6107_s13 = scalar_lea.vmem %s6649_s15, 12288  ;;  %s6457_s14 = smov [#allocation9]  }
  0x52   : > { %p6108_p2 = scmp.ne.s32.totalorder %s6649_s15, %s6107_s13  ;;  %s6112_s10 = sshll.u32 %s6457_s14, 4  ;;  %s6113_s10 = int_to_ptr.vmem [resolvable:$false] %s6112_s10 }
  0x53   : > { %s6114_s16 = scalar_lea.vmem %s6113_s10, 24576  ;;  %p6115_p6 = scmp.lt.s32.totalorder %s6649_s15, %s6113_s10 }
  0x54   : > { %p6110_p3 = pnand %p6108_p2, %p6623_p7  ;;  %p6116_p8 = scmp.lt.s32.totalorder %s6114_s16, %s6107_s13 }
  0x56   : > { %p6111_p4 = pneg %p6110_p3  ;;  %p6117_p9 = por %p6116_p8, %p6115_p6 }
  0x58   : > { %p6118_p10 = pnand %p6117_p9, %p6111_p4 }
  0x5a   : > { %6121 = shalt.err (!%p6118_p10)
}
  0x5b   : > { %s6458_s22 = smov 384   ;;  %s6459_s17 = smov 24  }
  0x5c   : > { %5544 = dma.hbm_to_vmem [thread:$0]  (!%p6613_p5), %s6647_s8, 12288, %s6649_s15, %s7814_s6, %s6458_s22, %s6458_s22, %s6459_s17  }
  0x5d   : > { %s4977_s24 = sshll.u32 %s6598_s27, 8  ;;  %s5415_s20 = sshll.u32 %s6454_s21, 12 }
  0x5e   : > { %s7844_s5 = sld [smem:[#allocation35_spill]]  ;;  %s557_s14 = scalar_lea.vmem [#allocation12], %s4977_s24 }
  0x5f   : > { %s564_s10 = sshll.u32 %s557_s14, 4  ;;  %s7819_s16 = scalar_lea.sflag [#allocation13], %s6595_s26  ;;  %s6681_s10 = int_to_ptr.vmem [resolvable:$true] %s564_s10 }
  0x64   : > { %s6679_s13 = scalar_lea.hbm %s7844_s5, %s5415_s20  ;;  %s6127_s22 = scalar_lea.hbm %s7844_s5, 8192 }
  0x65   : > { %s6122_s1 = scalar_lea.hbm %s6679_s13, 4096  ;;  %p6128_p0 = scmp.lt.s32.totalorder %s6679_s13, %s7844_s5 }
  0x66   : > { %p6123_p11 = scmp.ne.s32.totalorder %s6679_s13, %s6122_s1  ;;  %p6129_p1 = scmp.lt.s32.totalorder %s6127_s22, %s6122_s1 }
  0x68   : > { %p6125_p12 = pnand %p6123_p11, %p6623_p7  ;;  %p6130_p2 = por %p6129_p1, %p6128_p0 }
  0x6a   : > { %p6126_p13 = pneg %p6125_p12 }
  0x6c   : > { %p6131_p3 = pnand %p6130_p2, %p6126_p13 }
  0x6e   : > { %6134 = shalt.err (!%p6131_p3)
}
  0x6f   : > { %s6135_s24 = scalar_lea.vmem %s6681_s10, 4096  ;;  %s6460_s23 = smov [#allocation12]  }
  0x70   : > { %p6136_p4 = scmp.ne.s32.totalorder %s6681_s10, %s6135_s24  ;;  %s6140_s12 = sshll.u32 %s6460_s23, 4  ;;  %s6141_s12 = int_to_ptr.vmem [resolvable:$false] %s6140_s12 }
  0x71   : > { %s6142_s14 = scalar_lea.vmem %s6141_s12, 8192  ;;  %p6143_p9 = scmp.lt.s32.totalorder %s6681_s10, %s6141_s12 }
  0x72   : > { %p6138_p6 = pnand %p6136_p4, %p6623_p7  ;;  %p6144_p10 = scmp.lt.s32.totalorder %s6142_s14, %s6135_s24 }
  0x74   : > { %p6139_p8 = pneg %p6138_p6  ;;  %p6145_p11 = por %p6144_p10, %p6143_p9 }
  0x76   : > { %p6146_p12 = pnand %p6145_p11, %p6139_p8 }
  0x78   : > { %6149 = shalt.err (!%p6146_p12)
}
  0x79   : > { %s7815_s1 = smov 128   ;;  %s7816_s15 = smov 8  }
  0x7a   : > { %5550 = dma.hbm_to_vmem [thread:$0]  (!%p6613_p5), %s6679_s13, 4096, %s6681_s10, %s7819_s16, %s7815_s1, %s7815_s1, %s7816_s15  }
  0x7b   : > { %s7845_s7 = sld [smem:[#allocation37_spill]]  ;;  %s597_s20 = scalar_lea.vmem [#allocation15], %s6601_s28 }
  0x7c   : > { %s605_s24 = sshll.u32 %s597_s20, 4  ;;  %s7817_s23 = scalar_lea.sflag [#allocation16], %s6595_s26  ;;  %s606_s24 = int_to_ptr.vmem [resolvable:$true] %s605_s24 }
  0x81   : > { %s6713_s17 = scalar_lea.hbm %s7845_s7, %s6604_s29  ;;  %s6155_s13 = scalar_lea.hbm %s7845_s7, 64 }
  0x82   : > { %s6150_s12 = scalar_lea.hbm %s6713_s17, 32  ;;  %p6156_p2 = scmp.lt.s32.totalorder %s6713_s17, %s7845_s7 }
  0x83   : > { %p6151_p13 = scmp.ne.s32.totalorder %s6713_s17, %s6150_s12  ;;  %p6157_p3 = scmp.lt.s32.totalorder %s6155_s13, %s6150_s12 }
  0x85   : > { %p6153_p0 = pnand %p6151_p13, %p6623_p7  ;;  %p6158_p4 = por %p6157_p3, %p6156_p2 }
  0x87   : > { %p6154_p1 = pneg %p6153_p0 }
  0x89   : > { %p6159_p6 = pnand %p6158_p4, %p6154_p1 }
  0x8b   : > { %6162 = shalt.err (!%p6159_p6)
}
  0x8c   : > { %s6163_s22 = scalar_lea.vmem %s606_s24, 32  ;;  %s6463_s20 = smov [#allocation15]  }
  0x8d   : > { %p6164_p8 = scmp.ne.s32.totalorder %s606_s24, %s6163_s22  ;;  %s6168_s1 = sshll.u32 %s6463_s20, 4  ;;  %s6169_s1 = int_to_ptr.vmem [resolvable:$false] %s6168_s1 }
  0x8e   : > { %s6170_s15 = scalar_lea.vmem %s6169_s1, 64  ;;  %p6171_p11 = scmp.lt.s32.totalorder %s606_s24, %s6169_s1 }
  0x8f   : > { %p6166_p9 = pnand %p6164_p8, %p6623_p7  ;;  %p6172_p12 = scmp.lt.s32.totalorder %s6170_s15, %s6163_s22 }
  0x91   : > { %p6167_p10 = pneg %p6166_p9  ;;  %p6173_p13 = por %p6172_p12, %p6171_p11 }
  0x93   : > { %p6174_p0 = pnand %p6173_p13, %p6167_p10 }
  0x95   : > { %6177 = shalt.err (!%p6174_p0)
}
  0x96   : > { %5556 = dma.hbm_to_vmem [thread:$0]  (!%p6613_p5), %s6713_s17, 32, %s606_s24, %s7817_s23  }
  0x97   : > { %s4989_s6 = sshll.u32 %s6598_s27, 10  ;;  %s5419_s12 = sshll.u32 %s6454_s21, 14 }
  0x98   : > { %s7846_s9 = sld [smem:[#allocation39_spill]]  ;;  %s635_s13 = scalar_lea.vmem [#allocation18], %s4989_s6 }
  0x99   : > { %s642_s10 = sshll.u32 %s635_s13, 4  ;;  %s7818_s8 = scalar_lea.sflag [#allocation19], %s6595_s26  ;;  %s6746_s10 = int_to_ptr.vmem [resolvable:$true] %s642_s10 }
  0x9e   : > { %s6742_s14 = scalar_lea.hbm %s7846_s9, %s5419_s12  ;;  %s6183_s20 = scalar_lea.hbm %s7846_s9, 32768 }
  0x9f   : > { %s6178_s22 = scalar_lea.hbm %s6742_s14, 16384  ;;  %p6184_p4 = scmp.lt.s32.totalorder %s6742_s14, %s7846_s9 }
  0xa0   : > { %p6179_p1 = scmp.ne.s32.totalorder %s6742_s14, %s6178_s22  ;;  %p6185_p6 = scmp.lt.s32.totalorder %s6183_s20, %s6178_s22 }
  0xa2   : > { %p6181_p2 = pnand %p6179_p1, %p6623_p7  ;;  %p6186_p8 = por %p6185_p6, %p6184_p4 }
  0xa4   : > { %p6182_p3 = pneg %p6181_p2 }
  0xa6   : > { %p6187_p9 = pnand %p6186_p8, %p6182_p3 }
  0xa8   : > { %6190 = shalt.err (!%p6187_p9)
}
  0xa9   : > { %s6191_s13 = scalar_lea.vmem %s6746_s10, 16384  ;;  %s6464_s23 = smov [#allocation18]  }
  0xaa   : > { %p6192_p10 = scmp.ne.s32.totalorder %s6746_s10, %s6191_s13  ;;  %s6196_s17 = sshll.u32 %s6464_s23, 4  ;;  %s6197_s17 = int_to_ptr.vmem [resolvable:$false] %s6196_s17 }
  0xab   : > { %s6198_s24 = scalar_lea.vmem %s6197_s17, 32768  ;;  %p6199_p13 = scmp.lt.s32.totalorder %s6746_s10, %s6197_s17 }
  0xac   : > { %p6194_p11 = pnand %p6192_p10, %p6623_p7  ;;  %p6200_p0 = scmp.lt.s32.totalorder %s6198_s24, %s6191_s13 }
  0xae   : > { %p6195_p12 = pneg %p6194_p11  ;;  %p6201_p1 = por %p6200_p0, %p6199_p13 }
  0xb0   : > { %p6202_p2 = pnand %p6201_p1, %p6195_p12 }
  0xb2   : > { %6205 = shalt.err (!%p6202_p2)
}
  0xb3   : > { %s6465_s22 = smov 512   ;;  %s6466_s23 = smov 32  }
  0xb4   : > { %5562 = dma.hbm_to_vmem [thread:$0]  (!%p6613_p5), %s6742_s14, 16384, %s6746_s10, %s7818_s8, %s6465_s22, %s6465_s22, %s6466_s23  }
  0xb5   : > { %s6776_s15 = scalar_lea.hbm %s7804_s11, %s5419_s12  ;;  %s6780_s13 = scalar_lea.vmem [#allocation20], %s4989_s6 }
  0xb6   : > { %s6784_s24 = sadd.s32 4294967295, %s6454_s21   ;;  %p83_p3 = scmp.ne.s32.totalorder %s6446_s19, %s6442_s18 }
  0xb7   : > { %p7820_p4 = scmp.eq.s32.totalorder %s6784_s24, 0  ;;  %p4966_p6 = scmp.ge.s32.totalorder %s6454_s21, 1 }
  0xb8   : > { %p443_p8 = scmp.lt.s32.totalorder %s6454_s21, 3  ;;  %s6467_s14 = smov [#allocation3]  }
  0xb9   : > { %p6794_p10 = por %p7820_p4, %p83_p3  ;;  %s455_s10 = sshll.u32 %s6467_s14, 4  ;;  %s456_s10 = int_to_ptr.vmem [resolvable:$true] %s455_s10 }
  0xba   : > { %p6798_p11 = pnand %p4966_p6, %p443_p8  ;;  %s6808_s23 = scalar_lea.hbm %s7795_s2, %s6604_s29 }
  0xbb   : > { %s7847_s6 = scalar_select %p6794_p10, 1, 0 }
  0xbc   : > { %s7848_s12 = scalar_select %p6798_p11, 1, 0 }
  0xbd   : > { %p5531_p12 = pneg %p6798_p11  ;;  %s498_s1 = scalar_lea.vmem [#allocation8], %s6601_s28 }
  0xbe   : > { %s506_s8 = sshll.u32 %s498_s1, 4  ;;  %s6217_s16 = scalar_lea.vmem %s456_s10, 512  ;;  %s6817_s8 = int_to_ptr.vmem [resolvable:$true] %s506_s8 }
  0xbf   : > { %p6812_p13 = pnand %p5531_p12, %p7820_p4  ;;  %p6218_p1 = scmp.ne.s32.totalorder %s456_s10, %s6217_s16 }
  0xc0   : > { %p6225_p6 = scmp.lt.s32.totalorder %s456_s10, %s456_s10  ;;  %p6226_p8 = scmp.lt.s32.totalorder %s6217_s16, %s6217_s16 }
  0xc1   : > { %p6208_p0 = pneg %p6812_p13 }
  0xc2   : > { %p6227_p9 = por %p6226_p8, %p6225_p6 }
  0xc3   : > { %p6220_p2 = pnand %p6218_p1, %p6208_p0 }
  0xc5   : > { %p6221_p3 = pneg %p6220_p2 }
  0xc7   : > { %p6228_p12 = pnand %p6227_p9, %p6221_p3 }
  0xc9   : > { %6231 = shalt.err (!%p6228_p12)
}
  0xca   : > { %s6468_s18 = smov 256   ;;  %s6469_s22 = smov 16  }
  0xcb   : > { %s7850_s0 = sld [smem:[#allocation32_spill]]  ;;  %s6232_s14 = scalar_lea.hbm %s6808_s23, 32 }
  0xcc   : > { %p6233_p0 = scmp.ne.s32.totalorder %s6808_s23, %s6232_s14  ;;  %s6237_s5 = scalar_lea.hbm %s7795_s2, 64 }
  0xcd   : > { %p6238_p9 = scmp.lt.s32.totalorder %s6808_s23, %s7795_s2  ;;  %p6239_p3 = scmp.lt.s32.totalorder %s6237_s5, %s6232_s14 }
  0xce   : > { %p6235_p1 = pnand %p6233_p0, %p6623_p7 }
  0xcf   : > { %p6240_p6 = por %p6239_p3, %p6238_p9 }
  0xd0   : > { %p6236_p2 = pneg %p6235_p1 }
  0xd1   : > { %5534 = dma.hbm_to_vmem [thread:$0]  (!%p6812_p13), %s7850_s0, 512, %s456_s10, [#allocation4], %s6468_s18, %s6468_s18, %s6469_s22  }
  0xd2   : > { %p6241_p8 = pnand %p6240_p6, %p6236_p2 }
  0xd4   : > { %6244 = shalt.err (!%p6241_p8)
}
  0xd5   : > { %s6245_s17 = scalar_lea.vmem %s6817_s8, 32  ;;  %s6470_s10 = smov [#allocation8]  }
  0xd6   : > { %p6246_p13 = scmp.ne.s32.totalorder %s6817_s8, %s6245_s17  ;;  %s6250_s3 = sshll.u32 %s6470_s10, 4  ;;  %s6251_s3 = int_to_ptr.vmem [resolvable:$false] %s6250_s3 }
  0xd7   : > { %s6252_s20 = scalar_lea.vmem %s6251_s3, 64  ;;  %p6253_p1 = scmp.lt.s32.totalorder %s6817_s8, %s6251_s3 }
  0xd8   : > { %p6248_p12 = pnand %p6246_p13, %p6623_p7  ;;  %p6254_p4 = scmp.lt.s32.totalorder %s6252_s20, %s6245_s17 }
  0xda   : > { %p6249_p0 = pneg %p6248_p12  ;;  %p6255_p10 = por %p6254_p4, %p6253_p1 }
  0xdc   : > { %p6256_p11 = pnand %p6255_p10, %p6249_p0 }
  0xde   : > { %6259 = shalt.err (!%p6256_p11)
}
  0xdf   : > { %s7851_s5 = scalar_lea.sflag [#allocation7], %s6595_s26  ;;  %s7852_s7 = smul.u32 96, %s6454_s21 }
  0xe0   : > { %5541 = dma.hbm_to_vmem [thread:$0]  (!%p6613_p5), %s6808_s23, 32, %s6817_s8, %s7851_s5  }
  0xe1   : > { %s6855_s18 = scalar_lea.hbm %s7797_s4, %s7852_s7  ;;  %s7853_s22 = smul.u32 6, %s6598_s27 }
  0xe2   : > { %s7854_s3 = sld [smem:[#allocation36_spill]]  ;;  %s6260_s0 = scalar_lea.hbm %s6855_s18, 96 }
  0xe3   : > { %s538_s1 = scalar_lea.vmem [#allocation11], %s7853_s22  ;;  %p6261_p4 = scmp.ne.s32.totalorder %s6855_s18, %s6260_s0 }
  0xe4   : > { %s546_s16 = sshll.u32 %s538_s1, 4  ;;  %s6265_s27 = scalar_lea.hbm %s7797_s4, 192  ;;  %s547_s16 = int_to_ptr.vmem [resolvable:$true] %s546_s16 }
  0xe5   : > { %p6263_p10 = pnand %p6261_p4, %p6623_p7  ;;  %p6266_p2 = scmp.lt.s32.totalorder %s6855_s18, %s7797_s4 }
  0xe6   : > { %p6267_p9 = scmp.lt.s32.totalorder %s6265_s27, %s6260_s0 }
  0xe7   : > { %p6264_p11 = pneg %p6263_p10 }
  0xe8   : > { %s6863_s20 = scalar_lea.hbm %s7854_s3, %s6604_s29  ;;  %p6268_p3 = por %p6267_p9, %p6266_p2 }
  0xea   : > { %p6269_p6 = pnand %p6268_p3, %p6264_p11 }
  0xec   : > { %6272 = shalt.err (!%p6269_p6)
}
  0xed   : > { %s6273_s7 = scalar_lea.vmem %s547_s16, 96  ;;  %s6471_s9 = smov [#allocation11]  }
  0xee   : > { %p6274_p8 = scmp.ne.s32.totalorder %s547_s16, %s6273_s7  ;;  %s6278_s14 = sshll.u32 %s6471_s9, 4  ;;  %s6279_s14 = int_to_ptr.vmem [resolvable:$false] %s6278_s14 }
  0xef   : > { %s6280_s22 = scalar_lea.vmem %s6279_s14, 192  ;;  %p6281_p0 = scmp.lt.s32.totalorder %s547_s16, %s6279_s14 }
  0xf0   : > { %p6276_p13 = pnand %p6274_p8, %p6623_p7  ;;  %p6282_p1 = scmp.lt.s32.totalorder %s6280_s22, %s6273_s7 }
  0xf2   : > { %p6277_p12 = pneg %p6276_p13  ;;  %p6283_p4 = por %p6282_p1, %p6281_p0 }
  0xf4   : > { %p6284_p10 = pnand %p6283_p4, %p6277_p12 }
  0xf6   : > { %6287 = shalt.err (!%p6284_p10)
}
  0xf7   : > { %s7855_s0 = scalar_lea.sflag [#allocation10], %s6595_s26  ;;  %s578_s1 = scalar_lea.vmem [#allocation14], %s6601_s28 }
  0xf8   : > { %5547 = dma.hbm_to_vmem [thread:$0]  (!%p6613_p5), %s6855_s18, 96, %s547_s16, %s7855_s0  }
  0xf9   : > { %s586_s17 = sshll.u32 %s578_s1, 4  ;;  %s7856_s8 = sld [smem:[#allocation38_spill]]  ;;  %s587_s17 = int_to_ptr.vmem [resolvable:$true] %s586_s17 }
  0xfa   : > { %s6288_s23 = scalar_lea.hbm %s6863_s20, 32  ;;  %s6293_s9 = scalar_lea.hbm %s7854_s3, 64 }
  0xfb   : > { %p6289_p11 = scmp.ne.s32.totalorder %s6863_s20, %s6288_s23  ;;  %p6294_p3 = scmp.lt.s32.totalorder %s6863_s20, %s7854_s3 }
  0xfc   : > { %p6295_p6 = scmp.lt.s32.totalorder %s6293_s9, %s6288_s23 }
  0xfd   : > { %p6291_p2 = pnand %p6289_p11, %p6623_p7 }
  0xfe   : > { %p6296_p8 = por %p6295_p6, %p6294_p3 }
  0xff   : > { %s6888_s27 = scalar_lea.hbm %s7856_s8, %s6604_s29  ;;  %p6292_p9 = pneg %p6291_p2 }
 0x101   : > { %p6297_p13 = pnand %p6296_p8, %p6292_p9 }
 0x103   : > { %6300 = shalt.err (!%p6297_p13)
}
 0x104   : > { %s6301_s18 = scalar_lea.vmem %s587_s17, 32  ;;  %s6472_s29 = smov [#allocation14]  }
 0x105   : > { %p6302_p12 = scmp.ne.s32.totalorder %s587_s17, %s6301_s18  ;;  %s6306_s16 = sshll.u32 %s6472_s29, 4  ;;  %s6307_s16 = int_to_ptr.vmem [resolvable:$false] %s6306_s16 }
 0x106   : > { %s6308_s0 = scalar_lea.vmem %s6307_s16, 64  ;;  %p6309_p4 = scmp.lt.s32.totalorder %s587_s17, %s6307_s16 }
 0x107   : > { %p6304_p0 = pnand %p6302_p12, %p6623_p7  ;;  %p6310_p10 = scmp.lt.s32.totalorder %s6308_s0, %s6301_s18 }
 0x109   : > { %p6305_p1 = pneg %p6304_p0  ;;  %p6311_p11 = por %p6310_p10, %p6309_p4 }
 0x10b   : > { %p6312_p2 = pnand %p6311_p11, %p6305_p1 }
 0x10d   : > { %6315 = shalt.err (!%p6312_p2)
}
 0x10e   : > { %s7857_s1 = scalar_lea.sflag [#allocation13], %s6595_s26  ;;  %s7858_s10 = sshll.u32 %s6780_s13, 4  ;;  %s6910_s10 = int_to_ptr.vmem [resolvable:$true] %s7858_s10 }
 0x10f   : > { %5553 = dma.hbm_to_vmem [thread:$0]  (!%p6613_p5), %s6863_s20, 32, %s587_s17, %s7857_s1  }
 0x110   : > { %s616_s21 = scalar_lea.vmem [#allocation17], %s6601_s28  ;;  %s6316_s5 = scalar_lea.hbm %s6888_s27, 32 }
 0x111   : > { %s624_s23 = sshll.u32 %s616_s21, 4  ;;  %p6317_p9 = scmp.ne.s32.totalorder %s6888_s27, %s6316_s5  ;;  %s625_s23 = int_to_ptr.vmem [resolvable:$true] %s624_s23 }
 0x112   : > { %s6321_s14 = scalar_lea.hbm %s7856_s8, 64  ;;  %p6322_p8 = scmp.lt.s32.totalorder %s6888_s27, %s7856_s8 }
 0x113   : > { %p6319_p3 = pnand %p6317_p9, %p6623_p7  ;;  %p6323_p13 = scmp.lt.s32.totalorder %s6321_s14, %s6316_s5 }
 0x115   : > { %p6320_p6 = pneg %p6319_p3  ;;  %p6324_p12 = por %p6323_p13, %p6322_p8 }
 0x117   : > { %p6325_p0 = pnand %p6324_p12, %p6320_p6 }
 0x119   : > { %6328 = shalt.err (!%p6325_p0)
}
 0x11a   : > { %s6329_s28 = scalar_lea.vmem %s625_s23, 32  ;;  %s6473_s13 = smov [#allocation17]  }
 0x11b   : > { %p6330_p1 = scmp.ne.s32.totalorder %s625_s23, %s6329_s28  ;;  %s6334_s20 = sshll.u32 %s6473_s13, 4  ;;  %s6335_s20 = int_to_ptr.vmem [resolvable:$false] %s6334_s20 }
 0x11c   : > { %s6336_s17 = scalar_lea.vmem %s6335_s20, 64  ;;  %p6337_p11 = scmp.lt.s32.totalorder %s625_s23, %s6335_s20 }
 0x11d   : > { %p6332_p4 = pnand %p6330_p1, %p6623_p7  ;;  %p6338_p2 = scmp.lt.s32.totalorder %s6336_s17, %s6329_s28 }
 0x11f   : > { %p6333_p10 = pneg %p6332_p4  ;;  %p6339_p9 = por %p6338_p2, %p6337_p11 }
 0x121   : > { %p6340_p3 = pnand %p6339_p9, %p6333_p10 }
 0x123   : > { %6343 = shalt.err (!%p6340_p3)
}
 0x124   : > { %s7859_s29 = scalar_lea.sflag [#allocation16], %s6595_s26  ;;  %s6344_s16 = scalar_lea.hbm %s6776_s15, 16384 }
 0x125   : > { %5559 = dma.hbm_to_vmem [thread:$0]  (!%p6613_p5), %s6888_s27, 32, %s625_s23, %s7859_s29  }
 0x126   : > { %p6345_p6 = scmp.ne.s32.totalorder %s6776_s15, %s6344_s16  ;;  %s6349_s21 = scalar_lea.hbm %s7804_s11, 32768 }
 0x127   : > { %p6350_p12 = scmp.lt.s32.totalorder %s6776_s15, %s7804_s11  ;;  %p6351_p0 = scmp.lt.s32.totalorder %s6349_s21, %s6344_s16 }
 0x128   : > { %p6347_p8 = pnand %p6345_p6, %p6623_p7 }
 0x129   : > { %p6352_p1 = por %p6351_p0, %p6350_p12 }
 0x12a   : > { %p6348_p13 = pneg %p6347_p8 }
 0x12c   : > { %p6353_p4 = pnand %p6352_p1, %p6348_p13 }
 0x12e   : > { %6356 = shalt.err (!%p6353_p4)
}
 0x12f   : > { %s6357_s27 = scalar_lea.vmem %s6910_s10, 16384  ;;  %s6474_s23 = smov [#allocation20]  }
 0x130   : > { %p6358_p10 = scmp.ne.s32.totalorder %s6910_s10, %s6357_s27  ;;  %s6362_s9 = sshll.u32 %s6474_s23, 4  ;;  %s6363_s9 = int_to_ptr.vmem [resolvable:$false] %s6362_s9 }
 0x131   : > { %s6364_s14 = scalar_lea.vmem %s6363_s9, 32768  ;;  %p6365_p9 = scmp.lt.s32.totalorder %s6910_s10, %s6363_s9 }
 0x132   : > { %p6360_p11 = pnand %p6358_p10, %p6623_p7  ;;  %p6366_p3 = scmp.lt.s32.totalorder %s6364_s14, %s6357_s27 }
 0x134   : > { %p6361_p2 = pneg %p6360_p11  ;;  %p6367_p6 = por %p6366_p3, %p6365_p9 }
 0x136   : > { %p6368_p8 = pnand %p6367_p6, %p6361_p2 }
 0x138   : > { %6371 = shalt.err (!%p6368_p8)
}
 0x139   : > { %s7860_s22 = smov 8   ;;  %s7861_s18 = smov 128  }
 0x13a   : > { %s7862_s28 = scalar_lea.sflag [#allocation19], %s6595_s26  ;;  %p7863_p7 = scmp.ne.s32.totalorder %s7848_s12, 0 }
 0x13b   : > { %5565 = dma.hbm_to_vmem [thread:$0]  (!%p6613_p5), %s6776_s15, 16384, %s6910_s10, %s7862_s28, %s7861_s18, %s7861_s18, %s7860_s22  }
 0x13c   : > { %689 = sbr.rel (%p7863_p7) target bundleno = 3474 (0xd92), region = 80  ;;  %p7864_p13 = scmp.eq.s32.totalorder (!%p7863_p7), %s6784_s24, 0 }
 0x141   : > { %6413 = dma.done.wait (%p7864_p13), [#allocation4], 512   ;;  %p7865_p12 = pmov %p7864_p13 }
 0x142   : > { %s6963_s25 = sand.u32 1, %s6784_s24   ;;  %s6966_s30 = sand.u32 1, %s6446_s19  }
 0x143   : > { %6415 = vsyncadd (%p7865_p12), [#allocation4], 4294966784  ;;  %s6969_s26 = sshll.u32 %s6966_s30, 1  ;;  %s696_s15 = scalar_lea.sflag [#allocation7], %s6963_s25 }
 0x144   : > { %s699_s12 = scalar_lea.vmem [#allocation6], %s6969_s26  ;;  %p7866_p5 = scmp.ne.s32.totalorder %s7847_s6, 0 }
 0x146   : > { %6417 = dma.done.wait (%p7866_p5), %s696_s15, 64  }
 0x147   : > { %6419 = vsyncadd (%p7866_p5), %s696_s15, 4294967232  ;;  %s5501_s10 = smul.u32 768, %s6966_s30  ;;  %s708_s13 = scalar_lea.vmem [#allocation8], %s6969_s26 }
 0x148   : > { %s714_s20 = scalar_lea.sflag [#allocation10], %s6963_s25 }
 0x149   : > { %s6980_s17 = scalar_lea.vmem [#allocation9], %s5501_s10 }
 0x14a   : > { %6421 = dma.done.wait (%p7866_p5), %s714_s20, 12384  }
 0x14b   : > { %6423 = vsyncadd (%p7866_p5), %s714_s20, 4294954912  ;;  %s5502_s29 = smul.u32 6, %s6966_s30  ;;  %s4999_s16 = sshll.u32 %s6966_s30, 8 }
 0x14c   : > { %s732_s1 = scalar_lea.sflag [#allocation13], %s6963_s25  ;;  %s6991_s21 = scalar_lea.vmem [#allocation12], %s4999_s16 }
 0x14d   : > { %s6988_s0 = scalar_lea.vmem [#allocation11], %s5502_s29 }
 0x14e   : > { %6425 = dma.done.wait (%p7866_p5), %s732_s1, 4128  }
 0x14f   : > { %6427 = vsyncadd (%p7866_p5), %s732_s1, 4294963168  ;;  %s744_s5 = scalar_lea.vmem [#allocation14], %s6969_s26  ;;  %s750_s7 = scalar_lea.sflag [#allocation16], %s6963_s25 }
 0x150   : > { %s753_s27 = scalar_lea.vmem [#allocation15], %s6969_s26 }
 0x151   : > { %6429 = dma.done.wait (%p7866_p5), %s750_s7, 64  }
 0x152   : > { %6431 = vsyncadd (%p7866_p5), %s750_s7, 4294967232  ;;  %s5003_s23 = sshll.u32 %s6966_s30, 10  ;;  %s768_s14 = scalar_lea.sflag [#allocation19], %s6963_s25 }
 0x153   : > { %s7007_s22 = scalar_lea.vmem [#allocation18], %s5003_s23 }
 0x154   : > { %6433 = dma.done.wait (%p7866_p5), %s768_s14, 32768  }
 0x155   : > { %6435 = vsyncadd (%p7866_p5), %s768_s14, 4294934528  ;;  %p875_p0 = scmp.lt.s32.totalorder %s6784_s24, 1  ;;  %s7867_s29 = sld [smem:[#allocation40_spill]] }
 0x156   : > { %s7868_s1 = sld [smem:[#allocation41_spill]]  ;;  %s7025_s9 = scalar_lea.vmem [#allocation20], %s5003_s23 }
 0x157   : > { %s876_s18 = scalar_select %p875_p0, %s6784_s24, 1 }
 0x158   : > { %p7869_p1 = scmp.ne.s32.totalorder %s6784_s24, 0 }
 0x159   : > { %s5005_s28 = sshll.u32 %s876_s18, 3  ;;  %s5006_s15 = sshll.u32 %s876_s18, 1 }
 0x15a   : > { %887 = sbr.rel (%p7869_p1) target bundleno = 354 (0x162), region = 128 }
 0x15b   : > { %s7018_s16 = scalar_lea.vmem %s7867_s29, %s5005_s28 }
 0x15c   : > { %s7023_s7 = scalar_lea.vmem %s7868_s1, %s5006_s15 }
 0x15f   : > { %v888_v0 = vld [vmem:[#allocation3] sm:$0xff]  ;;  %v889_v1 = vld [vmem:[#allocation3 + $0x8] sm:$0xff]  ;;  %v890_v2 = vld [vmem:[#allocation3 + $0x10] sm:$0xff] }
 0x160   : > { %892 = vst [vmem:[#allocation2 + $0x10] sm:$0xff] %v888_v0  ;;  %893 = vst [vmem:[#allocation2] sm:$0xff] %v889_v1  ;;  %v891_v3 = vld [vmem:[#allocation3 + $0x18] sm:$0xff] }
 0x161   : > { %894 = vst [vmem:[#allocation2 + $0x18] sm:$0xff] %v890_v2  ;;  %895 = vst [vmem:[#allocation2 + $0x8] sm:$0xff] %v891_v3 }
 0x162 PF: > { %v5618_v10 = vld [vmem:[%s6980_s17 + $0x154] ss:$24 sps:$4 sm:$0xff]   ;;  %v5620_v11 = vld [vmem:[%s6980_s17 + $0x150] ss:$24 sps:$4 sm:$0xff]   ;;  %v5624_v14 = vld [vmem:[%s6980_s17 + $0x124] ss:$24 sps:$4 sm:$0xff]  }
 0x163   : > { %v5621_v12 = vld [vmem:[%s6980_s17 + $0x15c] ss:$24 sps:$4 sm:$0xff]   ;;  %v5623_v13 = vld [vmem:[%s6980_s17 + $0x158] ss:$24 sps:$4 sm:$0xff]   ;;  %1575 = vmatprep.subr.bf16.mxu0 %v5618_v10  ;;  %v5627_v15 = vld [vmem:[%s6980_s17 + $0x12c] ss:$24 sps:$4 sm:$0xff]  }
 0x164   : > { %1618 = vmatprep.subr.bf16.mxu1 %v5621_v12  ;;  %1576 = vmatpush1.bf16.msra.mxu0 %v5620_v11  ;;  %v5626_v16 = vld [vmem:[%s6980_s17 + $0x120] ss:$24 sps:$4 sm:$0xff]   ;;  %v5630_v18 = vld [vmem:[%s6980_s17 + $0xf4] ss:$24 sps:$4 sm:$0xff]   ;;  %v5632_v20 = vld [vmem:[%s6980_s17 + $0xf0] ss:$24 sps:$4 sm:$0xff]  }
 0x165   : > { %1619 = vmatpush1.bf16.msra.mxu1 %v5623_v13  ;;  %v5629_v17 = vld [vmem:[%s6980_s17 + $0x128] ss:$24 sps:$4 sm:$0xff]   ;;  %1577 = vmatprep.subr.bf16.mxu0 %v5624_v14  ;;  %v5633_v19 = vld [vmem:[%s6980_s17 + $0xfc] ss:$24 sps:$4 sm:$0xff]   ;;  %v5635_v21 = vld [vmem:[%s6980_s17 + $0xf8] ss:$24 sps:$4 sm:$0xff]  }
 0x166   : > { %1620 = vmatprep.subr.bf16.mxu1 %v5627_v15  ;;  %v5636_v22 = vld [vmem:[%s6980_s17 + $0xc4] ss:$24 sps:$4 sm:$0xff]   ;;  %v5638_v24 = vld [vmem:[%s6980_s17 + $0xc0] ss:$24 sps:$4 sm:$0xff]   ;;  %v5642_v26 = vld [vmem:[%s6980_s17 + $0x94] ss:$24 sps:$4 sm:$0xff]  }
 0x167   : > { %v7029_v4 = vld [vmem:[#allocation2 + $0x10] sm:$0xff]  ;;  %v7031_v5 = vld [vmem:[#allocation2] sm:$0xff]  ;;  %vm6476_vm0 = vmmov 0   ;;  %vm1868_vm1 = vcmask 1043456   ;;  %vm1840_vm2 = vcmask 64512   ;;  %s7870_s6 = scalar_lea.vmem [#allocation17], %s6969_s26 }
 0x168   : > { %v7033_v6 = vld [vmem:[#allocation2 + $0x18] sm:$0xff]  ;;  %v902_v7 = vadd.f32 %v7031_v5, %v7029_v4  ;;  %v7037_v8 = vld [vmem:[#allocation2 + $0x8] sm:$0xff]  ;;  %1578 = vmatpush1.bf16.msra.mxu0 %v5626_v16  ;;  %p5408_p4 = scmp.ne.s32.totalorder %s6784_s24, 1 }
 0x169   : > { %v905_v9 = vadd.f32 %v7037_v8, %v7033_v6  ;;  %1621 = vmatpush1.bf16.msra.mxu1 %v5629_v17  ;;  %1579 = vmatprep.subr.bf16.mxu0 %v5630_v18  ;;  %v5639_v23 = vld [vmem:[%s6980_s17 + $0xcc] ss:$24 sps:$4 sm:$0xff]   ;;  %v5641_v25 = vld [vmem:[%s6980_s17 + $0xc8] ss:$24 sps:$4 sm:$0xff]   ;;  %v5645_v27 = vld [vmem:[%s6980_s17 + $0x9c] ss:$24 sps:$4 sm:$0xff]  }
 0x16a   : > { %903 = vadd.xlane.f32.xlu0 %v902_v7  ;;  %1622 = vmatprep.subr.bf16.mxu1 %v5633_v19  ;;  %v5644_v28 = vld [vmem:[%s6980_s17 + $0x90] ss:$24 sps:$4 sm:$0xff]   ;;  %v5648_v30 = vld [vmem:[%s6980_s17 + $0x64] ss:$24 sps:$4 sm:$0xff]   ;;  %v5650_v32 = vld [vmem:[%s6980_s17 + $0x60] ss:$24 sps:$4 sm:$0xff]  }
 0x16b   : > { %v5647_v29 = vld [vmem:[%s6980_s17 + $0x98] ss:$24 sps:$4 sm:$0xff]   ;;  %v5651_v31 = vld [vmem:[%s6980_s17 + $0x6c] ss:$24 sps:$4 sm:$0xff]   ;;  %v5653_v33 = vld [vmem:[%s6980_s17 + $0x68] ss:$24 sps:$4 sm:$0xff]  }
 0x16c   : > { %1580 = vmatpush1.bf16.msra.mxu0 %v5632_v20  ;;  %v5654_v34 = vld [vmem:[%s6980_s17 + $0x34] ss:$24 sps:$4 sm:$0xff]   ;;  %v5656_v36 = vld [vmem:[%s6980_s17 + $0x30] ss:$24 sps:$4 sm:$0xff]   ;;  %v5660_v38 = vld [vmem:[%s6980_s17 + $0x4] ss:$24 sps:$4 sm:$0xff]  }
 0x16d   : > { %1623 = vmatpush1.bf16.msra.mxu1 %v5635_v21  ;;  %1581 = vmatprep.subr.bf16.mxu0 %v5636_v22  ;;  %v5657_v35 = vld [vmem:[%s6980_s17 + $0x3c] ss:$24 sps:$4 sm:$0xff]   ;;  %v5659_v37 = vld [vmem:[%s6980_s17 + $0x38] ss:$24 sps:$4 sm:$0xff]   ;;  %v5663_v39 = vld [vmem:[%s6980_s17 + $0xc] ss:$24 sps:$4 sm:$0xff]  }
 0x16e   : > { %906 = vadd.xlane.f32.xlu0 %v905_v9  ;;  %1624 = vmatprep.subr.bf16.mxu1 %v5639_v23  ;;  %v5662_v40 = vld [vmem:[%s6980_s17] ss:$24 sps:$4 sm:$0xff]   ;;  %v5666_v42 = vld [vmem:[%s6980_s17 + $0x2d4] ss:$24 sps:$4 sm:$0xff]   ;;  %v5668_v44 = vld [vmem:[%s6980_s17 + $0x2d0] ss:$24 sps:$4 sm:$0xff]  }
 0x16f   : > { %v5665_v41 = vld [vmem:[%s6980_s17 + $0x8] ss:$24 sps:$4 sm:$0xff]   ;;  %v5669_v43 = vld [vmem:[%s6980_s17 + $0x2dc] ss:$24 sps:$4 sm:$0xff]   ;;  %v5671_v59 = vld [vmem:[%s6980_s17 + $0x2d8] ss:$24 sps:$4 sm:$0xff]  }
 0x170   : > { %1582 = vmatpush1.bf16.msra.mxu0 %v5638_v24  ;;  %v5672_v60 = vld [vmem:[%s6980_s17 + $0x2a4] ss:$24 sps:$4 sm:$0xff]   ;;  %v5674_v61 = vld [vmem:[%s6980_s17 + $0x2a0] ss:$24 sps:$4 sm:$0xff]   ;;  %v5678_v0 = vld [vmem:[%s6980_s17 + $0x274] ss:$24 sps:$4 sm:$0xff]  }
 0x171   : > { %1625 = vmatpush1.bf16.msra.mxu1 %v5641_v25  ;;  %1583 = vmatprep.subr.bf16.mxu0 %v5642_v26  ;;  %v5675_v62 = vld [vmem:[%s6980_s17 + $0x2ac] ss:$24 sps:$4 sm:$0xff]   ;;  %v5677_v63 = vld [vmem:[%s6980_s17 + $0x2a8] ss:$24 sps:$4 sm:$0xff]   ;;  %v5681_v2 = vld [vmem:[%s6980_s17 + $0x27c] ss:$24 sps:$4 sm:$0xff]  }
 0x172   : > { %1626 = vmatprep.subr.bf16.mxu1 %v5645_v27  ;;  %v5680_v1 = vld [vmem:[%s6980_s17 + $0x270] ss:$24 sps:$4 sm:$0xff]   ;;  %v5693_v9 = vld [vmem:[%s6980_s17 + $0x21c] ss:$24 sps:$4 sm:$0xff]   ;;  %v5699_v13 = vld [vmem:[%s6980_s17 + $0x1ec] ss:$24 sps:$4 sm:$0xff]  }
 0x173   : > { %v5683_v3 = vld [vmem:[%s6980_s17 + $0x278] ss:$24 sps:$4 sm:$0xff]   ;;  %v5689_v7 = vld [vmem:[%s6980_s17 + $0x248] ss:$24 sps:$4 sm:$0xff]   ;;  %v5696_v12 = vld [vmem:[%s6980_s17 + $0x1e4] ss:$24 sps:$4 sm:$0xff]  }
 0x174   : > { %1584 = vmatpush1.bf16.msra.mxu0 %v5644_v28  ;;  %v5692_v10 = vld [vmem:[%s6980_s17 + $0x210] ss:$24 sps:$4 sm:$0xff]   ;;  %v5698_v14 = vld [vmem:[%s6980_s17 + $0x1e0] ss:$24 sps:$4 sm:$0xff]   ;;  %v5702_v16 = vld [vmem:[%s6980_s17 + $0x1b4] ss:$24 sps:$4 sm:$0xff]  }
 0x175   : > { %1627 = vmatpush1.bf16.msra.mxu1 %v5647_v29  ;;  %1585 = vmatprep.subr.bf16.mxu0 %v5648_v30  ;;  %v5695_v11 = vld [vmem:[%s6980_s17 + $0x218] ss:$24 sps:$4 sm:$0xff]   ;;  %v5701_v15 = vld [vmem:[%s6980_s17 + $0x1e8] ss:$24 sps:$4 sm:$0xff]   ;;  %v5705_v17 = vld [vmem:[%s6980_s17 + $0x1bc] ss:$24 sps:$4 sm:$0xff]  }
 0x176   : > { %1628 = vmatprep.subr.bf16.mxu1 %v5651_v31  ;;  %v5704_v18 = vld [vmem:[%s6980_s17 + $0x1b0] ss:$24 sps:$4 sm:$0xff]   ;;  %v5708_v20 = vld [vmem:[%s6980_s17 + $0x184] ss:$24 sps:$4 sm:$0xff]   ;;  %v5710_v22 = vld [vmem:[%s6980_s17 + $0x180] ss:$24 sps:$4 sm:$0xff]   ;;  %v936_v31 = vlaneseq }
 0x177   : > { %v5707_v19 = vld [vmem:[%s6980_s17 + $0x1b8] ss:$24 sps:$4 sm:$0xff]   ;;  %v5711_v21 = vld [vmem:[%s6980_s17 + $0x18c] ss:$24 sps:$4 sm:$0xff]   ;;  %v5713_v23 = vld [vmem:[%s6980_s17 + $0x188] ss:$24 sps:$4 sm:$0xff]  }
 0x178   : > { %1586 = vmatpush1.bf16.msra.mxu0 %v5650_v32  ;;  %v5716_v24 = vld [vmem:[%s6980_s17 + $0x164] ss:$24 sps:$4 sm:$0xff]   ;;  %v7126_v32 = vshrl.u32 %v936_v31, 7 }
 0x179   : > { %1629 = vmatpush1.bf16.msra.mxu1 %v5653_v33  ;;  %1587 = vmatprep.subr.bf16.mxu0 %v5654_v34 }
 0x17a   : > { %1630 = vmatprep.subr.bf16.mxu1 %v5657_v35  ;;  %v7129_v33 = vsub.s32 1, %v7126_v32  ;;  %v7132_v34 = vsub.s32 0, %v7126_v32  ;;  %v900_v35 = vld [vmem:[%s699_s12] sm:$0x3] }
 0x17c   : > { %1588 = vmatpush1.bf16.msra.mxu0 %v5656_v36 }
 0x17d   : > { %1631 = vmatpush1.bf16.msra.mxu1 %v5659_v37  ;;  %1589 = vmatprep.subr.bf16.mxu0 %v5660_v38  ;;  %v901_v37 = vld [vmem:[%s708_s13] sm:$0x3]  ;;  %s7871_s13 = sld [smem:[#allocation42_spill]] (!%p5408_p4) }
 0x17e   : > { %1632 = vmatprep.subr.bf16.mxu1 %v5663_v39  ;;  %v943_v39 = vrot.slane %v900_v35, %v7129_v33 }
 0x180   : > { %1590 = vmatpush1.bf16.msra.mxu0 %v5662_v40 }
 0x181   : > { %1633 = vmatpush1.bf16.msra.mxu1 %v5665_v41  ;;  %1591 = vmatprep.subr.bf16.mxu0 %v5666_v42  ;;  %v939_v41 = vrot.slane %v900_v35, %v7132_v34 }
 0x182   : > { %1634 = vmatprep.subr.bf16.mxu1 %v5669_v43  ;;  %v958_v43 = vrot.slane %v901_v37, %v7129_v33 }
 0x184   : > { %1592 = vmatpush2.bf16.msra.mxu0 %v5668_v44  ;;  %v954_v44 = vrot.slane %v901_v37, %v7132_v34 }
 0x185   : > { %1635 = vmatpush2.bf16.msra.mxu1 %v5671_v59  ;;  %1593 = vmatprep.subr.bf16.mxu0 %v5672_v60  ;;  %v5722_v60 = vld [vmem:[%s6980_s17 + $0x104] ss:$24 sps:$4 sm:$0xff]  }
 0x186   : > { %1636 = vmatprep.subr.bf16.mxu1 %v5675_v62  ;;  %v5725_v62 = vld [vmem:[%s6980_s17 + $0xd4] ss:$24 sps:$4 sm:$0xff]  }
 0x188   : > { %1594 = vmatpush2.bf16.msra.mxu0 %v5674_v61  ;;  %v5720_v61 = vld [vmem:[%s6980_s17 + $0x100] ss:$24 sps:$4 sm:$0xff]  }
 0x189   : > { %1637 = vmatpush2.bf16.msra.mxu1 %v5677_v63  ;;  %1595 = vmatprep.subr.bf16.mxu0 %v5678_v0  ;;  %v5723_v63 = vld [vmem:[%s6980_s17 + $0xd0] ss:$24 sps:$4 sm:$0xff]   ;;  %v5728_v0 = vld [vmem:[%s6980_s17 + $0xa4] ss:$24 sps:$4 sm:$0xff]  }
 0x18a   : > { %1638 = vmatprep.subr.bf16.mxu1 %v5681_v2  ;;  %v5731_v2 = vld [vmem:[%s6980_s17 + $0x74] ss:$24 sps:$4 sm:$0xff]  }
 0x18c   : > { %1596 = vmatpush2.bf16.msra.mxu0 %v5680_v1  ;;  %v5726_v1 = vld [vmem:[%s6980_s17 + $0xa0] ss:$24 sps:$4 sm:$0xff]  }
 0x18d   : > { %1639 = vmatpush2.bf16.msra.mxu1 %v5683_v3  ;;  %v5729_v3 = vld [vmem:[%s6980_s17 + $0x70] ss:$24 sps:$4 sm:$0xff]  }
 0x1f3   : > { %v904_v45 = vpop.xlane.xlu0 %903 }
 0x1f4   : > { %v909_v46 = vmul.f32 0.00390625, %v904_v45 }
 0x1f6   : > { %v7077_v47 = vsub.f32 %v7029_v4, %v909_v46  ;;  %v7080_v48 = vsub.f32 %v7031_v5, %v909_v46  ;;  %v5684_v4 = vld [vmem:[%s6980_s17 + $0x244] ss:$24 sps:$4 sm:$0xff]   ;;  %v5686_v5 = vld [vmem:[%s6980_s17 + $0x240] ss:$24 sps:$4 sm:$0xff]  }
 0x1f7   : > { %v907_v49 = vpop.xlane.xlu0 %906  ;;  %1597 = vmatprep.subr.bf16.mxu0 %v5684_v4  ;;  %v5734_v4 = vld [vmem:[%s6980_s17 + $0x44] ss:$24 sps:$4 sm:$0xff]  }
 0x1f8   : > { %v910_v50 = vmul.f32 0.00390625, %v907_v49  ;;  %v915_v51 = vmul.f32 %v7077_v47, %v7077_v47  ;;  %v916_v52 = vmul.f32 %v7080_v48, %v7080_v48  ;;  %1598 = vmatpush2.bf16.msra.mxu0 %v5686_v5  ;;  %v5732_v5 = vld [vmem:[%s6980_s17 + $0x40] ss:$24 sps:$4 sm:$0xff]  }
 0x1fa   : > { %v7087_v53 = vsub.f32 %v7033_v6, %v910_v50  ;;  %v7090_v54 = vsub.f32 %v7037_v8, %v910_v50  ;;  %v919_v55 = vadd.f32 %v916_v52, %v915_v51  ;;  %v5687_v6 = vld [vmem:[%s6980_s17 + $0x24c] ss:$24 sps:$4 sm:$0xff]  }
 0x1fb   : > { %v5690_v8 = vld [vmem:[%s6980_s17 + $0x214] ss:$24 sps:$4 sm:$0xff]   ;;  %1640 = vmatprep.subr.bf16.mxu1 %v5687_v6 }
 0x1fc   : > { %920 = vadd.xlane.f32.xlu1 %v919_v55  ;;  %v917_v56 = vmul.f32 %v7087_v53, %v7087_v53  ;;  %v918_v57 = vmul.f32 %v7090_v54, %v7090_v54  ;;  %1641 = vmatpush2.bf16.msra.mxu1 %v5689_v7  ;;  %v5737_v6 = vld [vmem:[%s6980_s17 + $0x14] ss:$24 sps:$4 sm:$0xff]   ;;  %v5735_v7 = vld [vmem:[%s6980_s17 + $0x10] ss:$24 sps:$4 sm:$0xff]  }
 0x1fd   : > { %1599 = vmatprep.subr.bf16.mxu0 %v5690_v8  ;;  %1642 = vmatprep.subr.bf16.mxu1 %v5693_v9  ;;  %v5740_v8 = vld [vmem:[%s6980_s17 + $0x2e4] ss:$24 sps:$4 sm:$0xff]   ;;  %v5738_v9 = vld [vmem:[%s6980_s17 + $0x2e0] ss:$24 sps:$4 sm:$0xff]  }
 0x1fe   : > { %v922_v58 = vadd.f32 %v918_v57, %v917_v56  ;;  %1600 = vmatpush2.bf16.msra.mxu0 %v5692_v10  ;;  %v5743_v10 = vld [vmem:[%s6980_s17 + $0x2b4] ss:$24 sps:$4 sm:$0xff]  }
 0x1ff   : > { %1601 = vmatprep.subr.bf16.mxu0 %v5696_v12  ;;  %v5746_v12 = vld [vmem:[%s6980_s17 + $0x284] ss:$24 sps:$4 sm:$0xff]  }
 0x200   : > { %923 = vadd.xlane.f32.xlu1 %v922_v58  ;;  %1643 = vmatpush2.bf16.msra.mxu1 %v5695_v11  ;;  %v5714_v58 = vld [vmem:[%s6980_s17 + $0x160] ss:$24 sps:$4 sm:$0xff]   ;;  %v5741_v11 = vld [vmem:[%s6980_s17 + $0x2b0] ss:$24 sps:$4 sm:$0xff]  }
 0x201   : > { %1644 = vmatprep.subr.bf16.mxu1 %v5699_v13  ;;  %v5744_v13 = vld [vmem:[%s6980_s17 + $0x280] ss:$24 sps:$4 sm:$0xff]  }
 0x202   : > { %1602 = vmatpush2.bf16.msra.mxu0 %v5698_v14  ;;  %v5749_v14 = vld [vmem:[%s6980_s17 + $0x254] ss:$24 sps:$4 sm:$0xff]  }
 0x203   : > { %1603 = vmatprep.subr.bf16.mxu0 %v5702_v16  ;;  %v5752_v16 = vld [vmem:[%s6980_s17 + $0x224] ss:$24 sps:$4 sm:$0xff]  }
 0x204   : > { %1645 = vmatpush2.bf16.msra.mxu1 %v5701_v15  ;;  %v5747_v15 = vld [vmem:[%s6980_s17 + $0x250] ss:$24 sps:$4 sm:$0xff]  }
 0x205   : > { %1646 = vmatprep.subr.bf16.mxu1 %v5705_v17  ;;  %v5750_v17 = vld [vmem:[%s6980_s17 + $0x220] ss:$24 sps:$4 sm:$0xff]  }
 0x206   : > { %1604 = vmatpush2.bf16.msra.mxu0 %v5704_v18  ;;  %v5755_v18 = vld [vmem:[%s6980_s17 + $0x1f4] ss:$24 sps:$4 sm:$0xff]  }
 0x207   : > { %1605 = vmatprep.subr.bf16.mxu0 %v5708_v20  ;;  %v5758_v20 = vld [vmem:[%s6980_s17 + $0x1c4] ss:$24 sps:$4 sm:$0xff]  }
 0x208   : > { %1647 = vmatpush2.bf16.msra.mxu1 %v5707_v19  ;;  %v5753_v19 = vld [vmem:[%s6980_s17 + $0x1f0] ss:$24 sps:$4 sm:$0xff]  }
 0x209   : > { %1648 = vmatprep.subr.bf16.mxu1 %v5711_v21  ;;  %v5756_v21 = vld [vmem:[%s6980_s17 + $0x1c0] ss:$24 sps:$4 sm:$0xff]  }
 0x20a   : > { %1606 = vmatpush2.bf16.msra.mxu0 %v5710_v22  ;;  %v5761_v22 = vld [vmem:[%s6980_s17 + $0x194] ss:$24 sps:$4 sm:$0xff]  }
 0x20b   : > { %1661 = vmatprep.subr.bf16.mxu0 %v5716_v24  ;;  %v6475_v24 = vmov 0.0  }
 0x20c   : > { %1649 = vmatpush2.bf16.msra.mxu1 %v5713_v23  ;;  %v5759_v23 = vld [vmem:[%s6980_s17 + $0x190] ss:$24 sps:$4 sm:$0xff]  }
 0x20d   : > { %5449 = vmatprep.subr.bf16.mxu1 %v6475_v24 }
 0x285   : > { %v921_v25 = vpop.xlane.xlu1 %920 }
 0x286   : > { %v925_v26 = vmul.f32 0.00390625, %v921_v25  ;;  %v1075_v25 = vsub.s32 2, %v7126_v32 }
 0x288   : > { %v927_v27 = vadd.f32 1e-05, %v925_v26  ;;  %v7187_v26 = vld [vmem:[%s6988_s0] sm:$0x3f] }
 0x289   : > { %v924_v28 = vpop.xlane.xlu1 %923 }
 0x28a   : > { %6002 = vrsqrt.f32 %v927_v27  ;;  %v926_v29 = vmul.f32 0.00390625, %v924_v28  ;;  %v1076_v27 = vrot.slane %v7187_v26, %v1075_v25  ;;  %v1068_v28 = vrot.slane %v7187_v26, %v7132_v34 }
 0x28c   : > { %v928_v30 = vadd.f32 1e-05, %v926_v29 }
 0x28e   : > { %6004 = vrsqrt.f32 %v928_v30 }
 0x297   : > { %v6003_v36 = vpop.eup %6002 }
 0x298   : > { %v932_v38 = vmul.f32 %v6003_v36, %v7080_v48  ;;  %v931_v40 = vmul.f32 %v6003_v36, %v7077_v47 }
 0x29a   : > { %v947_v46 = vmul.f32 %v943_v39, %v932_v38  ;;  %v946_v50 = vmul.f32 %v939_v41, %v931_v40 }
 0x29b   : > { %v6005_v42 = vpop.eup %6004 }
 0x29c   : > { %v934_v45 = vmul.f32 %v6005_v42, %v7090_v54  ;;  %v933_v49 = vmul.f32 %v6005_v42, %v7087_v53  ;;  %v962_v52 = vadd.f32 %v958_v43, %v947_v46  ;;  %v961_v55 = vadd.f32 %v954_v44, %v946_v50  ;;  %v5719_v54 = vld [vmem:[%s6980_s17 + $0x134] ss:$24 sps:$4 sm:$0xff]   ;;  %v5717_v53 = vld [vmem:[%s6980_s17 + $0x130] ss:$24 sps:$4 sm:$0xff]  }
 0x29d   : > { %v1083_v50 = vsub.s32 4, %v7126_v32 }
 0x29e   : > { %v949_v48 = vmul.f32 %v943_v39, %v934_v45  ;;  %v948_v51 = vmul.f32 %v939_v41, %v933_v49 }
 0x2a0   : > { %v964_v47 = vadd.f32 %v958_v43, %v949_v48  ;;  %v963_v56 = vadd.f32 %v954_v44, %v948_v51  ;;  %v1084_v48 = vrot.slane %v7187_v26, %v1083_v50 }
 0x2a2   : > { %v966_v57 = vpack.c.bf16 %v964_v47, %v962_v52  ;;  %v7147_v59 = vpack.c.bf16 %v963_v56, %v961_v55  ;;  %v1087_v55 = vsub.s32 5, %v7126_v32 }
 0x2a4   : > { %1607 = vmatprep.mubr.bf16.mxu0 %v966_v57  ;;  %1650 = vmatprep.mubr.bf16.mxu1 %v966_v57 }
 0x2a5   : > { %1608 = vmatmul.mubr.bf16.vlgmr.msra.gmra.mxu0 %v7147_v59  ;;  %1651 = vmatmul.mubr.bf16.vlgmr.msra.gmra.mxu1 %v7147_v59 }
 0x2a6   : > { %1662 = vmatpush1.bf16.msra.mxu0 %v5714_v58  ;;  %1693 = vmatprep.mubr.bf16.mxu0 %v966_v57 }
 0x2a7   : > { %1663 = vmatprep.subr.bf16.mxu0 %v5719_v54  ;;  %5451 = vmatprep.mubr.msk.bf16.mxu1 %vm6476_vm0, %v6475_v24  ;;  %v7217_v54 = vrot.slane %v7187_v26, %v1087_v55 }
 0x2aa   : > { %1664 = vmatpush1.bf16.msra.mxu0 %v5717_v53 }
 0x2ab   : > { %1665 = vmatprep.subr.bf16.mxu0 %v5722_v60 }
 0x2ae   : > { %1666 = vmatpush1.bf16.msra.mxu0 %v5720_v61 }
 0x2af   : > { %1667 = vmatprep.subr.bf16.mxu0 %v5725_v62 }
 0x2b2   : > { %1668 = vmatpush1.bf16.msra.mxu0 %v5723_v63 }
 0x2b3   : > { %1669 = vmatprep.subr.bf16.mxu0 %v5728_v0 }
 0x2b6   : > { %1670 = vmatpush1.bf16.msra.mxu0 %v5726_v1 }
 0x2b7   : > { %1671 = vmatprep.subr.bf16.mxu0 %v5731_v2 }
 0x2ba   : > { %1672 = vmatpush1.bf16.msra.mxu0 %v5729_v3 }
 0x2bb   : > { %1673 = vmatprep.subr.bf16.mxu0 %v5734_v4 }
 0x2be   : > { %1674 = vmatpush1.bf16.msra.mxu0 %v5732_v5 }
 0x2bf   : > { %1675 = vmatprep.subr.bf16.mxu0 %v5737_v6 }
 0x2c2   : > { %1676 = vmatpush1.bf16.msra.mxu0 %v5735_v7 }
 0x2c3   : > { %1677 = vmatprep.subr.bf16.mxu0 %v5740_v8 }
 0x2c6   : > { %1678 = vmatpush2.bf16.msra.mxu0 %v5738_v9 }
 0x2c7   : > { %1679 = vmatprep.subr.bf16.mxu0 %v5743_v10 }
 0x2ca   : > { %1680 = vmatpush2.bf16.msra.mxu0 %v5741_v11 }
 0x2cb   : > { %1681 = vmatprep.subr.bf16.mxu0 %v5746_v12 }
 0x2ce   : > { %1682 = vmatpush2.bf16.msra.mxu0 %v5744_v13 }
 0x2cf   : > { %1683 = vmatprep.subr.bf16.mxu0 %v5749_v14 }
 0x2d2   : > { %1684 = vmatpush2.bf16.msra.mxu0 %v5747_v15 }
 0x2d3   : > { %1685 = vmatprep.subr.bf16.mxu0 %v5752_v16 }
 0x2d6   : > { %1686 = vmatpush2.bf16.msra.mxu0 %v5750_v17 }
 0x2d7   : > { %1687 = vmatprep.subr.bf16.mxu0 %v5755_v18 }
 0x2da   : > { %1688 = vmatpush2.bf16.msra.mxu0 %v5753_v19 }
 0x2db   : > { %1689 = vmatprep.subr.bf16.mxu0 %v5758_v20 }
 0x2de   : > { %1690 = vmatpush2.bf16.msra.mxu0 %v5756_v21 }
 0x2df   : > { %1691 = vmatprep.subr.bf16.mxu0 %v5761_v22 }
 0x2e2   : > { %1692 = vmatpush2.bf16.msra.mxu0 %v5759_v23 }
 0x2e5   : > { %1694 = vmatmul.mubr.bf16.vlgmr.msra.gmra.mxu0 %v7147_v59 }
 0x365   : > { %v1609_v29 = vpop.f32.mrf.mxu0  ;;  %v1652_v30 = vpop.f32.mrf.mxu1 }
 0x366   : > { %v1653_v31 = vadd.f32 %v1652_v30, %v1076_v27  ;;  %v1610_v35 = vadd.f32 %v1609_v29, %v1068_v28  ;;  %v1079_v29 = vsub.s32 3, %v7126_v32 }
 0x367   : > { %v7194_v36 = vpop.f32.mrf.mxu1  ;;  %v7196_v38 = vpop.f32.mrf.mxu0 }
 0x368   : > { %v5423_v37 = vpack.c.bf16 %v1653_v31, %v1653_v31  ;;  %v1736_v40 = vmul.f32 0.088388346, %v1610_v35  ;;  %v1080_v35 = vrot.slane %v7187_v26, %v1079_v29 }
 0x369   : > { %v1656_v39 = vpop.f32.mrf.mxu1  ;;  %v1613_v41 = vpop.f32.mrf.mxu0 }
 0x36a   : > { %5450 = vmatpush3.bf16.xpose.msra.mxu1 %v5423_v37  ;;  %v1657_v42 = vadd.f32 %v1656_v39, %v1076_v27  ;;  %v5421_v43 = vpack.c.bf16 %v1736_v40, %v1736_v40  ;;  %v1614_v44 = vadd.f32 %v1613_v41, %v1068_v28  ;;  %v1072_v37 = vrot.slane %v7187_v26, %v7129_v33 }
 0x36b   : > { %5455 = vmatprep.subr.bf16.mxu1 %v6475_v24  ;;  %v7208_v51 = vpop.f32.mrf.mxu0  ;;  %v1658_v2 = vpop.f32.mrf.mxu1  ;;  %v1655_v40 = vadd.f32 %v7194_v36, %v1080_v35 }
 0x36c   : > { %v5424_v45 = vpack.c.bf16 %v1657_v42, %v1657_v42  ;;  %v1737_v46 = vmul.f32 0.088388346, %v1614_v44  ;;  %v1612_v42 = vadd.f32 %v7196_v38, %v1072_v37  ;;  %v1659_v26 = vadd.f32 %v1658_v2, %v1080_v35  ;;  %v5795_v35 = vld [vmem:[%s6991_s21 + $0xc0] ss:$8 sps:$4 sm:$0xff]  }
 0x36d   : > { %v5429_v44 = vpack.c.bf16 %v1655_v40, %v1655_v40  ;;  %v5803_v40 = vld [vmem:[%s6991_s21 + $0xa4] ss:$8 sps:$4 sm:$0xff]  }
 0x36e   : > { %v5422_v49 = vpack.c.bf16 %v1737_v46, %v1737_v46 }
 0x371   : > { %5452 = vmatmul.mubr.bf16.vlgmr.msra.gmra.mxu1 %v5421_v43 }
 0x372   : > { %5456 = vmatpush3.bf16.xpose.msra.mxu1 %v5424_v45  ;;  %5457 = vmatprep.mubr.msk.bf16.mxu1 %vm6476_vm0, %v6475_v24  ;;  %v1959_v45 = vmul.f32 0.088388346, %v1612_v42 }
 0x373   : > { %5461 = vmatprep.subr.bf16.mxu1 %v6475_v24 }
 0x374   : > { %v5427_v46 = vpack.c.bf16 %v1959_v45, %v1959_v45 }
 0x379   : > { %5458 = vmatmul.mubr.bf16.vlgmr.msra.gmra.mxu1 %v5422_v49  ;;  %v1616_v49 = vadd.f32 %v7208_v51, %v1072_v37  ;;  %v5800_v37 = vld [vmem:[%s6991_s21 + $0xb4] ss:$8 sps:$4 sm:$0xff]  }
 0x37a   : > { %5463 = vmatprep.mubr.msk.bf16.mxu1 %vm6476_vm0, %v6475_v24 }
 0x37b   : > { %v1960_v38 = vmul.f32 0.088388346, %v1616_v49 }
 0x3a5   : > { %v1695_v52 = vpop.f32.mrf.mxu0 }
 0x3a6   : > { %v1696_v47 = vadd.f32 %v1695_v52, %v1084_v48 }
 0x3a7   : > { %v7211_v56 = vpop.f32.mrf.mxu0 }
 0x3a8   : > { %v5425_v57 = vpack.c.bf16 %v1696_v47, %v1696_v47  ;;  %v1698_v36 = vadd.f32 %v7211_v56, %v7217_v54  ;;  %v5428_v47 = vpack.c.bf16 %v1960_v38, %v1960_v38 }
 0x3a9   : > { %v1699_v58 = vpop.f32.mrf.mxu0 }
 0x3aa   : > { %v1870_v59 = vsel %vm1868_vm1, %v5425_v57, 0  ;;  %v1700_v53 = vadd.f32 %v1699_v58, %v1084_v48  ;;  %v5430_v48 = vpack.c.bf16 %v1659_v26, %v1659_v26  ;;  %v5431_v52 = vpack.c.bf16 %v1698_v36, %v1698_v36  ;;  %v5762_v36 = vld [vmem:[%s6991_s21 + $0x70] ss:$8 sps:$4 sm:$0xff]  }
 0x3ab   : > { %v1701_v60 = vpop.f32.mrf.mxu0  ;;  %5462 = vmatpush3.bf16.msra.mxu1 %v1870_v59 }
 0x3ac   : > { %v5426_v61 = vpack.c.bf16 %v1700_v53, %v1700_v53  ;;  %v1702_v62 = vadd.f32 %v1701_v60, %v7217_v54  ;;  %5467 = vmatprep.subr.bf16.mxu1 %v6475_v24  ;;  %v2091_v57 = vsel %vm1868_vm1, %v5431_v52, 0  ;;  %v5767_v52 = vld [vmem:[%s6991_s21 + $0x64] ss:$8 sps:$4 sm:$0xff]  }
 0x3ae   : > { %v1916_v63 = vsel %vm1868_vm1, %v5426_v61, 0  ;;  %v5432_v0 = vpack.c.bf16 %v1702_v62, %v1702_v62 }
 0x3b0   : > { %v7223_v1 = vsel %vm1868_vm1, %v5432_v0, 0 }
 0x431   : > { %v1794_v3 = vpop.f32.mrf.mxu1 }
 0x432   : > { %v1841_v4 = vsel %vm1840_vm2, %v1794_v3, -inf }
 0x433   : > { %1842 = vmax.xlane.f32.xlu0 %v1841_v4  ;;  %v5453_v5 = vpop.f32.mrf.mxu1 }
 0x435   : > { %v1797_v6 = vpop.f32.mrf.mxu1 }
 0x437   : > { %v5454_v7 = vpop.f32.mrf.mxu1 }
 0x439   : > { %v1834_v8 = vpop.f32.mrf.mxu1 }
 0x43a   : > { %v1844_v9 = vsel %vm1840_vm2, %v1834_v8, -inf }
 0x43b   : > { %1845 = vmax.xlane.f32.xlu1 %v1844_v9  ;;  %v5459_v10 = vpop.f32.mrf.mxu1 }
 0x43d   : > { %v1837_v11 = vpop.f32.mrf.mxu1 }
 0x43f   : > { %v5460_v12 = vpop.f32.mrf.mxu1 }
 0x4bc   : > { %v1843_v13 = vpop.xlane.xlu0 %1842 }
 0x4bd   : > { %v1847_v14 = vsub.f32 %v1794_v3, %v1843_v13 }
 0x4bf   : > { %v1849_v15 = vmul.f32 1.442695, %v1847_v14 }
 0x4c1   : > { %6006 = vpow2.f32 %v1849_v15 }
 0x4c4   : > { %v1846_v16 = vpop.xlane.xlu1 %1845 }
 0x4c5   : > { %v1848_v17 = vsub.f32 %v1834_v8, %v1846_v16 }
 0x4c7   : > { %v1851_v18 = vmul.f32 1.442695, %v1848_v17 }
 0x4c9   : > { %6008 = vpow2.f32 %v1851_v18 }
 0x4ce   : > { %v6007_v19 = vpop.eup %6006 }
 0x4cf   : > { %v1853_v20 = vsel %vm1840_vm2, %v6007_v19, 0.0 }
 0x4d0   : > { %1854 = vadd.xlane.f32.xlu0 %v1853_v20  ;;  %v6477_v20 = vmov 0  }
 0x4d1   : > { %2292 = vmatprep.mubr.bf16.mxu0 %v6477_v20 }
 0x4d6   : > { %v6009_v21 = vpop.eup %6008 }
 0x4d7   : > { %v1856_v22 = vsel %vm1840_vm2, %v6009_v21, 0.0 }
 0x4d8   : > { %1857 = vadd.xlane.f32.xlu1 %v1856_v22  ;;  %v5788_v22 = vld [vmem:[%s6991_s21 + $0xf4] ss:$8 sps:$4 sm:$0xff]  }
 0x4d9   : > { %2260 = vmatprep.subr.bf16.mxu0 %v5788_v22 }
 0x559   : > { %v1855_v23 = vpop.xlane.xlu0 %1854 }
 0x55a   : > { %6010 = vrcp.f32 %v1855_v23  ;;  %v5791_v23 = vld [vmem:[%s6991_s21 + $0xe4] ss:$8 sps:$4 sm:$0xff]  }
 0x561   : > { %v1858_v27 = vpop.xlane.xlu1 %1857 }
 0x562   : > { %6012 = vrcp.f32 %v1858_v27  ;;  %v5789_v27 = vld [vmem:[%s6991_s21 + $0xe0] ss:$8 sps:$4 sm:$0xff]  }
 0x567   : > { %v6011_v28 = vpop.eup %6010 }
 0x568   : > { %v1861_v30 = vmul.f32 %v6011_v28, %v6007_v19  ;;  %v5794_v28 = vld [vmem:[%s6991_s21 + $0xd4] ss:$8 sps:$4 sm:$0xff]  }
 0x56a   : > { %v1863_v31 = vpack.c.bf16 %v1861_v30, %v1861_v30  ;;  %v5792_v30 = vld [vmem:[%s6991_s21 + $0xd0] ss:$8 sps:$4 sm:$0xff]  }
 0x56c   : > { %5464 = vmatmul.mubr.msk.bf16.vlgmr.msra.gmra.mxu1 %vm1840_vm2, %v1863_v31  ;;  %v5797_v31 = vld [vmem:[%s6991_s21 + $0xc4] ss:$8 sps:$4 sm:$0xff]  }
 0x56d   : > { %5468 = vmatpush3.bf16.msra.mxu1 %v1916_v63  ;;  %5469 = vmatprep.mubr.msk.bf16.mxu1 %vm6476_vm0, %v6475_v24 }
 0x56e   : > { %5473 = vmatprep.subr.bf16.mxu1 %v6475_v24 }
 0x56f   : > { %v6013_v39 = vpop.eup %6012 }
 0x570   : > { %v1862_v41 = vmul.f32 %v6013_v39, %v6009_v21  ;;  %v5786_v21 = vld [vmem:[%s6991_s21 + $0xf0] ss:$8 sps:$4 sm:$0xff]  }
 0x571   : > { %2261 = vmatpush1.bf16.msra.mxu0 %v5786_v21  ;;  %v5798_v39 = vld [vmem:[%s6991_s21 + $0xb0] ss:$8 sps:$4 sm:$0xff]  }
 0x572   : > { %v1864_v43 = vpack.c.bf16 %v1862_v41, %v1862_v41  ;;  %2262 = vmatprep.subr.bf16.mxu0 %v5791_v23  ;;  %v5801_v41 = vld [vmem:[%s6991_s21 + $0xa0] ss:$8 sps:$4 sm:$0xff]  }
 0x574   : > { %5470 = vmatmul.mubr.msk.bf16.vlgmr.msra.gmra.mxu1 %vm1840_vm2, %v1864_v43 }
 0x575   : > { %5474 = vmatpush3.bf16.xpose.msra.mxu1 %v5429_v44  ;;  %5475 = vmatprep.mubr.msk.bf16.mxu1 %vm6476_vm0, %v6475_v24 }
 0x576   : > { %5479 = vmatprep.subr.bf16.mxu1 %v6475_v24  ;;  %2263 = vmatpush1.bf16.msra.mxu0 %v5789_v27 }
 0x577   : > { %2264 = vmatprep.subr.bf16.mxu0 %v5794_v28 }
 0x57a   : > { %2265 = vmatpush1.bf16.msra.mxu0 %v5792_v30  ;;  %v6059_v30 = vld [vmem:[#allocation2] sm:$0xff] }
 0x57b   : > { %2266 = vmatprep.subr.bf16.mxu0 %v5797_v31 }
 0x57c   : > { %5476 = vmatmul.mubr.bf16.vlgmr.msra.gmra.mxu1 %v5427_v46  ;;  %v5764_v46 = vld [vmem:[%s6991_s21 + $0x74] ss:$8 sps:$4 sm:$0xff]  }
 0x57d   : > { %5480 = vmatpush3.bf16.xpose.msra.mxu1 %v5430_v48  ;;  %5481 = vmatprep.mubr.msk.bf16.mxu1 %vm6476_vm0, %v6475_v24 }
 0x57e   : > { %5485 = vmatprep.subr.bf16.mxu1 %v6475_v24  ;;  %2267 = vmatpush1.bf16.msra.mxu0 %v5795_v35 }
 0x57f   : > { %2268 = vmatprep.subr.bf16.mxu0 %v5800_v37 }
 0x582   : > { %2269 = vmatpush1.bf16.msra.mxu0 %v5798_v39 }
 0x583   : > { %2270 = vmatprep.subr.bf16.mxu0 %v5803_v40 }
 0x584   : > { %5482 = vmatmul.mubr.bf16.vlgmr.msra.gmra.mxu1 %v5428_v47  ;;  %v5765_v47 = vld [vmem:[%s6991_s21 + $0x60] ss:$8 sps:$4 sm:$0xff]  }
 0x585   : > { %5486 = vmatpush3.bf16.msra.mxu1 %v2091_v57  ;;  %5487 = vmatprep.mubr.msk.bf16.mxu1 %vm6476_vm0, %v6475_v24  ;;  %v5773_v57 = vld [vmem:[%s6991_s21 + $0x44] ss:$8 sps:$4 sm:$0xff]  }
 0x586   : > { %5491 = vmatprep.subr.bf16.mxu1 %v6475_v24  ;;  %2271 = vmatpush1.bf16.msra.mxu0 %v5801_v41 }
 0x62c   : > { %v7255_v51 = vpop.f32.mrf.mxu1 }
 0x62e   : > { %v5465_v56 = vpop.f32.mrf.mxu1 }
 0x62f   : > { %v5771_v56 = vld [vmem:[%s6991_s21 + $0x40] ss:$8 sps:$4 sm:$0xff]  }
 0x630   : > { %v1909_v58 = vpop.f32.mrf.mxu1 }
 0x631   : > { %v5776_v58 = vld [vmem:[%s6991_s21 + $0x34] ss:$8 sps:$4 sm:$0xff]  }
 0x632   : > { %v5466_v59 = vpop.f32.mrf.mxu1 }
 0x633   : > { %v5774_v59 = vld [vmem:[%s6991_s21 + $0x30] ss:$8 sps:$4 sm:$0xff]  }
 0x634   : > { %v7257_v54 = vpop.f32.mrf.mxu1 }
 0x635   : > { %v1958_v53 = vpack.c.bf16 %v7257_v54, %v7255_v51 }
 0x636   : > { %v5471_v60 = vpop.f32.mrf.mxu1 }
 0x637   : > { %v5779_v60 = vld [vmem:[%s6991_s21 + $0x24] ss:$8 sps:$4 sm:$0xff]  }
 0x638   : > { %v1955_v61 = vpop.f32.mrf.mxu1 }
 0x639   : > { %v5777_v61 = vld [vmem:[%s6991_s21 + $0x20] ss:$8 sps:$4 sm:$0xff]  }
 0x63a   : > { %v5472_v62 = vpop.f32.mrf.mxu1 }
 0x63b   : > { %v5782_v62 = vld [vmem:[%s6991_s21 + $0x14] ss:$8 sps:$4 sm:$0xff]  }
 0x63c   : > { %v2017_v63 = vpop.f32.mrf.mxu1 }
 0x63d   : > { %v2063_v0 = vsel %vm1840_vm2, %v2017_v63, -inf }
 0x63e   : > { %2064 = vmax.xlane.f32.xlu0 %v2063_v0  ;;  %v5477_v2 = vpop.f32.mrf.mxu1  ;;  %v5785_v0 = vld [vmem:[%s6991_s21 + $0x4] ss:$8 sps:$4 sm:$0xff]  }
 0x63f   : > { %v5783_v2 = vld [vmem:[%s6991_s21] ss:$8 sps:$4 sm:$0xff]  }
 0x640   : > { %v2020_v3 = vpop.f32.mrf.mxu1 }
 0x641   : > { %v5804_v3 = vld [vmem:[%s6991_s21 + $0x90] ss:$8 sps:$4 sm:$0xff]  }
 0x642   : > { %v5478_v4 = vpop.f32.mrf.mxu1 }
 0x643   : > { %v5806_v4 = vld [vmem:[%s6991_s21 + $0x94] ss:$8 sps:$4 sm:$0xff]  }
 0x644   : > { %v2057_v5 = vpop.f32.mrf.mxu1  ;;  %2272 = vmatprep.subr.bf16.mxu0 %v5806_v4  ;;  %v2553_v4 = vld [vmem:[%s7007_s22 + $0x148] sm:$0xff] }
 0x645   : > { %v2066_v6 = vsel %vm1840_vm2, %v2057_v5, -inf  ;;  %2273 = vmatpush1.bf16.msra.mxu0 %v5804_v3  ;;  %v2556_v3 = vld [vmem:[%s7007_s22 + $0x160] sm:$0xff] }
 0x646   : > { %2067 = vmax.xlane.f32.xlu1 %v2066_v6  ;;  %v5483_v7 = vpop.f32.mrf.mxu1  ;;  %v5809_v6 = vld [vmem:[%s6991_s21 + $0x84] ss:$8 sps:$4 sm:$0xff]  }
 0x647   : > { %2274 = vmatprep.subr.bf16.mxu0 %v5809_v6 }
 0x648   : > { %v2060_v8 = vpop.f32.mrf.mxu1 }
 0x64a   : > { %v5484_v9 = vpop.f32.mrf.mxu1 }
 0x6c7   : > { %v2065_v10 = vpop.xlane.xlu0 %2064 }
 0x6c8   : > { %v2069_v11 = vsub.f32 %v2017_v63, %v2065_v10  ;;  %v5780_v63 = vld [vmem:[%s6991_s21 + $0x10] ss:$8 sps:$4 sm:$0xff]  }
 0x6ca   : > { %v2071_v12 = vmul.f32 1.442695, %v2069_v11 }
 0x6cc   : > { %6014 = vpow2.f32 %v2071_v12 }
 0x6cf   : > { %v2068_v13 = vpop.xlane.xlu1 %2067 }
 0x6d0   : > { %v2070_v14 = vsub.f32 %v2057_v5, %v2068_v13  ;;  %v5807_v5 = vld [vmem:[%s6991_s21 + $0x80] ss:$8 sps:$4 sm:$0xff]  }
 0x6d1   : > { %2275 = vmatpush1.bf16.msra.mxu0 %v5807_v5  ;;  %v2557_v5 = vld [vmem:[%s7007_s22 + $0x168] sm:$0xff] }
 0x6d2   : > { %v2073_v15 = vmul.f32 1.442695, %v2070_v14 }
 0x6d4   : > { %6016 = vpow2.f32 %v2073_v15 }
 0x6d9   : > { %v6015_v16 = vpop.eup %6014 }
 0x6da   : > { %v2075_v17 = vsel %vm1840_vm2, %v6015_v16, 0.0 }
 0x6db   : > { %2076 = vadd.xlane.f32.xlu0 %v2075_v17 }
 0x6e1   : > { %v6017_v18 = vpop.eup %6016 }
 0x6e2   : > { %v2078_v19 = vsel %vm1840_vm2, %v6017_v18, 0.0 }
 0x6e3   : > { %2079 = vadd.xlane.f32.xlu1 %v2078_v19 }
 0x764   : > { %v2077_v42 = vpop.xlane.xlu0 %2076 }
 0x765   : > { %6018 = vrcp.f32 %v2077_v42  ;;  %v6060_v42 = vld [vmem:[#allocation2 + $0x18] sm:$0xff] }
 0x76c   : > { %v2080_v43 = vpop.xlane.xlu1 %2079 }
 0x76d   : > { %6020 = vrcp.f32 %v2080_v43 }
 0x772   : > { %v6019_v44 = vpop.eup %6018 }
 0x773   : > { %v2083_v45 = vmul.f32 %v6019_v44, %v6015_v16  ;;  %v2430_v16 = vld [vmem:[%s744_s5] sm:$0x3] }
 0x774   : > { %v2435_v22 = vrot.slane %v2430_v16, %v7132_v34  ;;  %v2439_v27 = vrot.slane %v2430_v16, %v7129_v33  ;;  %v2540_v16 = vld [vmem:[%s7007_s22 + $0xe0] sm:$0xff] }
 0x775   : > { %v2085_v26 = vpack.c.bf16 %v2083_v45, %v2083_v45  ;;  %v6061_v45 = vld [vmem:[#allocation2 + $0x8] sm:$0xff] }
 0x777   : > { %5488 = vmatmul.mubr.msk.bf16.vlgmr.msra.gmra.mxu1 %vm1840_vm2, %v2085_v26 }
 0x778   : > { %5492 = vmatpush3.bf16.msra.mxu1 %v7223_v1  ;;  %5493 = vmatprep.mubr.msk.bf16.mxu1 %vm6476_vm0, %v6475_v24  ;;  %v5770_v1 = vld [vmem:[%s6991_s21 + $0x54] ss:$8 sps:$4 sm:$0xff]   ;;  %v5768_v24 = vld [vmem:[%s6991_s21 + $0x50] ss:$8 sps:$4 sm:$0xff]   ;;  %s7872_s21 = sld [smem:[#allocation43_spill]] (!%p5408_p4) }
 0x779   : > { %2383 = vmatprep.subr.bf16.mxu1 %v5764_v46 }
 0x77a   : > { %v6021_v49 = vpop.eup %6020 }
 0x77b   : > { %v2084_v48 = vmul.f32 %v6021_v49, %v6017_v18 }
 0x77d   : > { %v2086_v38 = vpack.c.bf16 %v2084_v48, %v2084_v48 }
 0x77f   : > { %5494 = vmatmul.mubr.msk.bf16.vlgmr.msra.gmra.mxu1 %vm1840_vm2, %v2086_v38  ;;  %v2568_v38 = vld [vmem:[%s7007_s22 + $0x1c0] sm:$0xff] }
 0x780   : > { %2384 = vmatpush1.bf16.msra.mxu1 %v5762_v36  ;;  %2415 = vmatprep.mubr.bf16.mxu1 %v6477_v20  ;;  %v6058_v20 = vld [vmem:[#allocation2 + $0x10] sm:$0xff] }
 0x781   : > { %2385 = vmatprep.subr.bf16.mxu1 %v5767_v52  ;;  %v2572_v52 = vld [vmem:[%s7007_s22 + $0x1e0] sm:$0xff] }
 0x784   : > { %2386 = vmatpush1.bf16.msra.mxu1 %v5765_v47  ;;  %v2569_v47 = vld [vmem:[%s7007_s22 + $0x1c8] sm:$0xff] }
 0x785   : > { %2387 = vmatprep.subr.bf16.mxu1 %v5770_v1  ;;  %v5208_v1 = vcombine.low %v2568_v38, %v2572_v52 }
 0x788   : > { %2388 = vmatpush1.bf16.msra.mxu1 %v5768_v24  ;;  %v5209_v24 = vcombine.high %v2568_v38, %v2572_v52  ;;  %v2512_v52 = vld [vmem:[%s7007_s22] sm:$0xff] }
 0x789   : > { %2389 = vmatprep.subr.bf16.mxu1 %v5773_v57  ;;  %v2573_v57 = vld [vmem:[%s7007_s22 + $0x1e8] sm:$0xff] }
 0x78a   : > { %3322 = vmatprep.subr.bf16.mxu0 %v5209_v24  ;;  %v2517_v24 = vld [vmem:[%s7007_s22 + $0x28] sm:$0xff] }
 0x78c   : > { %2390 = vmatpush1.bf16.msra.mxu1 %v5771_v56  ;;  %v2560_v56 = vld [vmem:[%s7007_s22 + $0x180] sm:$0xff] }
 0x78d   : > { %2391 = vmatprep.subr.bf16.mxu1 %v5776_v58  ;;  %v2564_v58 = vld [vmem:[%s7007_s22 + $0x1a0] sm:$0xff] }
 0x78e   : > { %v5200_v6 = vcombine.low %v2560_v56, %v2564_v58 }
 0x790   : > { %2392 = vmatpush1.bf16.msra.mxu1 %v5774_v59  ;;  %v5210_v59 = vcombine.low %v2569_v47, %v2573_v57 }
 0x791   : > { %2393 = vmatprep.subr.bf16.mxu1 %v5779_v60  ;;  %v5211_v60 = vcombine.high %v2569_v47, %v2573_v57  ;;  %v2516_v47 = vld [vmem:[%s7007_s22 + $0x20] sm:$0xff] }
 0x794   : > { %2394 = vmatpush1.bf16.msra.mxu1 %v5777_v61  ;;  %v5201_v61 = vcombine.high %v2560_v56, %v2564_v58  ;;  %v5153_v58 = vcombine.high %v2512_v52, %v2516_v47 }
 0x795   : > { %2395 = vmatprep.subr.bf16.mxu1 %v5782_v62  ;;  %v2561_v62 = vld [vmem:[%s7007_s22 + $0x188] sm:$0xff] }
 0x798   : > { %2396 = vmatpush1.bf16.msra.mxu1 %v5780_v63  ;;  %v2565_v63 = vld [vmem:[%s7007_s22 + $0x1a8] sm:$0xff] }
 0x799   : > { %2397 = vmatprep.subr.bf16.mxu1 %v5785_v0  ;;  %v2552_v0 = vld [vmem:[%s7007_s22 + $0x140] sm:$0xff] }
 0x79c   : > { %2398 = vmatpush1.bf16.msra.mxu1 %v5783_v2  ;;  %v5203_v2 = vcombine.high %v2561_v62, %v2565_v63 }
 0x79d   : > { %3365 = vmatprep.subr.bf16.mxu1 %v5211_v60  ;;  %v2632_v60 = vld [vmem:[%s7007_s22 + $0x3c0] sm:$0xff] }
 0x79f   : > { %2416 = vmatmul.mubr.bf16.vlgmr.msra.gmra.mxu1 %v1958_v53 }
 0x7a0   : > { %3366 = vmatpush1.bf16.msra.mxu1 %v5210_v59 }
 0x7a1   : > { %3367 = vmatprep.subr.bf16.mxu1 %v5203_v2 }
 0x837   : > { %v2127_v7 = vpop.f32.mrf.mxu1 }
 0x839   : > { %v5489_v8 = vpop.f32.mrf.mxu1 }
 0x83a   : > { %v5193_v8 = vcombine.high %v2552_v0, %v2556_v3 }
 0x83b   : > { %v2130_v9 = vpop.f32.mrf.mxu1 }
 0x83c   : > { %v5195_v9 = vcombine.high %v2553_v4, %v2557_v5 }
 0x83d   : > { %v5490_v10 = vpop.f32.mrf.mxu1 }
 0x83e   : > { %v2544_v10 = vld [vmem:[%s7007_s22 + $0x100] sm:$0xff] }
 0x83f   : > { %v2173_v11 = vpop.f32.mrf.mxu1 }
 0x840   : > { %v2179_v12 = vpack.c.bf16 %v2173_v11, %v2127_v7  ;;  %v5202_v7 = vcombine.low %v2561_v62, %v2565_v63  ;;  %v2548_v11 = vld [vmem:[%s7007_s22 + $0x120] sm:$0xff]  ;;  %v2633_v62 = vld [vmem:[%s7007_s22 + $0x3c8] sm:$0xff] }
 0x841   : > { %v5495_v13 = vpop.f32.mrf.mxu1  ;;  %v2637_v63 = vld [vmem:[%s7007_s22 + $0x3e8] sm:$0xff] }
 0x842   : > { %2293 = vmatmul.mubr.bf16.vlgmr.msra.gmra.mxu0 %v2179_v12  ;;  %v2545_v12 = vld [vmem:[%s7007_s22 + $0x108] sm:$0xff]  ;;  %3368 = vmatpush1.bf16.msra.mxu1 %v5202_v7 }
 0x843   : > { %v2176_v14 = vpop.f32.mrf.mxu1  ;;  %3323 = vmatpush1.bf16.msra.mxu0 %v5208_v1  ;;  %v2549_v13 = vld [vmem:[%s7007_s22 + $0x128] sm:$0xff]  ;;  %3369 = vmatprep.subr.bf16.mxu1 %v5195_v9 }
 0x844   : > { %3324 = vmatprep.subr.bf16.mxu0 %v5201_v61  ;;  %v5192_v14 = vcombine.low %v2552_v0, %v2556_v3  ;;  %v2513_v1 = vld [vmem:[%s7007_s22 + $0x8] sm:$0xff]  ;;  %v2636_v61 = vld [vmem:[%s7007_s22 + $0x3e0] sm:$0xff]  ;;  %v5152_v0 = vcombine.low %v2512_v52, %v2516_v47 }
 0x845   : > { %v5496_v51 = vpop.f32.mrf.mxu1  ;;  %v5155_v59 = vcombine.high %v2513_v1, %v2517_v24  ;;  %v5154_v2 = vcombine.low %v2513_v1, %v2517_v24  ;;  %v5273_v3 = vcombine.high %v2632_v60, %v2636_v61  ;;  %v2613_v52 = vld [vmem:[%s7007_s22 + $0x328] sm:$0xff]  ;;  %v2600_v47 = vld [vmem:[%s7007_s22 + $0x2c0] sm:$0xff] }
 0x846   : > { %v5194_v51 = vcombine.low %v2553_v4, %v2557_v5  ;;  %v5275_v4 = vcombine.high %v2633_v62, %v2637_v63  ;;  %v5272_v5 = vcombine.low %v2632_v60, %v2636_v61  ;;  %v2604_v1 = vld [vmem:[%s7007_s22 + $0x2e0] sm:$0xff] }
 0x847   : > { %3325 = vmatpush1.bf16.msra.mxu0 %v5200_v6  ;;  %v5274_v6 = vcombine.low %v2633_v62, %v2637_v63  ;;  %v2592_v60 = vld [vmem:[%s7007_s22 + $0x280] sm:$0xff]  ;;  %v2593_v63 = vld [vmem:[%s7007_s22 + $0x288] sm:$0xff] }
 0x848   : > { %3326 = vmatprep.subr.bf16.mxu0 %v5193_v8  ;;  %3370 = vmatpush1.bf16.msra.mxu1 %v5194_v51  ;;  %v2596_v62 = vld [vmem:[%s7007_s22 + $0x2a0] sm:$0xff] }
 0x84b   : > { %3327 = vmatpush1.bf16.msra.mxu0 %v5192_v14 }
 0x85f   : > { %v2417_v54 = vpop.f32.mrf.mxu1 }
 0x861   : > { %v2419_v53 = vpop.f32.mrf.mxu1 }
 0x863   : > { %v2421_v18 = vpop.f32.mrf.mxu1 }
 0x865   : > { %v2423_v37 = vpop.f32.mrf.mxu1 }
 0x902   : > { %v2294_v15 = vpop.f32.mrf.mxu0 }
 0x903   : > { %v2418_v17 = vadd.f32 %v2417_v54, %v2294_v15  ;;  %v5185_v54 = vcombine.high %v2544_v10, %v2548_v11  ;;  %v2536_v15 = vld [vmem:[%s7007_s22 + $0xc0] sm:$0xff] }
 0x904   : > { %v2296_v19 = vpop.f32.mrf.mxu0 }
 0x905   : > { %v2426_v21 = vadd.f32 %v6058_v20, %v2418_v17  ;;  %v2420_v23 = vadd.f32 %v2419_v53, %v2296_v19  ;;  %v5187_v53 = vcombine.high %v2545_v12, %v2549_v13  ;;  %v2537_v17 = vld [vmem:[%s7007_s22 + $0xc8] sm:$0xff]  ;;  %v5184_v19 = vcombine.low %v2544_v10, %v2548_v11  ;;  %3328 = vmatprep.subr.bf16.mxu0 %v5185_v54 }
 0x906   : > { %v2298_v28 = vpop.f32.mrf.mxu0  ;;  %v5186_v20 = vcombine.low %v2545_v12, %v2549_v13 }
 0x907   : > { %v2427_v31 = vadd.f32 %v6059_v30, %v2420_v23  ;;  %v2422_v35 = vadd.f32 %v2421_v18, %v2298_v28  ;;  %v7309_v40 = vadd.f32 %v2435_v22, %v2426_v21  ;;  %v2541_v18 = vld [vmem:[%s7007_s22 + $0xe8] sm:$0xff]  ;;  %v5177_v21 = vcombine.high %v2536_v15, %v2540_v16  ;;  %3371 = vmatprep.subr.bf16.mxu1 %v5187_v53  ;;  %v2528_v23 = vld [vmem:[%s7007_s22 + $0x80] sm:$0xff] }
 0x908   : > { %v2300_v39 = vpop.f32.mrf.mxu0  ;;  %v2529_v28 = vld [vmem:[%s7007_s22 + $0x88] sm:$0xff]  ;;  %3329 = vmatpush1.bf16.msra.mxu0 %v5184_v19  ;;  %3372 = vmatpush1.bf16.msra.mxu1 %v5186_v20  ;;  %v2628_v19 = vld [vmem:[%s7007_s22 + $0x3a0] sm:$0xff] }
 0x909   : > { %v7311_v41 = vadd.f32 %v2439_v27, %v2427_v31  ;;  %v2428_v43 = vadd.f32 %v6060_v42, %v2422_v35  ;;  %v2424_v44 = vadd.f32 %v2423_v37, %v2300_v39  ;;  %v2533_v30 = vld [vmem:[%s7007_s22 + $0xa8] sm:$0xff]  ;;  %v5176_v31 = vcombine.low %v2536_v15, %v2540_v16  ;;  %3330 = vmatprep.subr.bf16.mxu0 %v5177_v21  ;;  %v2520_v42 = vld [vmem:[%s7007_s22 + $0x40] sm:$0xff] }
 0x90a   : > { %v5178_v35 = vcombine.low %v2537_v17, %v2541_v18  ;;  %v5171_v39 = vcombine.high %v2529_v28, %v2533_v30  ;;  %v2625_v20 = vld [vmem:[%s7007_s22 + $0x388] sm:$0xff] }
 0x90b   : > { %v2429_v26 = vadd.f32 %v6061_v45, %v2424_v44  ;;  %v2448_v46 = vadd.f32 %v7311_v41, %v7309_v40  ;;  %v7315_v49 = vadd.f32 %v2435_v22, %v2428_v43  ;;  %v5179_v22 = vcombine.high %v2537_v17, %v2541_v18  ;;  %v2524_v43 = vld [vmem:[%s7007_s22 + $0x60] sm:$0xff]  ;;  %v2521_v44 = vld [vmem:[%s7007_s22 + $0x48] sm:$0xff] }
 0x90c   : > { %v2525_v45 = vld [vmem:[%s7007_s22 + $0x68] sm:$0xff]  ;;  %3331 = vmatpush1.bf16.msra.mxu0 %v5176_v31  ;;  %v5160_v57 = vcombine.low %v2520_v42, %v2524_v43  ;;  %v2624_v18 = vld [vmem:[%s7007_s22 + $0x380] sm:$0xff] }
 0x90d   : > { %v7317_v48 = vadd.f32 %v2439_v27, %v2429_v26  ;;  %2449 = vadd.xlane.f32.xlu0 %v2448_v46  ;;  %v2532_v27 = vld [vmem:[%s7007_s22 + $0xa0] sm:$0xff]  ;;  %3373 = vmatprep.subr.bf16.mxu1 %v5179_v22  ;;  %v5170_v46 = vcombine.low %v2529_v28, %v2533_v30  ;;  %v5163_v38 = vcombine.high %v2521_v44, %v2525_v45  ;;  %v2629_v22 = vld [vmem:[%s7007_s22 + $0x3a8] sm:$0xff] }
 0x90e   : > { %v5169_v37 = vcombine.high %v2528_v23, %v2532_v27  ;;  %v5168_v26 = vcombine.low %v2528_v23, %v2532_v27  ;;  %3374 = vmatpush1.bf16.msra.mxu1 %v5178_v35  ;;  %v5162_v56 = vcombine.low %v2521_v44, %v2525_v45  ;;  %v5265_v21 = vcombine.high %v2624_v18, %v2628_v19  ;;  %v2616_v30 = vld [vmem:[%s7007_s22 + $0x340] sm:$0xff]  ;;  %v2617_v35 = vld [vmem:[%s7007_s22 + $0x348] sm:$0xff] }
 0x90f   : > { %v2451_v36 = vadd.f32 %v7317_v48, %v7315_v49  ;;  %3375 = vmatprep.subr.bf16.mxu1 %v5171_v39  ;;  %v5264_v23 = vcombine.low %v2624_v18, %v2628_v19  ;;  %v5266_v27 = vcombine.low %v2625_v20, %v2629_v22  ;;  %v5267_v28 = vcombine.high %v2625_v20, %v2629_v22  ;;  %v2620_v31 = vld [vmem:[%s7007_s22 + $0x360] sm:$0xff]  ;;  %v2621_v39 = vld [vmem:[%s7007_s22 + $0x368] sm:$0xff] }
 0x910   : > { %3332 = vmatprep.subr.bf16.mxu0 %v5169_v37  ;;  %v5257_v37 = vcombine.high %v2616_v30, %v2620_v31  ;;  %v5259_v44 = vcombine.high %v2617_v35, %v2621_v39  ;;  %v2608_v45 = vld [vmem:[%s7007_s22 + $0x300] sm:$0xff]  ;;  %v2581_v18 = vld [vmem:[%s7007_s22 + $0x228] sm:$0xff] }
 0x911   : > { %2452 = vadd.xlane.f32.xlu1 %v2451_v36  ;;  %v5161_v36 = vcombine.high %v2520_v42, %v2524_v43  ;;  %3333 = vmatpush1.bf16.msra.mxu0 %v5168_v26  ;;  %v5256_v42 = vcombine.low %v2616_v30, %v2620_v31  ;;  %v5258_v43 = vcombine.low %v2617_v35, %v2621_v39  ;;  %v2612_v26 = vld [vmem:[%s7007_s22 + $0x320] sm:$0xff]  ;;  %v2574_v30 = vld [vmem:[%s7007_s22 + $0x1f0] sm:$0xff]  ;;  %v2571_v31 = vld [vmem:[%s7007_s22 + $0x1d8] sm:$0xff] }
 0x912   : > { %3376 = vmatpush1.bf16.msra.mxu1 %v5170_v46  ;;  %v2609_v46 = vld [vmem:[%s7007_s22 + $0x308] sm:$0xff] }
 0x913   : > { %3334 = vmatprep.subr.bf16.mxu0 %v5161_v36  ;;  %3377 = vmatprep.subr.bf16.mxu1 %v5163_v38  ;;  %v5248_v36 = vcombine.low %v2608_v45, %v2612_v26  ;;  %v5249_v38 = vcombine.high %v2608_v45, %v2612_v26  ;;  %v5250_v24 = vcombine.low %v2609_v46, %v2613_v52 }
 0x915   : > { %3335 = vmatpush1.bf16.msra.mxu0 %v5160_v57  ;;  %v5251_v57 = vcombine.high %v2609_v46, %v2613_v52  ;;  %v2446_v52 = vld [vmem:[%s753_s27] sm:$0x3] }
 0x916   : > { %3378 = vmatpush1.bf16.msra.mxu1 %v5162_v56  ;;  %3336 = vmatprep.subr.bf16.mxu0 %v5153_v58  ;;  %v5241_v56 = vcombine.high %v2600_v47, %v2604_v1  ;;  %v2601_v58 = vld [vmem:[%s7007_s22 + $0x2c8] sm:$0xff] }
 0x917   : > { %3379 = vmatprep.subr.bf16.mxu1 %v5155_v59  ;;  %v2605_v59 = vld [vmem:[%s7007_s22 + $0x2e8] sm:$0xff] }
 0x918   : > { %v5243_v61 = vcombine.high %v2601_v58, %v2605_v59 }
 0x919   : > { %3337 = vmatpush1.bf16.msra.mxu0 %v5152_v0  ;;  %v2597_v0 = vld [vmem:[%s7007_s22 + $0x2a8] sm:$0xff] }
 0x91a   : > { %3380 = vmatpush1.bf16.msra.mxu1 %v5154_v2  ;;  %3338 = vmatprep.subr.bf16.mxu0 %v5273_v3  ;;  %v5240_v2 = vcombine.low %v2600_v47, %v2604_v1  ;;  %v5242_v3 = vcombine.low %v2601_v58, %v2605_v59  ;;  %v2447_v1 = vld [vmem:[%s7870_s6] sm:$0x3]  ;;  %v2484_v58 = vrot.slane %v2446_v52, %v7132_v34 }
 0x91b   : > { %3381 = vmatprep.subr.bf16.mxu1 %v5275_v4  ;;  %v5233_v4 = vcombine.high %v2592_v60, %v2596_v62 }
 0x91d   : > { %3339 = vmatpush2.bf16.msra.mxu0 %v5272_v5  ;;  %v5235_v5 = vcombine.high %v2593_v63, %v2597_v0 }
 0x91e   : > { %3382 = vmatpush2.bf16.msra.mxu1 %v5274_v6  ;;  %3340 = vmatprep.subr.bf16.mxu0 %v5265_v21  ;;  %v2584_v6 = vld [vmem:[%s7007_s22 + $0x240] sm:$0xff] }
 0x91f   : > { %3383 = vmatprep.subr.bf16.mxu1 %v5267_v28  ;;  %v2570_v28 = vld [vmem:[%s7007_s22 + $0x1d0] sm:$0xff] }
 0x920   : > { %v5213_v35 = vcombine.high %v2570_v28, %v2574_v30  ;;  %v5212_v39 = vcombine.low %v2570_v28, %v2574_v30  ;;  %v2551_v28 = vld [vmem:[%s7007_s22 + $0x138] sm:$0xff] }
 0x921   : > { %3341 = vmatpush2.bf16.msra.mxu0 %v5264_v23 }
 0x922   : > { %3384 = vmatpush2.bf16.msra.mxu1 %v5266_v27  ;;  %3342 = vmatprep.subr.bf16.mxu0 %v5257_v37  ;;  %v2575_v37 = vld [vmem:[%s7007_s22 + $0x1f8] sm:$0xff] }
 0x923   : > { %3385 = vmatprep.subr.bf16.mxu1 %v5259_v44 }
 0x925   : > { %3343 = vmatpush2.bf16.msra.mxu0 %v5256_v42  ;;  %v5214_v42 = vcombine.low %v2571_v31, %v2575_v37 }
 0x926   : > { %3386 = vmatpush2.bf16.msra.mxu1 %v5258_v43  ;;  %3344 = vmatprep.subr.bf16.mxu0 %v5249_v38  ;;  %v5215_v43 = vcombine.high %v2571_v31, %v2575_v37 }
 0x927   : > { %3387 = vmatprep.subr.bf16.mxu1 %v5251_v57  ;;  %v2488_v57 = vrot.slane %v2446_v52, %v7129_v33  ;;  %v2534_v52 = vld [vmem:[%s7007_s22 + $0xb0] sm:$0xff] }
 0x929   : > { %3345 = vmatpush2.bf16.msra.mxu0 %v5248_v36 }
 0x92a   : > { %3388 = vmatpush2.bf16.msra.mxu1 %v5250_v24  ;;  %3346 = vmatprep.subr.bf16.mxu0 %v5241_v56 }
 0x92b   : > { %3389 = vmatprep.subr.bf16.mxu1 %v5243_v61  ;;  %v2499_v61 = vrot.slane %v2447_v1, %v7132_v34 }
 0x92d   : > { %3347 = vmatpush2.bf16.msra.mxu0 %v5240_v2 }
 0x92e   : > { %3390 = vmatpush2.bf16.msra.mxu1 %v5242_v3  ;;  %3348 = vmatprep.subr.bf16.mxu0 %v5233_v4 }
 0x92f   : > { %3391 = vmatprep.subr.bf16.mxu1 %v5235_v5 }
 0x996   : > { %v2450_v7 = vpop.xlane.xlu0 %2449 }
 0x997   : > { %v2454_v8 = vmul.f32 0.00390625, %v2450_v7  ;;  %v2588_v7 = vld [vmem:[%s7007_s22 + $0x260] sm:$0xff] }
 0x998   : > { %v5224_v19 = vcombine.low %v2584_v6, %v2588_v7 }
 0x999   : > { %v7358_v9 = vsub.f32 %v7309_v40, %v2454_v8  ;;  %v7361_v10 = vsub.f32 %v7311_v41, %v2454_v8  ;;  %v2585_v8 = vld [vmem:[%s7007_s22 + $0x248] sm:$0xff] }
 0x99a   : > { %v2453_v11 = vpop.xlane.xlu1 %2452 }
 0x99b   : > { %v2455_v12 = vmul.f32 0.00390625, %v2453_v11  ;;  %v2460_v13 = vmul.f32 %v7358_v9, %v7358_v9  ;;  %v2461_v14 = vmul.f32 %v7361_v10, %v7361_v10  ;;  %v2589_v11 = vld [vmem:[%s7007_s22 + $0x268] sm:$0xff] }
 0x99c   : > { %v5226_v20 = vcombine.low %v2585_v8, %v2589_v11 }
 0x99d   : > { %v7368_v51 = vsub.f32 %v7315_v49, %v2455_v12  ;;  %v7371_v54 = vsub.f32 %v7317_v48, %v2455_v12  ;;  %v2464_v53 = vadd.f32 %v2461_v14, %v2460_v13  ;;  %v5232_v12 = vcombine.low %v2592_v60, %v2596_v62 }
 0x99e   : > { %v5234_v13 = vcombine.low %v2593_v63, %v2597_v0  ;;  %v5225_v14 = vcombine.high %v2584_v6, %v2588_v7  ;;  %v2503_v60 = vrot.slane %v2447_v1, %v7129_v33  ;;  %v2562_v7 = vld [vmem:[%s7007_s22 + $0x190] sm:$0xff]  ;;  %v2535_v1 = vld [vmem:[%s7007_s22 + $0xb8] sm:$0xff] }
 0x99f   : > { %2465 = vadd.xlane.f32.xlu0 %v2464_v53  ;;  %v2462_v15 = vmul.f32 %v7368_v51, %v7368_v51  ;;  %v2463_v16 = vmul.f32 %v7371_v54, %v7371_v54  ;;  %v5227_v53 = vcombine.high %v2585_v8, %v2589_v11  ;;  %3349 = vmatpush2.bf16.msra.mxu0 %v5232_v12  ;;  %v2566_v8 = vld [vmem:[%s7007_s22 + $0x1b0] sm:$0xff]  ;;  %v2563_v11 = vld [vmem:[%s7007_s22 + $0x198] sm:$0xff] }
 0x9a0   : > { %3392 = vmatpush2.bf16.msra.mxu1 %v5234_v13  ;;  %3350 = vmatprep.subr.bf16.mxu0 %v5225_v14  ;;  %v2567_v12 = vld [vmem:[%s7007_s22 + $0x1b8] sm:$0xff]  ;;  %v2554_v14 = vld [vmem:[%s7007_s22 + $0x150] sm:$0xff] }
 0x9a1   : > { %v2467_v17 = vadd.f32 %v2463_v16, %v2462_v15  ;;  %v2576_v15 = vld [vmem:[%s7007_s22 + $0x200] sm:$0xff]  ;;  %3393 = vmatprep.subr.bf16.mxu1 %v5227_v53  ;;  %v5207_v53 = vcombine.high %v2563_v11, %v2567_v12 }
 0x9a2   : > { %v2580_v16 = vld [vmem:[%s7007_s22 + $0x220] sm:$0xff] }
 0x9a3   : > { %2468 = vadd.xlane.f32.xlu1 %v2467_v17  ;;  %v2577_v17 = vld [vmem:[%s7007_s22 + $0x208] sm:$0xff]  ;;  %v5217_v21 = vcombine.high %v2576_v15, %v2580_v16  ;;  %3351 = vmatpush2.bf16.msra.mxu0 %v5224_v19  ;;  %v5216_v23 = vcombine.low %v2576_v15, %v2580_v16  ;;  %v2558_v15 = vld [vmem:[%s7007_s22 + $0x170] sm:$0xff]  ;;  %v2555_v16 = vld [vmem:[%s7007_s22 + $0x158] sm:$0xff]  ;;  %v5206_v19 = vcombine.low %v2563_v11, %v2567_v12 }
 0x9a4   : > { %v5219_v22 = vcombine.high %v2577_v17, %v2581_v18  ;;  %3394 = vmatpush2.bf16.msra.mxu1 %v5226_v20  ;;  %v5218_v27 = vcombine.low %v2577_v17, %v2581_v18  ;;  %v2559_v17 = vld [vmem:[%s7007_s22 + $0x178] sm:$0xff]  ;;  %v5204_v18 = vcombine.low %v2562_v7, %v2566_v8  ;;  %v5197_v20 = vcombine.high %v2554_v14, %v2558_v15  ;;  %v2634_v12 = vld [vmem:[%s7007_s22 + $0x3d0] sm:$0xff] }
 0x9a5   : > { %3352 = vmatprep.subr.bf16.mxu0 %v5217_v21  ;;  %v5199_v21 = vcombine.high %v2555_v16, %v2559_v17  ;;  %v5196_v30 = vcombine.low %v2554_v14, %v2558_v15  ;;  %v5198_v31 = vcombine.low %v2555_v16, %v2559_v17  ;;  %v2635_v14 = vld [vmem:[%s7007_s22 + $0x3d8] sm:$0xff] }
 0x9a6   : > { %3395 = vmatprep.subr.bf16.mxu1 %v5219_v22  ;;  %v2546_v22 = vld [vmem:[%s7007_s22 + $0x110] sm:$0xff] }
 0x9a7   : > { %3353 = vmatpush2.bf16.msra.mxu0 %v5216_v23  ;;  %v2550_v23 = vld [vmem:[%s7007_s22 + $0x130] sm:$0xff] }
 0x9a8   : > { %3396 = vmatpush2.bf16.msra.mxu1 %v5218_v27  ;;  %3408 = vmatprep.subr.bf16.mxu0 %v5213_v35  ;;  %v2547_v27 = vld [vmem:[%s7007_s22 + $0x118] sm:$0xff]  ;;  %v5189_v35 = vcombine.high %v2546_v22, %v2550_v23 }
 0x9a9   : > { %3451 = vmatprep.subr.bf16.mxu1 %v5215_v43  ;;  %v5191_v37 = vcombine.high %v2547_v27, %v2551_v28  ;;  %v2539_v43 = vld [vmem:[%s7007_s22 + $0xd8] sm:$0xff] }
 0xa28   : > { %v2466_v44 = vpop.xlane.xlu0 %2465 }
 0xa29   : > { %v2470_v45 = vmul.f32 0.00390625, %v2466_v44  ;;  %v2543_v44 = vld [vmem:[%s7007_s22 + $0xf8] sm:$0xff] }
 0xa2b   : > { %v2472_v26 = vadd.f32 1e-05, %v2470_v45  ;;  %v5188_v45 = vcombine.low %v2546_v22, %v2550_v23 }
 0xa2c   : > { %v2469_v46 = vpop.xlane.xlu1 %2468 }
 0xa2d   : > { %6022 = vrsqrt.f32 %v2472_v26  ;;  %v2471_v36 = vmul.f32 0.00390625, %v2469_v46  ;;  %v5190_v26 = vcombine.low %v2547_v27, %v2551_v28 }
 0xa2f   : > { %v2473_v38 = vadd.f32 1e-05, %v2471_v36  ;;  %v5183_v36 = vcombine.high %v2539_v43, %v2543_v44 }
 0xa31   : > { %6024 = vrsqrt.f32 %v2473_v38  ;;  %v2530_v38 = vld [vmem:[%s7007_s22 + $0x90] sm:$0xff] }
 0xa3a   : > { %v6023_v47 = vpop.eup %6022 }
 0xa3b   : > { %v2477_v24 = vmul.f32 %v6023_v47, %v7361_v10  ;;  %v2476_v56 = vmul.f32 %v6023_v47, %v7358_v9  ;;  %v2531_v47 = vld [vmem:[%s7007_s22 + $0x98] sm:$0xff] }
 0xa3d   : > { %v2492_v63 = vmul.f32 %v2488_v57, %v2477_v24  ;;  %v2491_v0 = vmul.f32 %v2484_v58, %v2476_v56  ;;  %v5173_v56 = vcombine.high %v2530_v38, %v2534_v52 }
 0xa3e   : > { %v6025_v59 = vpop.eup %6024 }
 0xa3f   : > { %v2479_v62 = vmul.f32 %v6025_v59, %v7371_v54  ;;  %v2478_v10 = vmul.f32 %v6025_v59, %v7368_v51  ;;  %v2507_v9 = vadd.f32 %v2503_v60, %v2492_v63  ;;  %v2506_v5 = vadd.f32 %v2499_v61, %v2491_v0  ;;  %v2522_v59 = vld [vmem:[%s7007_s22 + $0x50] sm:$0xff] }
 0xa40   : > { %v5205_v51 = vcombine.high %v2562_v7, %v2566_v8  ;;  %v5172_v63 = vcombine.low %v2530_v38, %v2534_v52 }
 0xa41   : > { %v2494_v2 = vmul.f32 %v2488_v57, %v2479_v62  ;;  %v2493_v3 = vmul.f32 %v2484_v58, %v2478_v10  ;;  %v5182_v57 = vcombine.low %v2539_v43, %v2543_v44  ;;  %v5175_v58 = vcombine.high %v2531_v47, %v2535_v1  ;;  %v2527_v62 = vld [vmem:[%s7007_s22 + $0x78] sm:$0xff] }
 0xa42   : > { %v5174_v10 = vcombine.low %v2531_v47, %v2535_v1 }
 0xa43   : > { %v2509_v4 = vadd.f32 %v2503_v60, %v2494_v2  ;;  %v2508_v6 = vadd.f32 %v2499_v61, %v2493_v3  ;;  %v2526_v60 = vld [vmem:[%s7007_s22 + $0x70] sm:$0xff]  ;;  %v2523_v61 = vld [vmem:[%s7007_s22 + $0x58] sm:$0xff] }
 0xa44   : > { %v5165_v0 = vcombine.high %v2522_v59, %v2526_v60  ;;  %v5167_v2 = vcombine.high %v2523_v61, %v2527_v62  ;;  %v2514_v3 = vld [vmem:[%s7007_s22 + $0x10] sm:$0xff]  ;;  %v5166_v7 = vcombine.low %v2523_v61, %v2527_v62 }
 0xa45   : > { %v2511_v13 = vpack.c.bf16 %v2509_v4, %v2507_v9  ;;  %v7425_v54 = vpack.c.bf16 %v2508_v6, %v2506_v5  ;;  %v2518_v9 = vld [vmem:[%s7007_s22 + $0x30] sm:$0xff]  ;;  %v2515_v4 = vld [vmem:[%s7007_s22 + $0x18] sm:$0xff]  ;;  %v5164_v6 = vcombine.low %v2522_v59, %v2526_v60 }
 0xa46   : > { %v2519_v5 = vld [vmem:[%s7007_s22 + $0x38] sm:$0xff]  ;;  %v5157_v8 = vcombine.high %v2514_v3, %v2518_v9 }
 0xa47   : > { %3354 = vmatprep.mubr.bf16.mxu0 %v2511_v13  ;;  %3397 = vmatprep.mubr.bf16.mxu1 %v2511_v13  ;;  %v5159_v11 = vcombine.high %v2515_v4, %v2519_v5  ;;  %v5158_v15 = vcombine.low %v2515_v4, %v2519_v5 }
 0xa48   : > { %3355 = vmatmul.mubr.bf16.vlgmr.msra.gmra.mxu0 %v7425_v54  ;;  %3398 = vmatmul.mubr.bf16.vlgmr.msra.gmra.mxu1 %v7425_v54 }
 0xa49   : > { %3409 = vmatpush1.bf16.msra.mxu0 %v5212_v39  ;;  %3452 = vmatpush1.bf16.msra.mxu1 %v5214_v42  ;;  %v2538_v39 = vld [vmem:[%s7007_s22 + $0xd0] sm:$0xff] }
 0xa4a   : > { %3440 = vmatprep.mubr.bf16.mxu0 %v2511_v13  ;;  %3483 = vmatprep.mubr.bf16.mxu1 %v2511_v13  ;;  %v2542_v42 = vld [vmem:[%s7007_s22 + $0xf0] sm:$0xff] }
 0xa4b   : > { %3410 = vmatprep.subr.bf16.mxu0 %v5205_v51  ;;  %3453 = vmatprep.subr.bf16.mxu1 %v5207_v53  ;;  %v5181_v46 = vcombine.high %v2538_v39, %v2542_v42  ;;  %v5180_v24 = vcombine.low %v2538_v39, %v2542_v42  ;;  %v2638_v13 = vld [vmem:[%s7007_s22 + $0x3f0] sm:$0xff]  ;;  %v2639_v51 = vld [vmem:[%s7007_s22 + $0x3f8] sm:$0xff]  ;;  %v5156_v53 = vcombine.low %v2514_v3, %v2518_v9 }
 0xa4c   : > { %v5277_v16 = vcombine.high %v2634_v12, %v2638_v13  ;;  %v5279_v17 = vcombine.high %v2635_v14, %v2639_v51  ;;  %v5276_v22 = vcombine.low %v2634_v12, %v2638_v13  ;;  %v5278_v23 = vcombine.low %v2635_v14, %v2639_v51 }
 0xa4d   : > { %3411 = vmatpush1.bf16.msra.mxu0 %v5204_v18  ;;  %3454 = vmatpush1.bf16.msra.mxu1 %v5206_v19  ;;  %v2626_v18 = vld [vmem:[%s7007_s22 + $0x390] sm:$0xff] }
 0xa4e   : > { %3412 = vmatprep.subr.bf16.mxu0 %v5197_v20  ;;  %3455 = vmatprep.subr.bf16.mxu1 %v5199_v21  ;;  %v2630_v19 = vld [vmem:[%s7007_s22 + $0x3b0] sm:$0xff]  ;;  %v2627_v20 = vld [vmem:[%s7007_s22 + $0x398] sm:$0xff] }
 0xa4f   : > { %v2631_v21 = vld [vmem:[%s7007_s22 + $0x3b8] sm:$0xff]  ;;  %v5269_v27 = vcombine.high %v2626_v18, %v2630_v19  ;;  %v5268_v39 = vcombine.low %v2626_v18, %v2630_v19 }
 0xa50   : > { %v5271_v28 = vcombine.high %v2627_v20, %v2631_v21  ;;  %v5270_v42 = vcombine.low %v2627_v20, %v2631_v21 }
 0xa51   : > { %3413 = vmatpush1.bf16.msra.mxu0 %v5196_v30  ;;  %3456 = vmatpush1.bf16.msra.mxu1 %v5198_v31  ;;  %v2618_v30 = vld [vmem:[%s7007_s22 + $0x350] sm:$0xff] }
 0xa52   : > { %3414 = vmatprep.subr.bf16.mxu0 %v5189_v35  ;;  %3457 = vmatprep.subr.bf16.mxu1 %v5191_v37  ;;  %v2622_v31 = vld [vmem:[%s7007_s22 + $0x370] sm:$0xff]  ;;  %v2619_v35 = vld [vmem:[%s7007_s22 + $0x358] sm:$0xff] }
 0xa53   : > { %v2623_v37 = vld [vmem:[%s7007_s22 + $0x378] sm:$0xff]  ;;  %v5261_v43 = vcombine.high %v2618_v30, %v2622_v31  ;;  %v5260_v38 = vcombine.low %v2618_v30, %v2622_v31 }
 0xa54   : > { %v5263_v44 = vcombine.high %v2619_v35, %v2623_v37  ;;  %v5262_v52 = vcombine.low %v2619_v35, %v2623_v37  ;;  %v5810_v30 = vld [vmem:[%s7025_s9 + $0x70] ss:$8 sps:$4 sm:$0xff]   ;;  %v5818_v35 = vld [vmem:[%s7025_s9 + $0x64] ss:$8 sps:$4 sm:$0xff]  }
 0xa55   : > { %3415 = vmatpush1.bf16.msra.mxu0 %v5188_v45  ;;  %3458 = vmatpush1.bf16.msra.mxu1 %v5190_v26  ;;  %v2610_v45 = vld [vmem:[%s7007_s22 + $0x310] sm:$0xff]  ;;  %v5821_v37 = vld [vmem:[%s7025_s9 + $0x164] ss:$8 sps:$4 sm:$0xff]  }
 0xa56   : > { %3416 = vmatprep.subr.bf16.mxu0 %v5181_v46  ;;  %3459 = vmatprep.subr.bf16.mxu1 %v5183_v36  ;;  %v2614_v26 = vld [vmem:[%s7007_s22 + $0x330] sm:$0xff]  ;;  %v2611_v46 = vld [vmem:[%s7007_s22 + $0x318] sm:$0xff] }
 0xa57   : > { %v2615_v36 = vld [vmem:[%s7007_s22 + $0x338] sm:$0xff]  ;;  %v5253_v47 = vcombine.high %v2610_v45, %v2614_v26  ;;  %v5252_v59 = vcombine.low %v2610_v45, %v2614_v26 }
 0xa58   : > { %v5255_v1 = vcombine.high %v2611_v46, %v2615_v36  ;;  %v5254_v60 = vcombine.low %v2611_v46, %v2615_v36  ;;  %v5813_v31 = vld [vmem:[%s7025_s9 + $0x170] ss:$8 sps:$4 sm:$0xff]   ;;  %v5833_v46 = vld [vmem:[%s7025_s9 + $0x144] ss:$8 sps:$4 sm:$0xff]   ;;  %v5828_v36 = vld [vmem:[%s7025_s9 + $0x40] ss:$8 sps:$4 sm:$0xff]  }
 0xa59   : > { %3417 = vmatpush1.bf16.msra.mxu0 %v5180_v24  ;;  %3460 = vmatpush1.bf16.msra.mxu1 %v5182_v57  ;;  %v2602_v24 = vld [vmem:[%s7007_s22 + $0x2d0] sm:$0xff] }
 0xa5a   : > { %3418 = vmatprep.subr.bf16.mxu0 %v5173_v56  ;;  %3461 = vmatprep.subr.bf16.mxu1 %v5175_v58  ;;  %v2606_v57 = vld [vmem:[%s7007_s22 + $0x2f0] sm:$0xff]  ;;  %v2603_v56 = vld [vmem:[%s7007_s22 + $0x2d8] sm:$0xff] }
 0xa5b   : > { %v2607_v58 = vld [vmem:[%s7007_s22 + $0x2f8] sm:$0xff]  ;;  %v5245_v61 = vcombine.high %v2602_v24, %v2606_v57  ;;  %v5244_v3 = vcombine.low %v2602_v24, %v2606_v57  ;;  %v5842_v57 = vld [vmem:[%s7025_s9 + $0x24] ss:$8 sps:$4 sm:$0xff]  }
 0xa5c   : > { %v5247_v62 = vcombine.high %v2603_v56, %v2607_v58  ;;  %v5246_v9 = vcombine.low %v2603_v56, %v2607_v58  ;;  %v5822_v45 = vld [vmem:[%s7025_s9 + $0x50] ss:$8 sps:$4 sm:$0xff]   ;;  %v5845_v56 = vld [vmem:[%s7025_s9 + $0x124] ss:$8 sps:$4 sm:$0xff]   ;;  %v5840_v58 = vld [vmem:[%s7025_s9 + $0x20] ss:$8 sps:$4 sm:$0xff]  }
 0xa5d   : > { %3419 = vmatpush1.bf16.msra.mxu0 %v5172_v63  ;;  %3462 = vmatpush1.bf16.msra.mxu1 %v5174_v10  ;;  %v2594_v63 = vld [vmem:[%s7007_s22 + $0x290] sm:$0xff] }
 0xa5e   : > { %3420 = vmatprep.subr.bf16.mxu0 %v5165_v0  ;;  %3463 = vmatprep.subr.bf16.mxu1 %v5167_v2  ;;  %v2598_v10 = vld [vmem:[%s7007_s22 + $0x2b0] sm:$0xff]  ;;  %v2595_v0 = vld [vmem:[%s7007_s22 + $0x298] sm:$0xff] }
 0xa5f   : > { %v2599_v2 = vld [vmem:[%s7007_s22 + $0x2b8] sm:$0xff]  ;;  %v5237_v4 = vcombine.high %v2594_v63, %v2598_v10  ;;  %v5236_v12 = vcombine.low %v2594_v63, %v2598_v10  ;;  %v5854_v10 = vld [vmem:[%s7025_s9 + $0x4] ss:$8 sps:$4 sm:$0xff]  }
 0xa60   : > { %v5239_v5 = vcombine.high %v2595_v0, %v2599_v2  ;;  %v5238_v13 = vcombine.low %v2595_v0, %v2599_v2  ;;  %v5825_v26 = vld [vmem:[%s7025_s9 + $0x150] ss:$8 sps:$4 sm:$0xff]   ;;  %v5857_v0 = vld [vmem:[%s7025_s9 + $0x104] ss:$8 sps:$4 sm:$0xff]   ;;  %v5852_v2 = vld [vmem:[%s7025_s9] ss:$8 sps:$4 sm:$0xff]  }
 0xa61   : > { %3421 = vmatpush1.bf16.msra.mxu0 %v5164_v6  ;;  %3464 = vmatpush1.bf16.msra.mxu1 %v5166_v7  ;;  %v2586_v6 = vld [vmem:[%s7007_s22 + $0x250] sm:$0xff] }
 0xa62   : > { %3422 = vmatprep.subr.bf16.mxu0 %v5157_v8  ;;  %3465 = vmatprep.subr.bf16.mxu1 %v5159_v11  ;;  %v2590_v7 = vld [vmem:[%s7007_s22 + $0x270] sm:$0xff]  ;;  %v2587_v8 = vld [vmem:[%s7007_s22 + $0x258] sm:$0xff] }
 0xa63   : > { %v2591_v11 = vld [vmem:[%s7007_s22 + $0x278] sm:$0xff]  ;;  %v5229_v14 = vcombine.high %v2586_v6, %v2590_v7  ;;  %v5228_v18 = vcombine.low %v2586_v6, %v2590_v7  ;;  %v5866_v7 = vld [vmem:[%s7025_s9 + $0xe4] ss:$8 sps:$4 sm:$0xff]  }
 0xa64   : > { %v5231_v51 = vcombine.high %v2587_v8, %v2591_v11  ;;  %v5230_v19 = vcombine.low %v2587_v8, %v2591_v11  ;;  %v5837_v24 = vld [vmem:[%s7025_s9 + $0x130] ss:$8 sps:$4 sm:$0xff]   ;;  %v5869_v8 = vld [vmem:[%s7025_s9 + $0x1e4] ss:$8 sps:$4 sm:$0xff]   ;;  %v5864_v11 = vld [vmem:[%s7025_s9 + $0xe0] ss:$8 sps:$4 sm:$0xff]  }
 0xa65   : > { %3423 = vmatpush1.bf16.msra.mxu0 %v5156_v53  ;;  %3466 = vmatpush1.bf16.msra.mxu1 %v5158_v15  ;;  %v2578_v53 = vld [vmem:[%s7007_s22 + $0x210] sm:$0xff] }
 0xa66   : > { %3424 = vmatprep.subr.bf16.mxu0 %v5277_v16  ;;  %3467 = vmatprep.subr.bf16.mxu1 %v5279_v17  ;;  %v2582_v15 = vld [vmem:[%s7007_s22 + $0x230] sm:$0xff]  ;;  %v2579_v16 = vld [vmem:[%s7007_s22 + $0x218] sm:$0xff] }
 0xa67   : > { %v2583_v17 = vld [vmem:[%s7007_s22 + $0x238] sm:$0xff]  ;;  %v5221_v20 = vcombine.high %v2578_v53, %v2582_v15 }
 0xa68   : > { %v5223_v21 = vcombine.high %v2579_v16, %v2583_v17  ;;  %v5849_v63 = vld [vmem:[%s7025_s9 + $0x110] ss:$8 sps:$4 sm:$0xff]  }
 0xa69   : > { %3425 = vmatpush2.bf16.msra.mxu0 %v5276_v22  ;;  %3468 = vmatpush2.bf16.msra.mxu1 %v5278_v23  ;;  %v5220_v22 = vcombine.low %v2578_v53, %v2582_v15  ;;  %v5222_v23 = vcombine.low %v2579_v16, %v2583_v17  ;;  %v5861_v6 = vld [vmem:[%s7025_s9 + $0x1f0] ss:$8 sps:$4 sm:$0xff]   ;;  %v5878_v15 = vld [vmem:[%s7025_s9 + $0xc4] ss:$8 sps:$4 sm:$0xff]   ;;  %v5876_v17 = vld [vmem:[%s7025_s9 + $0xc0] ss:$8 sps:$4 sm:$0xff]  }
 0xa6a   : > { %3426 = vmatprep.subr.bf16.mxu0 %v5269_v27  ;;  %3469 = vmatprep.subr.bf16.mxu1 %v5271_v28  ;;  %v5812_v27 = vld [vmem:[%s7025_s9 + $0x74] ss:$8 sps:$4 sm:$0xff]   ;;  %v5873_v53 = vld [vmem:[%s7025_s9 + $0x1d0] ss:$8 sps:$4 sm:$0xff]   ;;  %v5881_v16 = vld [vmem:[%s7025_s9 + $0x1c4] ss:$8 sps:$4 sm:$0xff]  }
 0xa6b   : > { %v5815_v28 = vld [vmem:[%s7025_s9 + $0x174] ss:$8 sps:$4 sm:$0xff]  }
 0xa6d   : > { %3427 = vmatpush2.bf16.msra.mxu0 %v5268_v39  ;;  %3470 = vmatpush2.bf16.msra.mxu1 %v5270_v42  ;;  %v5816_v39 = vld [vmem:[%s7025_s9 + $0x60] ss:$8 sps:$4 sm:$0xff]  }
 0xa6e   : > { %3428 = vmatprep.subr.bf16.mxu0 %v5261_v43  ;;  %3471 = vmatprep.subr.bf16.mxu1 %v5263_v44  ;;  %v5819_v42 = vld [vmem:[%s7025_s9 + $0x160] ss:$8 sps:$4 sm:$0xff]   ;;  %v5824_v43 = vld [vmem:[%s7025_s9 + $0x54] ss:$8 sps:$4 sm:$0xff]  }
 0xa6f   : > { %v5827_v44 = vld [vmem:[%s7025_s9 + $0x154] ss:$8 sps:$4 sm:$0xff]  }
 0xa71   : > { %3429 = vmatpush2.bf16.msra.mxu0 %v5260_v38  ;;  %3472 = vmatpush2.bf16.msra.mxu1 %v5262_v52  ;;  %v5831_v38 = vld [vmem:[%s7025_s9 + $0x140] ss:$8 sps:$4 sm:$0xff]   ;;  %v5836_v52 = vld [vmem:[%s7025_s9 + $0x34] ss:$8 sps:$4 sm:$0xff]  }
 0xa72   : > { %3430 = vmatprep.subr.bf16.mxu0 %v5253_v47  ;;  %3473 = vmatprep.subr.bf16.mxu1 %v5255_v1  ;;  %v5839_v47 = vld [vmem:[%s7025_s9 + $0x134] ss:$8 sps:$4 sm:$0xff]   ;;  %v5834_v1 = vld [vmem:[%s7025_s9 + $0x30] ss:$8 sps:$4 sm:$0xff]  }
 0xa75   : > { %3431 = vmatpush2.bf16.msra.mxu0 %v5252_v59  ;;  %3474 = vmatpush2.bf16.msra.mxu1 %v5254_v60  ;;  %v5843_v59 = vld [vmem:[%s7025_s9 + $0x120] ss:$8 sps:$4 sm:$0xff]   ;;  %v5848_v60 = vld [vmem:[%s7025_s9 + $0x14] ss:$8 sps:$4 sm:$0xff]  }
 0xa76   : > { %3432 = vmatprep.subr.bf16.mxu0 %v5245_v61  ;;  %3475 = vmatprep.subr.bf16.mxu1 %v5247_v62  ;;  %v5851_v61 = vld [vmem:[%s7025_s9 + $0x114] ss:$8 sps:$4 sm:$0xff]   ;;  %v5846_v62 = vld [vmem:[%s7025_s9 + $0x10] ss:$8 sps:$4 sm:$0xff]  }
 0xa79   : > { %3433 = vmatpush2.bf16.msra.mxu0 %v5244_v3  ;;  %3476 = vmatpush2.bf16.msra.mxu1 %v5246_v9  ;;  %v5855_v3 = vld [vmem:[%s7025_s9 + $0x100] ss:$8 sps:$4 sm:$0xff]   ;;  %v5860_v9 = vld [vmem:[%s7025_s9 + $0xf4] ss:$8 sps:$4 sm:$0xff]  }
 0xa7a   : > { %3434 = vmatprep.subr.bf16.mxu0 %v5237_v4  ;;  %3477 = vmatprep.subr.bf16.mxu1 %v5239_v5  ;;  %v5863_v4 = vld [vmem:[%s7025_s9 + $0x1f4] ss:$8 sps:$4 sm:$0xff]   ;;  %v5858_v5 = vld [vmem:[%s7025_s9 + $0xf0] ss:$8 sps:$4 sm:$0xff]  }
 0xa7d   : > { %3435 = vmatpush2.bf16.msra.mxu0 %v5236_v12  ;;  %3478 = vmatpush2.bf16.msra.mxu1 %v5238_v13  ;;  %v5867_v12 = vld [vmem:[%s7025_s9 + $0x1e0] ss:$8 sps:$4 sm:$0xff]   ;;  %v5872_v13 = vld [vmem:[%s7025_s9 + $0xd4] ss:$8 sps:$4 sm:$0xff]  }
 0xa7e   : > { %3436 = vmatprep.subr.bf16.mxu0 %v5229_v14  ;;  %3479 = vmatprep.subr.bf16.mxu1 %v5231_v51  ;;  %v5875_v14 = vld [vmem:[%s7025_s9 + $0x1d4] ss:$8 sps:$4 sm:$0xff]   ;;  %v5870_v51 = vld [vmem:[%s7025_s9 + $0xd0] ss:$8 sps:$4 sm:$0xff]  }
 0xa81   : > { %3437 = vmatpush2.bf16.msra.mxu0 %v5228_v18  ;;  %3480 = vmatpush2.bf16.msra.mxu1 %v5230_v19  ;;  %v5879_v18 = vld [vmem:[%s7025_s9 + $0x1c0] ss:$8 sps:$4 sm:$0xff]   ;;  %v5884_v19 = vld [vmem:[%s7025_s9 + $0xb4] ss:$8 sps:$4 sm:$0xff]  }
 0xa82   : > { %3438 = vmatprep.subr.bf16.mxu0 %v5221_v20  ;;  %3481 = vmatprep.subr.bf16.mxu1 %v5223_v21  ;;  %v5887_v20 = vld [vmem:[%s7025_s9 + $0x1b4] ss:$8 sps:$4 sm:$0xff]   ;;  %v5882_v21 = vld [vmem:[%s7025_s9 + $0xb0] ss:$8 sps:$4 sm:$0xff]  }
 0xa85   : > { %3439 = vmatpush2.bf16.msra.mxu0 %v5220_v22  ;;  %3482 = vmatpush2.bf16.msra.mxu1 %v5222_v23  ;;  %v5885_v22 = vld [vmem:[%s7025_s9 + $0x1b0] ss:$8 sps:$4 sm:$0xff]   ;;  %v5890_v23 = vld [vmem:[%s7025_s9 + $0xa4] ss:$8 sps:$4 sm:$0xff]  }
 0xa86   : > { %4426 = vmatprep.subr.bf16.mxu0 %v5812_v27  ;;  %4469 = vmatprep.subr.bf16.mxu1 %v5815_v28  ;;  %v5893_v27 = vld [vmem:[%s7025_s9 + $0x1a4] ss:$8 sps:$4 sm:$0xff]   ;;  %v5888_v28 = vld [vmem:[%s7025_s9 + $0xa0] ss:$8 sps:$4 sm:$0xff]  }
 0xa88   : > { %3441 = vmatmul.mubr.bf16.vlgmr.msra.gmra.mxu0 %v7425_v54  ;;  %3484 = vmatmul.mubr.bf16.vlgmr.msra.gmra.mxu1 %v7425_v54  ;;  %v5830_v54 = vld [vmem:[%s7025_s9 + $0x44] ss:$8 sps:$4 sm:$0xff]  }
 0xa89   : > { %4427 = vmatpush1.bf16.msra.mxu0 %v5810_v30  ;;  %4470 = vmatpush1.bf16.msra.mxu1 %v5813_v31  ;;  %v5891_v30 = vld [vmem:[%s7025_s9 + $0x1a0] ss:$8 sps:$4 sm:$0xff]   ;;  %v5896_v31 = vld [vmem:[%s7025_s9 + $0x94] ss:$8 sps:$4 sm:$0xff]  }
 0xa8a   : > { %4428 = vmatprep.subr.bf16.mxu0 %v5818_v35  ;;  %4471 = vmatprep.subr.bf16.mxu1 %v5821_v37  ;;  %v5899_v35 = vld [vmem:[%s7025_s9 + $0x194] ss:$8 sps:$4 sm:$0xff]   ;;  %v5894_v37 = vld [vmem:[%s7025_s9 + $0x90] ss:$8 sps:$4 sm:$0xff]  }
 0xa8d   : > { %4429 = vmatpush1.bf16.msra.mxu0 %v5816_v39  ;;  %4472 = vmatpush1.bf16.msra.mxu1 %v5819_v42  ;;  %v5897_v39 = vld [vmem:[%s7025_s9 + $0x190] ss:$8 sps:$4 sm:$0xff]   ;;  %v5902_v42 = vld [vmem:[%s7025_s9 + $0x84] ss:$8 sps:$4 sm:$0xff]  }
 0xa8e   : > { %4430 = vmatprep.subr.bf16.mxu0 %v5824_v43  ;;  %4473 = vmatprep.subr.bf16.mxu1 %v5827_v44  ;;  %v5905_v43 = vld [vmem:[%s7025_s9 + $0x184] ss:$8 sps:$4 sm:$0xff]   ;;  %v5900_v44 = vld [vmem:[%s7025_s9 + $0x80] ss:$8 sps:$4 sm:$0xff]  }
 0xa91   : > { %4431 = vmatpush1.bf16.msra.mxu0 %v5822_v45  ;;  %4474 = vmatpush1.bf16.msra.mxu1 %v5825_v26  ;;  %v5903_v45 = vld [vmem:[%s7025_s9 + $0x180] ss:$8 sps:$4 sm:$0xff]   ;;  %v5908_v26 = vld [vmem:[%s7025_s9 + $0x274] ss:$8 sps:$4 sm:$0xff]  }
 0xa92   : > { %4432 = vmatprep.subr.bf16.mxu0 %v5830_v54  ;;  %4475 = vmatprep.subr.bf16.mxu1 %v5833_v46  ;;  %v5911_v54 = vld [vmem:[%s7025_s9 + $0x374] ss:$8 sps:$4 sm:$0xff]   ;;  %v7554_v46 = vld [vmem:[%s7018_s16] sm:$0xff] }
 0xa95   : > { %4433 = vmatpush1.bf16.msra.mxu0 %v5828_v36  ;;  %4476 = vmatpush1.bf16.msra.mxu1 %v5831_v38  ;;  %v2645_v36 = vrot.slane %v7554_v46, %v7132_v34  ;;  %v2653_v38 = vrot.slane %v7554_v46, %v1075_v25 }
 0xa96   : > { %4434 = vmatprep.subr.bf16.mxu0 %v5836_v52  ;;  %4477 = vmatprep.subr.bf16.mxu1 %v5839_v47  ;;  %v2649_v52 = vrot.slane %v7554_v46, %v7129_v33  ;;  %v2657_v47 = vrot.slane %v7554_v46, %v1079_v29 }
 0xa99   : > { %4435 = vmatpush1.bf16.msra.mxu0 %v5834_v1  ;;  %4478 = vmatpush1.bf16.msra.mxu1 %v5837_v24 }
 0xa9a   : > { %4436 = vmatprep.subr.bf16.mxu0 %v5842_v57  ;;  %4479 = vmatprep.subr.bf16.mxu1 %v5845_v56 }
 0xa9d   : > { %4437 = vmatpush1.bf16.msra.mxu0 %v5840_v58  ;;  %4480 = vmatpush1.bf16.msra.mxu1 %v5843_v59 }
 0xa9e   : > { %4438 = vmatprep.subr.bf16.mxu0 %v5848_v60  ;;  %4481 = vmatprep.subr.bf16.mxu1 %v5851_v61 }
 0xaa1   : > { %4439 = vmatpush1.bf16.msra.mxu0 %v5846_v62  ;;  %4482 = vmatpush1.bf16.msra.mxu1 %v5849_v63 }
 0xaa2   : > { %4440 = vmatprep.subr.bf16.mxu0 %v5854_v10  ;;  %4483 = vmatprep.subr.bf16.mxu1 %v5857_v0 }
 0xaa5   : > { %4441 = vmatpush1.bf16.msra.mxu0 %v5852_v2  ;;  %4484 = vmatpush1.bf16.msra.mxu1 %v5855_v3 }
 0xaa6   : > { %4442 = vmatprep.subr.bf16.mxu0 %v5860_v9  ;;  %4485 = vmatprep.subr.bf16.mxu1 %v5863_v4 }
 0xaa9   : > { %4443 = vmatpush2.bf16.msra.mxu0 %v5858_v5  ;;  %4486 = vmatpush2.bf16.msra.mxu1 %v5861_v6 }
 0xaaa   : > { %4444 = vmatprep.subr.bf16.mxu0 %v5866_v7  ;;  %4487 = vmatprep.subr.bf16.mxu1 %v5869_v8 }
 0xaad   : > { %4445 = vmatpush2.bf16.msra.mxu0 %v5864_v11  ;;  %4488 = vmatpush2.bf16.msra.mxu1 %v5867_v12 }
 0xaae   : > { %4446 = vmatprep.subr.bf16.mxu0 %v5872_v13  ;;  %4489 = vmatprep.subr.bf16.mxu1 %v5875_v14 }
 0xab1   : > { %4447 = vmatpush2.bf16.msra.mxu0 %v5870_v51  ;;  %4490 = vmatpush2.bf16.msra.mxu1 %v5873_v53 }
 0xab2   : > { %4448 = vmatprep.subr.bf16.mxu0 %v5878_v15  ;;  %4491 = vmatprep.subr.bf16.mxu1 %v5881_v16 }
 0xab5   : > { %4449 = vmatpush2.bf16.msra.mxu0 %v5876_v17  ;;  %4492 = vmatpush2.bf16.msra.mxu1 %v5879_v18 }
 0xab6   : > { %4450 = vmatprep.subr.bf16.mxu0 %v5884_v19  ;;  %4493 = vmatprep.subr.bf16.mxu1 %v5887_v20 }
 0xab9   : > { %4451 = vmatpush2.bf16.msra.mxu0 %v5882_v21  ;;  %4494 = vmatpush2.bf16.msra.mxu1 %v5885_v22 }
 0xaba   : > { %4452 = vmatprep.subr.bf16.mxu0 %v5890_v23  ;;  %4495 = vmatprep.subr.bf16.mxu1 %v5893_v27 }
 0xabd   : > { %4453 = vmatpush2.bf16.msra.mxu0 %v5888_v28  ;;  %4496 = vmatpush2.bf16.msra.mxu1 %v5891_v30 }
 0xabe   : > { %4454 = vmatprep.subr.bf16.mxu0 %v5896_v31  ;;  %4497 = vmatprep.subr.bf16.mxu1 %v5899_v35 }
 0xac1   : > { %4455 = vmatpush2.bf16.msra.mxu0 %v5894_v37  ;;  %4498 = vmatpush2.bf16.msra.mxu1 %v5897_v39 }
 0xac2   : > { %4456 = vmatprep.subr.bf16.mxu0 %v5902_v42  ;;  %4499 = vmatprep.subr.bf16.mxu1 %v5905_v43 }
 0xac5   : > { %4457 = vmatpush2.bf16.msra.mxu0 %v5900_v44  ;;  %4500 = vmatpush2.bf16.msra.mxu1 %v5903_v45 }
 0xac6   : > { %4512 = vmatprep.subr.bf16.mxu0 %v5908_v26  ;;  %4555 = vmatprep.subr.bf16.mxu1 %v5911_v54 }
 0xb08   : > { %v3356_v1 = vpop.f32.mrf.mxu0  ;;  %v3399_v24 = vpop.f32.mrf.mxu1 }
 0xb09   : > { %v7566_v57 = vadd.f32 %v3356_v1, %v2645_v36  ;;  %v7568_v56 = vadd.f32 %v3399_v24, %v2653_v38 }
 0xb0a   : > { %v3358_v58 = vpop.f32.mrf.mxu0  ;;  %v3401_v59 = vpop.f32.mrf.mxu1 }
 0xb0b   : > { %v3494_v60 = vmul.f32 %v7566_v57, %v7566_v57  ;;  %v3496_v25 = vmul.f32 %v7568_v56, %v7568_v56  ;;  %v7574_v61 = vadd.f32 %v3358_v58, %v2649_v52  ;;  %v7576_v62 = vadd.f32 %v3401_v59, %v2657_v47 }
 0xb0c   : > { %v3360_v63 = vpop.f32.mrf.mxu0  ;;  %v3403_v29 = vpop.f32.mrf.mxu1 }
 0xb0d   : > { %v3510_v10 = vmul.f32 %v3494_v60, %v7566_v57  ;;  %v3512_v0 = vmul.f32 %v3496_v25, %v7568_v56  ;;  %v3495_v2 = vmul.f32 %v7574_v61, %v7574_v61  ;;  %v3497_v3 = vmul.f32 %v7576_v62, %v7576_v62 }
 0xb0e   : > { %v7584_v9 = vadd.f32 %v3360_v63, %v2645_v36  ;;  %v7586_v4 = vadd.f32 %v3403_v29, %v2653_v38  ;;  %v3362_v5 = vpop.f32.mrf.mxu0  ;;  %v3405_v6 = vpop.f32.mrf.mxu1 }
 0xb0f   : > { %v3526_v7 = vmul.f32 0.044715, %v3510_v10  ;;  %v3528_v8 = vmul.f32 0.044715, %v3512_v0  ;;  %v3511_v11 = vmul.f32 %v3495_v2, %v7574_v61  ;;  %v3513_v12 = vmul.f32 %v3497_v3, %v7576_v62 }
 0xb10   : > { %v3502_v13 = vmul.f32 %v7584_v9, %v7584_v9  ;;  %v3504_v14 = vmul.f32 %v7586_v4, %v7586_v4  ;;  %v7594_v51 = vadd.f32 %v3362_v5, %v2649_v52  ;;  %v7596_v53 = vadd.f32 %v3405_v6, %v2657_v47 }
 0xb11   : > { %v3542_v15 = vadd.f32 %v3526_v7, %v7566_v57  ;;  %v3544_v16 = vadd.f32 %v3528_v8, %v7568_v56  ;;  %v3527_v17 = vmul.f32 0.044715, %v3511_v11  ;;  %v3529_v18 = vmul.f32 0.044715, %v3513_v12 }
 0xb12   : > { %v3518_v19 = vmul.f32 %v3502_v13, %v7584_v9  ;;  %v3520_v20 = vmul.f32 %v3504_v14, %v7586_v4  ;;  %v3503_v21 = vmul.f32 %v7594_v51, %v7594_v51  ;;  %v3505_v22 = vmul.f32 %v7596_v53, %v7596_v53 }
 0xb13   : > { %v3558_v23 = vmul.f32 0.7978846, %v3542_v15  ;;  %v3560_v27 = vmul.f32 0.7978846, %v3544_v16  ;;  %v3543_v28 = vadd.f32 %v3527_v17, %v7574_v61  ;;  %v3545_v30 = vadd.f32 %v3529_v18, %v7576_v62 }
 0xb14   : > { %v3534_v31 = vmul.f32 0.044715, %v3518_v19  ;;  %v3536_v35 = vmul.f32 0.044715, %v3520_v20  ;;  %v3519_v37 = vmul.f32 %v3503_v21, %v7594_v51  ;;  %v3521_v39 = vmul.f32 %v3505_v22, %v7596_v53 }
 0xb15   : > { %6026 = vtanh.f32 %v3558_v23  ;;  %v3559_v42 = vmul.f32 0.7978846, %v3543_v28  ;;  %v3561_v43 = vmul.f32 0.7978846, %v3545_v30 }
 0xb16   : > { %6028 = vtanh.f32 %v3560_v27  ;;  %v3550_v44 = vadd.f32 %v3534_v31, %v7584_v9  ;;  %v3552_v45 = vadd.f32 %v3536_v35, %v7586_v4  ;;  %v3535_v26 = vmul.f32 0.044715, %v3519_v37 }
 0xb17   : > { %6030 = vtanh.f32 %v3559_v42  ;;  %v3537_v54 = vmul.f32 0.044715, %v3521_v39  ;;  %v5909_v42 = vld [vmem:[%s7025_s9 + $0x370] ss:$8 sps:$4 sm:$0xff]  }
 0xb18   : > { %6032 = vtanh.f32 %v3561_v43  ;;  %v3566_v36 = vmul.f32 0.7978846, %v3550_v44  ;;  %v3568_v38 = vmul.f32 0.7978846, %v3552_v45  ;;  %v3551_v52 = vadd.f32 %v3535_v26, %v7594_v51  ;;  %v5923_v43 = vld [vmem:[%s7025_s9 + $0x354] ss:$8 sps:$4 sm:$0xff]  }
 0xb19   : > { %v3553_v47 = vadd.f32 %v3537_v54, %v7596_v53  ;;  %v5918_v44 = vld [vmem:[%s7025_s9 + $0x250] ss:$8 sps:$4 sm:$0xff]   ;;  %v5926_v26 = vld [vmem:[%s7025_s9 + $0x244] ss:$8 sps:$4 sm:$0xff]  }
 0xb1a   : > { %6034 = vtanh.f32 %v3566_v36  ;;  %v3567_v1 = vmul.f32 0.7978846, %v3551_v52  ;;  %v5921_v45 = vld [vmem:[%s7025_s9 + $0x350] ss:$8 sps:$4 sm:$0xff]   ;;  %v5929_v54 = vld [vmem:[%s7025_s9 + $0x344] ss:$8 sps:$4 sm:$0xff]  }
 0xb1b   : > { %6036 = vtanh.f32 %v3568_v38  ;;  %v3569_v24 = vmul.f32 0.7978846, %v3553_v47  ;;  %v5924_v36 = vld [vmem:[%s7025_s9 + $0x240] ss:$8 sps:$4 sm:$0xff]   ;;  %v5932_v52 = vld [vmem:[%s7025_s9 + $0x234] ss:$8 sps:$4 sm:$0xff]  }
 0xb1c   : > { %6038 = vtanh.f32 %v3567_v1  ;;  %v5927_v38 = vld [vmem:[%s7025_s9 + $0x340] ss:$8 sps:$4 sm:$0xff]   ;;  %v5935_v47 = vld [vmem:[%s7025_s9 + $0x334] ss:$8 sps:$4 sm:$0xff]   ;;  %v5930_v1 = vld [vmem:[%s7025_s9 + $0x230] ss:$8 sps:$4 sm:$0xff]  }
 0xb1d   : > { %6040 = vtanh.f32 %v3569_v24  ;;  %v5933_v24 = vld [vmem:[%s7025_s9 + $0x330] ss:$8 sps:$4 sm:$0xff]  }
 0xb22   : > { %v6027_v58 = vpop.eup %6026 }
 0xb23   : > { %v6029_v59 = vpop.eup %6028  ;;  %v3590_v10 = vadd.f32 1.0, %v6027_v58  ;;  %v5938_v58 = vld [vmem:[%s7025_s9 + $0x224] ss:$8 sps:$4 sm:$0xff]  }
 0xb24   : > { %v6031_v60 = vpop.eup %6030  ;;  %v3592_v3 = vadd.f32 1.0, %v6029_v59  ;;  %v2668_v59 = vsub.s32 6, %v7126_v32 }
 0xb25   : > { %v6033_v25 = vpop.eup %6032  ;;  %v3591_v63 = vadd.f32 1.0, %v6031_v60  ;;  %v3606_v14 = vmul.f32 0.5, %v3590_v10  ;;  %v5941_v60 = vld [vmem:[%s7025_s9 + $0x324] ss:$8 sps:$4 sm:$0xff]   ;;  %v2661_v10 = vrot.slane %v7554_v46, %v1083_v50 }
 0xb26   : > { %v3593_v0 = vadd.f32 1.0, %v6033_v25  ;;  %v3608_v18 = vmul.f32 0.5, %v3592_v3  ;;  %v2672_v25 = vsub.s32 7, %v7126_v32  ;;  %v5947_v3 = vld [vmem:[%s7025_s9 + $0x314] ss:$8 sps:$4 sm:$0xff]  }
 0xb27   : > { %v6035_v29 = vpop.eup %6034  ;;  %v3607_v13 = vmul.f32 0.5, %v3591_v63  ;;  %v3622_v28 = vmul.f32 %v3606_v14, %v7566_v57  ;;  %v5917_v57 = vld [vmem:[%s7025_s9 + $0x364] ss:$8 sps:$4 sm:$0xff]   ;;  %v5936_v63 = vld [vmem:[%s7025_s9 + $0x220] ss:$8 sps:$4 sm:$0xff]  }
 0xb28   : > { %v6037_v2 = vpop.eup %6036  ;;  %v3598_v5 = vadd.f32 1.0, %v6035_v29  ;;  %v3609_v17 = vmul.f32 0.5, %v3593_v0  ;;  %v3624_v35 = vmul.f32 %v3608_v18, %v7568_v56  ;;  %v5912_v56 = vld [vmem:[%s7025_s9 + $0x260] ss:$8 sps:$4 sm:$0xff]   ;;  %v2669_v0 = vrot.slane %v7554_v46, %v2668_v59  ;;  %v5950_v32 = vld [vmem:[%s7025_s9 + $0x204] ss:$8 sps:$4 sm:$0xff]  }
 0xb29   : > { %v6039_v6 = vpop.eup %6038  ;;  %v3600_v7 = vadd.f32 1.0, %v6037_v2  ;;  %v3623_v23 = vmul.f32 %v3607_v13, %v7574_v61  ;;  %v5914_v61 = vld [vmem:[%s7025_s9 + $0x264] ss:$8 sps:$4 sm:$0xff]   ;;  %v5939_v29 = vld [vmem:[%s7025_s9 + $0x320] ss:$8 sps:$4 sm:$0xff]  }
 0xb2a   : > { %v6041_v8 = vpop.eup %6040  ;;  %v3614_v11 = vmul.f32 0.5, %v3598_v5  ;;  %v3599_v12 = vadd.f32 1.0, %v6039_v6  ;;  %v3625_v30 = vmul.f32 %v3609_v17, %v7576_v62  ;;  %v5915_v62 = vld [vmem:[%s7025_s9 + $0x360] ss:$8 sps:$4 sm:$0xff]   ;;  %v5944_v2 = vld [vmem:[%s7025_s9 + $0x214] ss:$8 sps:$4 sm:$0xff]   ;;  %v2665_v5 = vrot.slane %v7554_v46, %v1087_v55 }
 0xb2b   : > { %v3616_v15 = vmul.f32 0.5, %v3600_v7  ;;  %v3601_v16 = vadd.f32 1.0, %v6041_v8  ;;  %v2673_v6 = vrot.slane %v7554_v46, %v2672_v25  ;;  %v5945_v13 = vld [vmem:[%s7025_s9 + $0x310] ss:$8 sps:$4 sm:$0xff]   ;;  %v5953_v55 = vld [vmem:[%s7025_s9 + $0x304] ss:$8 sps:$4 sm:$0xff]  }
 0xb2c   : > { %v3615_v19 = vmul.f32 0.5, %v3599_v12  ;;  %v3630_v20 = vmul.f32 %v3614_v11, %v7584_v9  ;;  %v5906_v9 = vld [vmem:[%s7025_s9 + $0x270] ss:$8 sps:$4 sm:$0xff]   ;;  %v5965_v59 = vld [vmem:[%s7025_s9 + $0x3e4] ss:$8 sps:$4 sm:$0xff]  }
 0xb2d   : > { %v3617_v21 = vmul.f32 0.5, %v3601_v16  ;;  %v3632_v22 = vmul.f32 %v3616_v15, %v7586_v4  ;;  %v5942_v11 = vld [vmem:[%s7025_s9 + $0x210] ss:$8 sps:$4 sm:$0xff]  }
 0xb2e   : > { %v3631_v27 = vmul.f32 %v3615_v19, %v7594_v51  ;;  %v3638_v4 = vpack.c.bf16 %v3630_v20, %v3622_v28 }
 0xb2f   : > { %v3633_v31 = vmul.f32 %v3617_v21, %v7596_v53  ;;  %v3640_v51 = vpack.c.bf16 %v3632_v22, %v3624_v35  ;;  %v5920_v53 = vld [vmem:[%s7025_s9 + $0x254] ss:$8 sps:$4 sm:$0xff]   ;;  %v5948_v21 = vld [vmem:[%s7025_s9 + $0x200] ss:$8 sps:$4 sm:$0xff]  }
 0xb30   : > { %v3639_v37 = vpack.c.bf16 %v3631_v27, %v3623_v23 }
 0xb31   : > { %v3641_v39 = vpack.c.bf16 %v3633_v31, %v3625_v30  ;;  %v5951_v30 = vld [vmem:[%s7025_s9 + $0x300] ss:$8 sps:$4 sm:$0xff]   ;;  %v5956_v31 = vld [vmem:[%s7025_s9 + $0x2f4] ss:$8 sps:$4 sm:$0xff]  }
 0xb32   : > { %4458 = vmatprep.mubr.bf16.mxu0 %v3639_v37 }
 0xb33   : > { %4501 = vmatprep.mubr.bf16.mxu1 %v3641_v39  ;;  %4459 = vmatmul.mubr.bf16.vlgmr.msra.gmra.mxu0 %v3638_v4 }
 0xb34   : > { %4502 = vmatmul.mubr.bf16.vlgmr.msra.gmra.mxu1 %v3640_v51  ;;  %4513 = vmatpush1.bf16.msra.mxu0 %v5906_v9 }
 0xb35   : > { %4556 = vmatpush1.bf16.msra.mxu1 %v5909_v42  ;;  %4514 = vmatprep.subr.bf16.mxu0 %v5914_v61  ;;  %v5959_v42 = vld [vmem:[%s7025_s9 + $0x3f4] ss:$8 sps:$4 sm:$0xff]  }
 0xb36   : > { %4557 = vmatprep.subr.bf16.mxu1 %v5917_v57 }
 0xb38   : > { %4515 = vmatpush1.bf16.msra.mxu0 %v5912_v56 }
 0xb39   : > { %4558 = vmatpush1.bf16.msra.mxu1 %v5915_v62  ;;  %4516 = vmatprep.subr.bf16.mxu0 %v5920_v53 }
 0xb3a   : > { %4559 = vmatprep.subr.bf16.mxu1 %v5923_v43 }
 0xb3c   : > { %4517 = vmatpush1.bf16.msra.mxu0 %v5918_v44  ;;  %v5954_v44 = vld [vmem:[%s7025_s9 + $0x2f0] ss:$8 sps:$4 sm:$0xff]  }
 0xb3d   : > { %4560 = vmatpush1.bf16.msra.mxu1 %v5921_v45  ;;  %4518 = vmatprep.subr.bf16.mxu0 %v5926_v26  ;;  %v5957_v45 = vld [vmem:[%s7025_s9 + $0x3f0] ss:$8 sps:$4 sm:$0xff]  }
 0xb3e   : > { %4561 = vmatprep.subr.bf16.mxu1 %v5929_v54 }
 0xb40   : > { %4519 = vmatpush1.bf16.msra.mxu0 %v5924_v36 }
 0xb41   : > { %4562 = vmatpush1.bf16.msra.mxu1 %v5927_v38  ;;  %4520 = vmatprep.subr.bf16.mxu0 %v5932_v52  ;;  %v5962_v52 = vld [vmem:[%s7025_s9 + $0x2e4] ss:$8 sps:$4 sm:$0xff]  }
 0xb42   : > { %4563 = vmatprep.subr.bf16.mxu1 %v5935_v47 }
 0xb44   : > { %4521 = vmatpush1.bf16.msra.mxu0 %v5930_v1 }
 0xb45   : > { %4564 = vmatpush1.bf16.msra.mxu1 %v5933_v24  ;;  %4522 = vmatprep.subr.bf16.mxu0 %v5938_v58 }
 0xb46   : > { %4565 = vmatprep.subr.bf16.mxu1 %v5941_v60 }
 0xb48   : > { %4523 = vmatpush1.bf16.msra.mxu0 %v5936_v63  ;;  %v3442_v7 = vpop.f32.mrf.mxu0  ;;  %v3485_v8 = vpop.f32.mrf.mxu1 }
 0xb49   : > { %4566 = vmatpush1.bf16.msra.mxu1 %v5939_v29  ;;  %v7657_v12 = vadd.f32 %v3442_v7, %v2661_v10  ;;  %v7659_v50 = vadd.f32 %v3485_v8, %v2669_v0  ;;  %4524 = vmatprep.subr.bf16.mxu0 %v5944_v2 }
 0xb4a   : > { %v3444_v14 = vpop.f32.mrf.mxu0  ;;  %v3487_v15 = vpop.f32.mrf.mxu1  ;;  %4567 = vmatprep.subr.bf16.mxu1 %v5947_v3 }
 0xb4b   : > { %v3498_v46 = vmul.f32 %v7657_v12, %v7657_v12  ;;  %v3500_v16 = vmul.f32 %v7659_v50, %v7659_v50  ;;  %v7668_v17 = vadd.f32 %v3444_v14, %v2665_v5  ;;  %v7670_v18 = vadd.f32 %v3487_v15, %v2673_v6 }
 0xb4c   : > { %4525 = vmatpush1.bf16.msra.mxu0 %v5942_v11  ;;  %v3446_v19 = vpop.f32.mrf.mxu0  ;;  %v3489_v20 = vpop.f32.mrf.mxu1  ;;  %v5968_v11 = vld [vmem:[%s7025_s9 + $0x2d4] ss:$8 sps:$4 sm:$0xff]  }
 0xb4d   : > { %v3514_v22 = vmul.f32 %v3498_v46, %v7657_v12  ;;  %v3516_v23 = vmul.f32 %v3500_v16, %v7659_v50  ;;  %v3499_v27 = vmul.f32 %v7668_v17, %v7668_v17  ;;  %v3501_v28 = vmul.f32 %v7670_v18, %v7670_v18  ;;  %4568 = vmatpush1.bf16.msra.mxu1 %v5945_v13 }
 0xb4e   : > { %v7681_v35 = vadd.f32 %v3446_v19, %v2661_v10  ;;  %v7683_v37 = vadd.f32 %v3489_v20, %v2669_v0  ;;  %v3448_v9 = vpop.f32.mrf.mxu0  ;;  %v3491_v39 = vpop.f32.mrf.mxu1  ;;  %4526 = vmatprep.subr.bf16.mxu0 %v5950_v32  ;;  %4569 = vmatprep.subr.bf16.mxu1 %v5953_v55  ;;  %v5960_v10 = vld [vmem:[%s7025_s9 + $0x2e0] ss:$8 sps:$4 sm:$0xff]   ;;  %v5971_v32 = vld [vmem:[%s7025_s9 + $0x3d4] ss:$8 sps:$4 sm:$0xff]   ;;  %v5966_v20 = vld [vmem:[%s7025_s9 + $0x2d0] ss:$8 sps:$4 sm:$0xff]  }
 0xb4f   : > { %v3530_v4 = vmul.f32 0.044715, %v3514_v22  ;;  %v3532_v61 = vmul.f32 0.044715, %v3516_v23  ;;  %v3515_v51 = vmul.f32 %v3499_v27, %v7668_v17  ;;  %v3517_v57 = vmul.f32 %v3501_v28, %v7670_v18  ;;  %v5969_v22 = vld [vmem:[%s7025_s9 + $0x3d0] ss:$8 sps:$4 sm:$0xff]  }
 0xb50   : > { %v3506_v56 = vmul.f32 %v7681_v35, %v7681_v35  ;;  %v3508_v62 = vmul.f32 %v7683_v37, %v7683_v37  ;;  %v7692_v53 = vadd.f32 %v3448_v9, %v2665_v5  ;;  %v7694_v43 = vadd.f32 %v3491_v39, %v2673_v6  ;;  %4527 = vmatpush1.bf16.msra.mxu0 %v5948_v21  ;;  %v5963_v6 = vld [vmem:[%s7025_s9 + $0x3e0] ss:$8 sps:$4 sm:$0xff]   ;;  %v5974_v23 = vld [vmem:[%s7025_s9 + $0x2c4] ss:$8 sps:$4 sm:$0xff]   ;;  %v5980_v39 = vld [vmem:[%s7025_s9 + $0x2b4] ss:$8 sps:$4 sm:$0xff]  }
 0xb51   : > { %v3546_v26 = vadd.f32 %v3530_v4, %v7657_v12  ;;  %v3548_v54 = vadd.f32 %v3532_v61, %v7659_v50  ;;  %v3531_v36 = vmul.f32 0.044715, %v3515_v51  ;;  %v3533_v38 = vmul.f32 0.044715, %v3517_v57  ;;  %4570 = vmatpush1.bf16.msra.mxu1 %v5951_v30  ;;  %4528 = vmatprep.subr.bf16.mxu0 %v5956_v31  ;;  %v5977_v28 = vld [vmem:[%s7025_s9 + $0x3c4] ss:$8 sps:$4 sm:$0xff]  }
 0xb52   : > { %v3522_v47 = vmul.f32 %v3506_v56, %v7681_v35  ;;  %v3524_v1 = vmul.f32 %v3508_v62, %v7683_v37  ;;  %v3507_v24 = vmul.f32 %v7692_v53, %v7692_v53  ;;  %v3509_v58 = vmul.f32 %v7694_v43, %v7694_v43  ;;  %4571 = vmatprep.subr.bf16.mxu1 %v5959_v42  ;;  %v5972_v31 = vld [vmem:[%s7025_s9 + $0x2c0] ss:$8 sps:$4 sm:$0xff]   ;;  %v5983_v42 = vld [vmem:[%s7025_s9 + $0x3b4] ss:$8 sps:$4 sm:$0xff]   ;;  %v5978_v4 = vld [vmem:[%s7025_s9 + $0x2b0] ss:$8 sps:$4 sm:$0xff]  }
 0xb53   : > { %v3562_v60 = vmul.f32 0.7978846, %v3546_v26  ;;  %v3564_v25 = vmul.f32 0.7978846, %v3548_v54  ;;  %v3547_v63 = vadd.f32 %v3531_v36, %v7668_v17  ;;  %v3549_v29 = vadd.f32 %v3533_v38, %v7670_v18  ;;  %v5975_v9 = vld [vmem:[%s7025_s9 + $0x3c0] ss:$8 sps:$4 sm:$0xff]  }
 0xb54   : > { %v3538_v0 = vmul.f32 0.044715, %v3522_v47  ;;  %v3540_v2 = vmul.f32 0.044715, %v3524_v1  ;;  %v3523_v3 = vmul.f32 %v3507_v24, %v7692_v53  ;;  %v3525_v5 = vmul.f32 %v3509_v58, %v7694_v43  ;;  %4529 = vmatpush2.bf16.msra.mxu0 %v5954_v44  ;;  %v5981_v61 = vld [vmem:[%s7025_s9 + $0x3b0] ss:$8 sps:$4 sm:$0xff]  }
 0xb55   : > { %6042 = vtanh.f32 %v3562_v60  ;;  %v3563_v7 = vmul.f32 0.7978846, %v3547_v63  ;;  %v3565_v8 = vmul.f32 0.7978846, %v3549_v29  ;;  %4572 = vmatpush2.bf16.msra.mxu1 %v5957_v45  ;;  %4530 = vmatprep.subr.bf16.mxu0 %v5962_v52  ;;  %v5986_v51 = vld [vmem:[%s7025_s9 + $0x2a4] ss:$8 sps:$4 sm:$0xff]  }
 0xb56   : > { %6044 = vtanh.f32 %v3564_v25  ;;  %v3554_v13 = vadd.f32 %v3538_v0, %v7681_v35  ;;  %v3556_v14 = vadd.f32 %v3540_v2, %v7683_v37  ;;  %v3539_v15 = vmul.f32 0.044715, %v3523_v3  ;;  %4573 = vmatprep.subr.bf16.mxu1 %v5965_v59  ;;  %v5989_v56 = vld [vmem:[%s7025_s9 + $0x3a4] ss:$8 sps:$4 sm:$0xff]   ;;  %v5984_v45 = vld [vmem:[%s7025_s9 + $0x2a0] ss:$8 sps:$4 sm:$0xff]  }
 0xb57   : > { %6046 = vtanh.f32 %v3563_v7  ;;  %v3541_v55 = vmul.f32 0.044715, %v3525_v5  ;;  %v5987_v54 = vld [vmem:[%s7025_s9 + $0x3a0] ss:$8 sps:$4 sm:$0xff]   ;;  %v5992_v36 = vld [vmem:[%s7025_s9 + $0x294] ss:$8 sps:$4 sm:$0xff]  }
 0xb58   : > { %6048 = vtanh.f32 %v3565_v8  ;;  %v3570_v46 = vmul.f32 0.7978846, %v3554_v13  ;;  %v3572_v16 = vmul.f32 0.7978846, %v3556_v14  ;;  %v3555_v19 = vadd.f32 %v3539_v15, %v7692_v53  ;;  %4531 = vmatpush2.bf16.msra.mxu0 %v5960_v10  ;;  %v5995_v38 = vld [vmem:[%s7025_s9 + $0x394] ss:$8 sps:$4 sm:$0xff]  }
 0xb59   : > { %v3557_v21 = vadd.f32 %v3541_v55, %v7694_v43  ;;  %4574 = vmatpush2.bf16.msra.mxu1 %v5963_v6  ;;  %4532 = vmatprep.subr.bf16.mxu0 %v5968_v11  ;;  %v5990_v25 = vld [vmem:[%s7025_s9 + $0x290] ss:$8 sps:$4 sm:$0xff]   ;;  %v5998_v0 = vld [vmem:[%s7025_s9 + $0x284] ss:$8 sps:$4 sm:$0xff]  }
 0xb5a   : > { %6050 = vtanh.f32 %v3570_v46  ;;  %v3571_v27 = vmul.f32 0.7978846, %v3555_v19  ;;  %4575 = vmatprep.subr.bf16.mxu1 %v5971_v32  ;;  %v5993_v10 = vld [vmem:[%s7025_s9 + $0x390] ss:$8 sps:$4 sm:$0xff]   ;;  %v6001_v5 = vld [vmem:[%s7025_s9 + $0x384] ss:$8 sps:$4 sm:$0xff]  }
 0xb5b   : > { %6052 = vtanh.f32 %v3572_v16  ;;  %v3573_v30 = vmul.f32 0.7978846, %v3557_v21  ;;  %v5996_v32 = vld [vmem:[%s7025_s9 + $0x280] ss:$8 sps:$4 sm:$0xff]  }
 0xb5c   : > { %6054 = vtanh.f32 %v3571_v27  ;;  %4533 = vmatpush2.bf16.msra.mxu0 %v5966_v20  ;;  %v5999_v16 = vld [vmem:[%s7025_s9 + $0x380] ss:$8 sps:$4 sm:$0xff]  }
 0xb5d   : > { %6056 = vtanh.f32 %v3573_v30  ;;  %4576 = vmatpush2.bf16.msra.mxu1 %v5969_v22  ;;  %4534 = vmatprep.subr.bf16.mxu0 %v5974_v23 }
 0xb5e   : > { %4577 = vmatprep.subr.bf16.mxu1 %v5977_v28 }
 0xb60   : > { %4535 = vmatpush2.bf16.msra.mxu0 %v5972_v31 }
 0xb61   : > { %4578 = vmatpush2.bf16.msra.mxu1 %v5975_v9  ;;  %4536 = vmatprep.subr.bf16.mxu0 %v5980_v39 }
 0xb62   : > { %v6043_v57 = vpop.eup %6042  ;;  %4579 = vmatprep.subr.bf16.mxu1 %v5983_v42 }
 0xb63   : > { %v6045_v62 = vpop.eup %6044  ;;  %v3594_v1 = vadd.f32 1.0, %v6043_v57 }
 0xb64   : > { %v6047_v44 = vpop.eup %6046  ;;  %4537 = vmatpush2.bf16.msra.mxu0 %v5978_v4  ;;  %v3596_v59 = vadd.f32 1.0, %v6045_v62 }
 0xb65   : > { %v6049_v26 = vpop.eup %6048  ;;  %4580 = vmatpush2.bf16.msra.mxu1 %v5981_v61  ;;  %4538 = vmatprep.subr.bf16.mxu0 %v5986_v51  ;;  %v3595_v52 = vadd.f32 1.0, %v6047_v44  ;;  %v3610_v8 = vmul.f32 0.5, %v3594_v1 }
 0xb66   : > { %4581 = vmatprep.subr.bf16.mxu1 %v5989_v56  ;;  %v3597_v24 = vadd.f32 1.0, %v6049_v26  ;;  %v3612_v15 = vmul.f32 0.5, %v3596_v59 }
 0xb67   : > { %v6051_v47 = vpop.eup %6050  ;;  %v3611_v7 = vmul.f32 0.5, %v3595_v52  ;;  %v3626_v23 = vmul.f32 %v3610_v8, %v7657_v12  ;;  %v3774_v12 = vld [vmem:[%s7023_s7] sm:$0x3] }
 0xb68   : > { %v6053_v58 = vpop.eup %6052  ;;  %v3602_v60 = vadd.f32 1.0, %v6051_v47  ;;  %4539 = vmatpush2.bf16.msra.mxu0 %v5984_v45  ;;  %v3613_v14 = vmul.f32 0.5, %v3597_v24 }
 0xb69   : > { %v6055_v63 = vpop.eup %6054  ;;  %v3604_v29 = vadd.f32 1.0, %v6053_v58  ;;  %4582 = vmatpush2.bf16.msra.mxu1 %v5987_v54  ;;  %4540 = vmatprep.subr.bf16.mxu0 %v5992_v36  ;;  %v3627_v21 = vmul.f32 %v3611_v7, %v7668_v17 }
 0xb6a   : > { %v6057_v2 = vpop.eup %6056  ;;  %v3618_v3 = vmul.f32 0.5, %v3602_v60  ;;  %4583 = vmatprep.subr.bf16.mxu1 %v5995_v38  ;;  %v3603_v6 = vadd.f32 1.0, %v6055_v63  ;;  %v3629_v27 = vmul.f32 %v3613_v14, %v7670_v18  ;;  %v3779_v18 = vrot.slane %v3774_v12, %v7132_v34 }
 0xb6b   : > { %v3620_v11 = vmul.f32 0.5, %v3604_v29  ;;  %v3605_v13 = vadd.f32 1.0, %v6057_v2 }
 0xb6c   : > { %4541 = vmatpush2.bf16.msra.mxu0 %v5990_v25  ;;  %v3619_v55 = vmul.f32 0.5, %v3603_v6  ;;  %v3634_v46 = vmul.f32 %v3618_v3, %v7681_v35  ;;  %v3628_v35 = vmul.f32 %v3612_v15, %v7659_v50 }
 0xb6d   : > { %4584 = vmatpush2.bf16.msra.mxu1 %v5993_v10  ;;  %4542 = vmatprep.subr.bf16.mxu0 %v5998_v0  ;;  %v3621_v19 = vmul.f32 0.5, %v3605_v13  ;;  %v3636_v20 = vmul.f32 %v3620_v11, %v7683_v37 }
 0xb6e   : > { %4585 = vmatprep.subr.bf16.mxu1 %v6001_v5  ;;  %v3635_v22 = vmul.f32 %v3619_v55, %v7692_v53  ;;  %v3642_v9 = vpack.c.bf16 %v3634_v46, %v3626_v23 }
 0xb6f   : > { %v3637_v28 = vmul.f32 %v3621_v19, %v7694_v43  ;;  %v3644_v37 = vpack.c.bf16 %v3636_v20, %v3628_v35  ;;  %v3783_v43 = vrot.slane %v3774_v12, %v7129_v33 }
 0xb70   : > { %4543 = vmatpush2.bf16.msra.mxu0 %v5996_v32  ;;  %v3643_v30 = vpack.c.bf16 %v3635_v22, %v3627_v21 }
 0xb71   : > { %4586 = vmatpush2.bf16.msra.mxu1 %v5999_v16  ;;  %v3645_v31 = vpack.c.bf16 %v3637_v28, %v3629_v27 }
 0xb72   : > { %4544 = vmatprep.mubr.bf16.mxu0 %v3643_v30 }
 0xb73   : > { %4587 = vmatprep.mubr.bf16.mxu1 %v3645_v31  ;;  %4545 = vmatmul.mubr.bf16.vlgmr.msra.gmra.mxu0 %v3642_v9 }
 0xb74   : > { %4588 = vmatmul.mubr.bf16.vlgmr.msra.gmra.mxu1 %v3644_v37 }
 0xbf3   : > { %v4460_v17 = vpop.f32.mrf.mxu0 }
 0xbf4   : > { %v4503_v53 = vpop.f32.mrf.mxu1  ;;  %v4461_v4 = vadd.f32 %v4460_v17, %v3779_v18 }
 0xbf5   : > { %v4462_v39 = vpop.f32.mrf.mxu0 }
 0xbf6   : > { %v4505_v42 = vpop.f32.mrf.mxu1  ;;  %v4463_v51 = vadd.f32 %v4462_v39, %v3783_v43  ;;  %v4504_v56 = vadd.f32 %v4503_v53, %v4461_v4 }
 0xbf7   : > { %v4464_v50 = vpop.f32.mrf.mxu0 }
 0xbf8   : > { %v4507_v61 = vpop.f32.mrf.mxu1  ;;  %v4465_v62 = vadd.f32 %v4464_v50, %v3779_v18  ;;  %v4506_v26 = vadd.f32 %v4505_v42, %v4463_v51 }
 0xbf9   : > { %v4466_v57 = vpop.f32.mrf.mxu0 }
 0xbfa   : > { %v4509_v44 = vpop.f32.mrf.mxu1  ;;  %v4467_v54 = vadd.f32 %v4466_v57, %v3783_v43  ;;  %v4508_v47 = vadd.f32 %v4507_v61, %v4465_v62 }
 0xbfc   : > { %v4510_v60 = vadd.f32 %v4509_v44, %v4467_v54 }
 0xc33   : > { %v4546_v45 = vpop.f32.mrf.mxu0 }
 0xc34   : > { %v4547_v36 = vadd.f32 %v4546_v45, %v4504_v56  ;;  %v4589_v38 = vpop.f32.mrf.mxu1 }
 0xc35   : > { %v4548_v52 = vpop.f32.mrf.mxu0 }
 0xc36   : > { %v4590_v1 = vadd.f32 %v4589_v38, %v4547_v36  ;;  %v4549_v24 = vadd.f32 %v4548_v52, %v4506_v26  ;;  %v4591_v58 = vpop.f32.mrf.mxu1 }
 0xc37   : > { %v4550_v59 = vpop.f32.mrf.mxu0 }
 0xc38   : > { %v4598_v25 = vadd.f32 %v4590_v1, %v7309_v40  ;;  %v4592_v63 = vadd.f32 %v4591_v58, %v4549_v24  ;;  %v4551_v29 = vadd.f32 %v4550_v59, %v4508_v47  ;;  %v4593_v10 = vpop.f32.mrf.mxu1 }
 0xc39   : > { %v4552_v0 = vpop.f32.mrf.mxu0 }
 0xc3a   : > { %4602 = vst [vmem:[#allocation2 + $0x10] sm:$0xff] %v4598_v25  ;;  %v4599_v2 = vadd.f32 %v4592_v63, %v7311_v41  ;;  %v4594_v3 = vadd.f32 %v4593_v10, %v4551_v29  ;;  %v4553_v5 = vadd.f32 %v4552_v0, %v4510_v60  ;;  %v4595_v6 = vpop.f32.mrf.mxu1 }
 0xc3c   : > { %4603 = vst [vmem:[#allocation2] sm:$0xff] %v4599_v2  ;;  %v4600_v7 = vadd.f32 %v4594_v3, %v7315_v49  ;;  %v4596_v8 = vadd.f32 %v4595_v6, %v4553_v5  ;;  %4609 = sbr.rel (%p5408_p4) target bundleno = 3452 (0xd7c), region = 132 }
 0xc3e   : > { %4604 = vst [vmem:[#allocation2 + $0x18] sm:$0xff] %v4600_v7  ;;  %v4601_v11 = vadd.f32 %v4596_v8, %v7317_v48 }
 0xc40   : > { %4605 = vst [vmem:[#allocation2 + $0x8] sm:$0xff] %v4601_v11 }
 0xc41   : > { %v4612_v40 = vadd.f32 %v4599_v2, %v4598_v25  ;;  %v4615_v13 = vadd.f32 %v4601_v11, %v4600_v7  ;;  %v4610_v37 = vld [vmem:[%s7871_s13] sm:$0x3] }
 0xc42   : > { %v4611_v17 = vld [vmem:[%s7872_s21] sm:$0x3]  ;;  %v4648_v53 = vrot.slane %v4610_v37, %v7132_v34  ;;  %v4652_v12 = vrot.slane %v4610_v37, %v7129_v33 }
 0xc43   : > { %4613 = vadd.xlane.f32.xlu0 %v4612_v40  ;;  %v4663_v43 = vrot.slane %v4611_v17, %v7132_v34  ;;  %v4667_v50 = vrot.slane %v4611_v17, %v7129_v33 }
 0xc47   : > { %4616 = vadd.xlane.f32.xlu0 %v4615_v13 }
 0xccc   : > { %v4614_v14 = vpop.xlane.xlu0 %4613 }
 0xccd   : > { %v4618_v41 = vmul.f32 0.00390625, %v4614_v14 }
 0xccf   : > { %v4620_v15 = vsub.f32 %v4598_v25, %v4618_v41  ;;  %v4621_v32 = vsub.f32 %v4599_v2, %v4618_v41 }
 0xcd0   : > { %v4617_v55 = vpop.xlane.xlu0 %4616 }
 0xcd1   : > { %v4619_v46 = vmul.f32 0.00390625, %v4617_v55  ;;  %v4624_v16 = vmul.f32 %v4620_v15, %v4620_v15  ;;  %v4625_v49 = vmul.f32 %v4621_v32, %v4621_v32 }
 0xcd3   : > { %v4622_v19 = vsub.f32 %v4600_v7, %v4619_v46  ;;  %v4623_v20 = vsub.f32 %v4601_v11, %v4619_v46  ;;  %v4628_v21 = vadd.f32 %v4625_v49, %v4624_v16 }
 0xcd5   : > { %4629 = vadd.xlane.f32.xlu1 %v4628_v21  ;;  %v4626_v48 = vmul.f32 %v4622_v19, %v4622_v19  ;;  %v4627_v22 = vmul.f32 %v4623_v20, %v4623_v20 }
 0xcd7   : > { %v4631_v23 = vadd.f32 %v4627_v22, %v4626_v48 }
 0xcd9   : > { %4632 = vadd.xlane.f32.xlu1 %v4631_v23 }
 0xd5e   : > { %v4630_v27 = vpop.xlane.xlu1 %4629 }
 0xd5f   : > { %v4634_v28 = vmul.f32 0.00390625, %v4630_v27 }
 0xd61   : > { %v4636_v35 = vadd.f32 1e-05, %v4634_v28 }
 0xd62   : > { %v4633_v30 = vpop.xlane.xlu1 %4632 }
 0xd63   : > { %6062 = vrsqrt.f32 %v4636_v35  ;;  %v4635_v31 = vmul.f32 0.00390625, %v4633_v30 }
 0xd65   : > { %v4637_v9 = vadd.f32 1e-05, %v4635_v31 }
 0xd67   : > { %6064 = vrsqrt.f32 %v4637_v9 }
 0xd70   : > { %v6063_v39 = vpop.eup %6062 }
 0xd71   : > { %v4640_v18 = vmul.f32 %v6063_v39, %v4620_v15  ;;  %v4641_v42 = vmul.f32 %v6063_v39, %v4621_v32 }
 0xd73   : > { %v4655_v4 = vmul.f32 %v4648_v53, %v4640_v18  ;;  %v4656_v61 = vmul.f32 %v4652_v12, %v4641_v42 }
 0xd74   : > { %v6065_v51 = vpop.eup %6064 }
 0xd75   : > { %v4670_v57 = vadd.f32 %v4663_v43, %v4655_v4  ;;  %v4671_v56 = vadd.f32 %v4667_v50, %v4656_v61  ;;  %v4642_v62 = vmul.f32 %v6065_v51, %v4622_v19  ;;  %v4643_v44 = vmul.f32 %v6065_v51, %v4623_v20 }
 0xd77   : > { %4674 = vst [vmem:[#allocation21] sm:$0xff] %v4670_v57  ;;  %4675 = vst [vmem:[#allocation21 + $0x8] sm:$0xff] %v4671_v56  ;;  %v4657_v45 = vmul.f32 %v4648_v53, %v4642_v62  ;;  %v4658_v26 = vmul.f32 %v4652_v12, %v4643_v44 }
 0xd79   : > { %v4672_v54 = vadd.f32 %v4663_v43, %v4657_v45  ;;  %v4673_v36 = vadd.f32 %v4667_v50, %v4658_v26 }
 0xd7b   : > { %4676 = vst [vmem:[#allocation21 + $0x10] sm:$0xff] %v4672_v54  ;;  %4677 = vst [vmem:[#allocation21 + $0x18] sm:$0xff] %v4673_v36 }
 0xd7c PF: > { %p5569_p10 = scmp.eq.s32.totalorder %s6784_s24, 1  ;;  %s6478_s5 = smov [#allocation21]  }
 0xd7d   : > { %s4684_s27 = sshll.u32 %s6478_s5, 4  ;;  %s4685_s27 = int_to_ptr.vmem [resolvable:$true] %s4684_s27 }
 0xd7e   : > { %s6372_s23 = scalar_lea.vmem %s4685_s27, 512  ;;  %p6379_p3 = scmp.lt.s32.totalorder %s4685_s27, %s4685_s27 }
 0xd7f   : > { %p6373_p11 = scmp.ne.s32.totalorder %s4685_s27, %s6372_s23  ;;  %p6380_p6 = scmp.lt.s32.totalorder %s6372_s23, %s6372_s23 }
 0xd81   : > { %p6374_p2 = pnand %p6373_p11, %p5569_p10  ;;  %p6381_p8 = por %p6380_p6, %p6379_p3 }
 0xd83   : > { %p6375_p9 = pneg %p6374_p2 }
 0xd85   : > { %p6382_p7 = pnand %p6381_p8, %p6375_p9 }
 0xd87   : > { %6385 = shalt.err (!%p6382_p7)
}
 0xd88   : > { %s6479_s9 = smov 256   ;;  %s6480_s14 = smov 16  }
 0xd89   : > { %s7873_s28 = sld [smem:[#allocation44_spill]] }
 0xd8f   : > { %5528 = dma.vmem_to_hbm [thread:$0]  (%p5569_p10), %s4685_s27, 512, %s7873_s28, [#allocation5], %s6479_s9, %s6479_s9, %s6480_s14  }
 0xd90   : > { %6437 = dma.done.wait (%p5569_p10), [#allocation5], 512  }
 0xd91   : > { %6439 = vsyncadd (%p5569_p10), [#allocation5], 4294966784 }
 0xd92 PF: > { %s7874_s21 = sld [smem:[#allocation30_spill]]  ;;  %s7877_s18 = smov %s6446_s19 }
 0xd93   : > { %s7875_s15 = sld [smem:[#allocation29_spill]] }
 0xd94   : > { %s7876_s20 = sld [smem:[#allocation31_spill]] }
 0xd98   : > { %p39_p13 = scmp.ge.s32.totalorder %s7874_s21, 4  }
 0xd99   : > { %s7878_s19 = smov %s7875_s15 }
 0xd9a   :  { %41 = sbr.rel (!%p39_p13) target bundleno = 27 (0x1b), region = 243 }
 0xd9f   :  { %4700 = vsyncpa [#allocation4], 1 }
 0xda0   :  { %4702 = vsyncpa [#allocation4 + $0x1], 1 }
 0xda1   :  { %4703 = vsyncpa [#allocation7], 1 }
 0xda2   :  { %4705 = vsyncpa [#allocation7 + $0x1], 1 }
 0xda3   :  { %4706 = vsyncpa [#allocation10], 1 }
 0xda4   :  { %4708 = vsyncpa [#allocation10 + $0x1], 1 }
 0xda5   :  { %4709 = vsyncpa [#allocation13], 1 }
 0xda6   :  { %4711 = vsyncpa [#allocation13 + $0x1], 1 }
 0xda7   :  { %4712 = vsyncpa [#allocation16], 1 }
 0xda8   :  { %4714 = vsyncpa [#allocation16 + $0x1], 1 }
 0xda9   :  { %4715 = vsyncpa [#allocation19], 1 }
 0xdaa   :  { %4717 = vsyncpa [#allocation19 + $0x1], 1 }
 0xdab   :  { %4718 = vsyncpa [#allocation5], 1 }
 0xdac   :  { %4720 = vsyncpa [#allocation5 + $0x1], 1 }

</bundles_post_ra>
